<compile_context>
chip_gen: v7x
topology: tpu7x:2x2x1
jax: 0.10.0
libtpu: 0.0.40
codegen_flags: <defaults>
</compile_context>

<pallas_src>
import functools

import numpy as np
import jax
import jax.numpy as jnp
from jax.experimental import pallas as pl
from jax.experimental.pallas import tpu as pltpu


# ----------------------------------------------------------------------------
# Fused Pallas kernel: one grid step == one batch element, all iterations.
# ----------------------------------------------------------------------------
def seranet_fused_kernel(
    # scalar (SMEM)
    dcw_ref,
    # per-batch data (VMEM, block = one batch element), channels-major (chan, H*W)
    recon_ref, seg_ref, kre_ref, kim_ref, mask_ref,
    # attention conv1x1 MLP weights (pre-transposed / pre-split on host)
    w1r_ref, w1a_ref, b1_ref, w2r_ref, w2i_ref, b2r_ref, b2i_ref,
    # unet conv1x1 MLP weights
    uw1r_ref, uw1i_ref, ub1_ref, uw2_ref, ub2_ref,
    # 2-D centered ortho DFT matrices (transposed), real/imag planes, (H*W, H*W)
    ffr_ref, ffi_ref, fir_ref, fii_ref,
    # output: final attention map (n_classes, H*W) for this batch element
    out_ref,
    *, num_iterations):
    f32 = jnp.float32

    dcw = dcw_ref[0]                         # scalar from SMEM
    recon = recon_ref[0]                     # (2*C_img,   HW)
    seg = seg_ref[0]                         # (n_classes, HW)
    k_re = kre_ref[0]                        # (coils,     HW)
    k_im = kim_ref[0]
    # mask block is (1, HW); hoist the sublane broadcast out of the iteration loop.
    msk = jnp.broadcast_to(mask_ref[0], k_re.shape) > 0.0

    w1r, w1a, b1 = w1r_ref[...], w1a_ref[...], b1_ref[...]
    w2r, w2i = w2r_ref[...], w2i_ref[...]
    b2r, b2i = b2r_ref[...], b2i_ref[...]
    uw1r, uw1i, ub1 = uw1r_ref[...], uw1i_ref[...], ub1_ref[...]
    uw2, ub2 = uw2_ref[...], ub2_ref[...]
    ffr, ffi = ffr_ref[...], ffi_ref[...]
    fir, fii = fir_ref[...], fii_ref[...]

    def cmm(ar, ai, br, bi):
        """Complex matmul on real/imag planes: rows (coils, HW) @ DFT^T (HW, HW)."""
        rr = (jnp.dot(ar, br, preferred_element_type=f32)
              - jnp.dot(ai, bi, preferred_element_type=f32))
        ri = (jnp.dot(ar, bi, preferred_element_type=f32)
              + jnp.dot(ai, br, preferred_element_type=f32))
        return rr, ri

    att_map = seg              # attention_map = pred_segmentation.clone()
    p_re, p_im = k_re, k_im    # prev_prediction = ref_kspace.clone()

    for _ in range(num_iterations):
        # --- attention model: conv1x1(concat(recon_chans, att*seg)) -> ReLU -> conv1x1
        hid = (jnp.dot(w1r, recon, preferred_element_type=f32)
               + jnp.dot(w1a, att_map * seg, preferred_element_type=f32)
               + b1)
        hid = jnp.maximum(hid, 0.0)
        a_re = jnp.dot(w2r, hid, preferred_element_type=f32) + b2r   # (coils, HW)
        a_im = jnp.dot(w2i, hid, preferred_element_type=f32) + b2i

        # --- SERANetDC: fft2c -> soft data consistency -> ifft2c (all f32)
        f_re, f_im = cmm(a_re, a_im, ffr, ffi)
        sdc_re = jnp.where(msk, f_re - k_re, 0.0) * dcw
        sdc_im = jnp.where(msk, f_im - k_im, 0.0) * dcw
        n_re = p_re - sdc_re - f_re
        n_im = p_im - sdc_im - f_im
        p_re, p_im = cmm(n_re, n_im, fir, fii)        # new prev_prediction

        # --- unet model: conv1x1([re coils, im coils]) -> ReLU -> conv1x1
        uh = (jnp.dot(uw1r, p_re, preferred_element_type=f32)
              + jnp.dot(uw1i, p_im, preferred_element_type=f32)
              + ub1)
        uh = jnp.maximum(uh, 0.0)
        att_map = jnp.dot(uw2, uh, preferred_element_type=f32) + ub2  # (n_classes, HW)

    out_ref[0] = att_map


# ----------------------------------------------------------------------------
# Host-side helpers
# ----------------------------------------------------------------------------
def _centered_dft_matrix_np(n, inverse=False):
    """Matrix M with M @ x == fftshift((i)fft(ifftshift(x), norm='ortho'))."""
    eye = np.eye(n, dtype=np.complex128)
    shifted = np.fft.ifftshift(eye, axes=0)
    f = (np.fft.ifft(shifted, axis=0, norm="ortho") if inverse
         else np.fft.fft(shifted, axis=0, norm="ortho"))
    return np.fft.fftshift(f, axes=0)


def _dft2_mats(h, w):
    """2-D centered ortho (i)DFT as (h*w, h*w) matrices; returns F_fwd^T, F_inv^T re/im.

    With images flattened row-major (h, w) as matrix rows, fft2c == rows @ F_fwd^T.
    """
    f_fwd = np.kron(_centered_dft_matrix_np(h), _centered_dft_matrix_np(w))
    f_inv = np.kron(_centered_dft_matrix_np(h, True), _centered_dft_matrix_np(w, True))
    out = []
    for m in (f_fwd.T, f_inv.T):
        out += [jnp.asarray(np.real(m), jnp.float32),
                jnp.asarray(np.imag(m), jnp.float32)]
    return out   # [ffr, ffi, fir, fii]


def complex_to_chan_dim(x):
    b, c, h, w, two = x.shape
    assert two == 2
    return jnp.transpose(x, (0, 4, 1, 2, 3)).reshape(b, 2 * c, h, w)


def chan_complex_to_last_dim(x):
    b, c2, h, w = x.shape
    assert c2 % 2 == 0
    c = c2 // 2
    return jnp.transpose(x.reshape(b, 2, c, h, w), (0, 2, 3, 4, 1))


# ----------------------------------------------------------------------------
# SERANetRecurrentBlock forward: one fused pallas_call for the whole loop.
# ----------------------------------------------------------------------------
def seranet_recurrent_block(params, pred_recon, pred_seg, ref_ksp, sens_maps,
                            mask, num_iterations):
    # NOTE: sensitivity_maps is accepted but unused, exactly as in the PyTorch forward.
    del sens_maps
    B, C_IMG, H, W, _ = pred_recon.shape
    _, COILS, _, _, _ = ref_ksp.shape
    _, N_CLASSES, _, _ = pred_seg.shape
    HW = H * W
    f32 = jnp.float32

    # ---- loop-invariant channels-major (channels, pixels) views; built once per call
    recon_chans = complex_to_chan_dim(pred_recon).reshape(B, 2 * C_IMG, HW).astype(f32)
    seg = pred_seg.reshape(B, N_CLASSES, HW).astype(f32)
    k_re = ref_ksp[..., 0].reshape(B, COILS, HW).astype(f32)
    k_im = ref_ksp[..., 1].reshape(B, COILS, HW).astype(f32)
    msk = mask[:, :, :, :, 0].reshape(B, 1, HW).astype(f32)     # kept un-broadcast
    dcw = params["dc_weight"].reshape(1).astype(f32)

    # ---- weights, transposed to (Cout, Cin) and split on the host so the kernel
    #      never needs an in-kernel concat or sublane slice.
    w1r = params["att_w1"][:2 * C_IMG, :].T.astype(f32)         # (HID, 2*C_img)
    w1a = params["att_w1"][2 * C_IMG:, :].T.astype(f32)         # (HID, n_classes)
    b1 = params["att_b1"].reshape(-1, 1).astype(f32)            # (HID, 1)
    w2t = params["att_w2"].T.astype(f32)                        # (2*coils, HID)
    w2r, w2i = w2t[:COILS], w2t[COILS:]
    b2 = params["att_b2"].reshape(-1, 1).astype(f32)
    b2r, b2i = b2[:COILS], b2[COILS:]
    uw1t = params["unet_w1"].T.astype(f32)                      # (HID, 2*coils)
    uw1r, uw1i = uw1t[:, :COILS], uw1t[:, COILS:]
    ub1 = params["unet_b1"].reshape(-1, 1).astype(f32)
    uw2 = params["unet_w2"].T.astype(f32)                       # (n_classes, HID)
    ub2 = params["unet_b2"].reshape(-1, 1).astype(f32)

    # ---- 2-D centered ortho DFT matrices (compile-time constants, f32)
    ffr, ffi, fir, fii = _dft2_mats(H, W)

    per_batch = lambda d: pl.BlockSpec((1, d, HW), lambda b: (b, 0, 0))
    const = lambda a: pl.BlockSpec(a.shape, lambda b: (0, 0))

    in_specs = [
        pl.BlockSpec(memory_space=pltpu.MemorySpace.SMEM),      # dc_weight scalar
        per_batch(2 * C_IMG), per_batch(N_CLASSES),
        per_batch(COILS), per_batch(COILS), per_batch(1),
        const(w1r), const(w1a), const(b1),
        const(w2r), const(w2i), const(b2r), const(b2i),
        const(uw1r), const(uw1i), const(ub1), const(uw2), const(ub2),
        const(ffr), const(ffi), const(fir), const(fii),
    ]

    out = pl.pallas_call(
        functools.partial(seranet_fused_kernel, num_iterations=num_iterations),
        grid=(B,),
        out_shape=jax.ShapeDtypeStruct((B, N_CLASSES, HW), f32),
        in_specs=in_specs,
        out_specs=pl.BlockSpec((1, N_CLASSES, HW), lambda b: (b, 0, 0)),
        compiler_params=pltpu.CompilerParams(
            dimension_semantics=("parallel",)),   # 2 batch elems -> both v7x TCs
    )(dcw, recon_chans, seg, k_re, k_im, msk,
      w1r, w1a, b1, w2r, w2i, b2r, b2i,
      uw1r, uw1i, ub1, uw2, ub2,
      ffr, ffi, fir, fii)

    return out.reshape(B, N_CLASSES, H, W)


# ----------------------------------------------------------------------------
# Pure-JAX reference (jnp.fft + einsum) for correctness checking
# ----------------------------------------------------------------------------
def ref_forward(params, pred_recon, pred_seg, ref_ksp, mask, num_iterations):
    def conv1x1_mlp(x, w1, b1, w2, b2):
        h = jnp.einsum("bchw,cd->bdhw", x, w1) + b1.reshape(1, -1, 1, 1)
        h = jnp.maximum(h, 0.0)
        return jnp.einsum("bchw,cd->bdhw", h, w2) + b2.reshape(1, -1, 1, 1)

    def fft2c(x):
        return jnp.fft.fftshift(
            jnp.fft.fftn(jnp.fft.ifftshift(x, axes=(-2, -1)), axes=(-2, -1),
                         norm="ortho"), axes=(-2, -1))

    def ifft2c(x):
        return jnp.fft.fftshift(
            jnp.fft.ifftn(jnp.fft.ifftshift(x, axes=(-2, -1)), axes=(-2, -1),
                          norm="ortho"), axes=(-2, -1))

    to_c = lambda x: x[..., 0] + 1j * x[..., 1]
    to_ri = lambda z: jnp.stack([jnp.real(z), jnp.imag(z)], axis=-1)

    dcw = params["dc_weight"][0]
    attention_map = pred_seg
    prev_prediction = ref_ksp
    for _ in range(num_iterations):
        att_in = jnp.concatenate(
            [complex_to_chan_dim(pred_recon), attention_map * pred_seg], axis=1)
        attn = chan_complex_to_last_dim(
            conv1x1_mlp(att_in, params["att_w1"], params["att_b1"],
                        params["att_w2"], params["att_b2"]))
        pred = fft2c(to_c(attn))
        soft_dc = jnp.where(mask[..., 0] > 0, pred - to_c(ref_ksp), 0.0 + 0.0j) * dcw
        attn = to_ri(ifft2c(to_c(prev_prediction) - soft_dc - pred))
        prev_prediction = attn
        attention_map = conv1x1_mlp(complex_to_chan_dim(attn),
                                    params["unet_w1"], params["unet_b1"],
                                    params["unet_w2"], params["unet_b2"])
    return attention_map


# ----------------------------------------------------------------------------
if __name__ == "__main__":
    B, C_IMG, COILS, N_CLASSES, H, W = 2, 1, 4, 2, 16, 16
    HIDDEN, NUM_ITERS = 32, 2
    ATT_IN = 2 * C_IMG + N_CLASSES   # concat(image chans, attention*seg)
    ATT_OUT = 2 * COILS              # must fold back to (B, COILS, H, W, 2)
    UNET_IN = 2 * COILS
    UNET_OUT = N_CLASSES             # must broadcast-multiply with pred_seg

    key = jax.random.PRNGKey(0)
    ks = jax.random.split(key, 16)
    wgen = lambda k, s: 0.1 * jax.random.normal(k, s, dtype=jnp.float32)

    params = {
        "att_w1": wgen(ks[0], (ATT_IN, HIDDEN)),
        "att_b1": wgen(ks[1], (1, HIDDEN)),
        "att_w2": wgen(ks[2], (HIDDEN, ATT_OUT)),
        "att_b2": wgen(ks[3], (1, ATT_OUT)),
        "unet_w1": wgen(ks[4], (UNET_IN, HIDDEN)),
        "unet_b1": wgen(ks[5], (1, HIDDEN)),
        "unet_w2": wgen(ks[6], (HIDDEN, UNET_OUT)),
        "unet_b2": wgen(ks[7], (1, UNET_OUT)),
        "dc_weight": jnp.ones((1,), jnp.float32),   # nn.Parameter(torch.ones(1))
    }

    pred_reconstruction = jax.random.normal(ks[8], (B, C_IMG, H, W, 2), jnp.float32)
    pred_segmentation = jax.random.normal(ks[9], (B, N_CLASSES, H, W), jnp.float32)
    ref_kspace = jax.random.normal(ks[10], (B, COILS, H, W, 2), jnp.float32)
    sensitivity_maps = jax.random.normal(ks[11], (B, COILS, H, W, 2), jnp.float32)
    mask = (jax.random.uniform(ks[12], (B, 1, H, W, 1)) > 0.5).astype(jnp.float32)

    fwd = jax.jit(functools.partial(seranet_recurrent_block,
                                    num_iterations=NUM_ITERS))
    out = fwd(params, pred_reconstruction, pred_segmentation, ref_kspace,
              sensitivity_maps, mask)
    out = jax.block_until_ready(out)

    ref = ref_forward(params, pred_reconstruction, pred_segmentation, ref_kspace,
                      mask, NUM_ITERS)
    np.testing.assert_allclose(np.asarray(out), np.asarray(ref),
                               rtol=1e-3, atol=1e-3)
    print("KERNEL_OK")
</pallas_src>

<mosaic_0001>
module attributes {stable_mosaic.version = 11 : i64} {
  func.func @seranet_fused_kernel(%arg0: i32, %arg1: memref<1xf32, #tpu.memory_space<smem>>, %arg2: memref<1x2x256xf32, #tpu.memory_space<vmem>>, %arg3: memref<1x2x256xf32, #tpu.memory_space<vmem>>, %arg4: memref<1x4x256xf32, #tpu.memory_space<vmem>>, %arg5: memref<1x4x256xf32, #tpu.memory_space<vmem>>, %arg6: memref<1x1x256xf32, #tpu.memory_space<vmem>>, %arg7: memref<32x2xf32, #tpu.memory_space<vmem>>, %arg8: memref<32x2xf32, #tpu.memory_space<vmem>>, %arg9: memref<32x1xf32, #tpu.memory_space<vmem>>, %arg10: memref<4x32xf32, #tpu.memory_space<vmem>>, %arg11: memref<4x32xf32, #tpu.memory_space<vmem>>, %arg12: memref<4x1xf32, #tpu.memory_space<vmem>>, %arg13: memref<4x1xf32, #tpu.memory_space<vmem>>, %arg14: memref<32x4xf32, #tpu.memory_space<vmem>>, %arg15: memref<32x4xf32, #tpu.memory_space<vmem>>, %arg16: memref<32x1xf32, #tpu.memory_space<vmem>>, %arg17: memref<2x32xf32, #tpu.memory_space<vmem>>, %arg18: memref<2x1xf32, #tpu.memory_space<vmem>>, %arg19: memref<256x256xf32, #tpu.memory_space<vmem>>, %arg20: memref<256x256xf32, #tpu.memory_space<vmem>>, %arg21: memref<256x256xf32, #tpu.memory_space<vmem>>, %arg22: memref<256x256xf32, #tpu.memory_space<vmem>>, %arg23: memref<1x2x256xf32, #tpu.memory_space<vmem>>) attributes {dimension_semantics = [#tpu.dimension_semantics<parallel>], iteration_bounds = array<i64: 2>, scalar_prefetch = 0 : i64, scratch_operands = 0 : i64, tpu.core_type = #tpu.core_type<tc>, window_params = [{transform_indices = @transform_0, window_bounds = array<i64: 1>}, {transform_indices = @transform_1, window_bounds = array<i64: 1, 2, 256>}, {transform_indices = @transform_2, window_bounds = array<i64: 1, 2, 256>}, {transform_indices = @transform_3, window_bounds = array<i64: 1, 4, 256>}, {transform_indices = @transform_4, window_bounds = array<i64: 1, 4, 256>}, {transform_indices = @transform_5, window_bounds = array<i64: 1, 1, 256>}, {pipeline_mode = #tpu.pipeline_mode<synchronous>, transform_indices = @transform_6, window_bounds = array<i64: 32, 2>}, {pipeline_mode = #tpu.pipeline_mode<synchronous>, transform_indices = @transform_7, window_bounds = array<i64: 32, 2>}, {pipeline_mode = #tpu.pipeline_mode<synchronous>, transform_indices = @transform_8, window_bounds = array<i64: 32, 1>}, {pipeline_mode = #tpu.pipeline_mode<synchronous>, transform_indices = @transform_9, window_bounds = array<i64: 4, 32>}, {pipeline_mode = #tpu.pipeline_mode<synchronous>, transform_indices = @transform_10, window_bounds = array<i64: 4, 32>}, {pipeline_mode = #tpu.pipeline_mode<synchronous>, transform_indices = @transform_11, window_bounds = array<i64: 4, 1>}, {pipeline_mode = #tpu.pipeline_mode<synchronous>, transform_indices = @transform_12, window_bounds = array<i64: 4, 1>}, {pipeline_mode = #tpu.pipeline_mode<synchronous>, transform_indices = @transform_13, window_bounds = array<i64: 32, 4>}, {pipeline_mode = #tpu.pipeline_mode<synchronous>, transform_indices = @transform_14, window_bounds = array<i64: 32, 4>}, {pipeline_mode = #tpu.pipeline_mode<synchronous>, transform_indices = @transform_15, window_bounds = array<i64: 32, 1>}, {pipeline_mode = #tpu.pipeline_mode<synchronous>, transform_indices = @transform_16, window_bounds = array<i64: 2, 32>}, {pipeline_mode = #tpu.pipeline_mode<synchronous>, transform_indices = @transform_17, window_bounds = array<i64: 2, 1>}, {pipeline_mode = #tpu.pipeline_mode<synchronous>, transform_indices = @transform_18, window_bounds = array<i64: 256, 256>}, {pipeline_mode = #tpu.pipeline_mode<synchronous>, transform_indices = @transform_19, window_bounds = array<i64: 256, 256>}, {pipeline_mode = #tpu.pipeline_mode<synchronous>, transform_indices = @transform_20, window_bounds = array<i64: 256, 256>}, {pipeline_mode = #tpu.pipeline_mode<synchronous>, transform_indices = @transform_21, window_bounds = array<i64: 256, 256>}, {transform_indices = @transform_22, window_bounds = array<i64: 1, 2, 256>}]} {
    %c0 = arith.constant 0 : index
    %0 = memref.load %arg1[%c0] : memref<1xf32, #tpu.memory_space<smem>>
    %c0_0 = arith.constant 0 : index
    %c0_1 = arith.constant 0 : index
    %c0_2 = arith.constant 0 : index
    %1 = vector.load %arg2[%c0_0, %c0_1, %c0_2] : memref<1x2x256xf32, #tpu.memory_space<vmem>>, vector<1x2x256xf32>
    %2 = vector.shape_cast %1 : vector<1x2x256xf32> to vector<2x256xf32>
    %c0_3 = arith.constant 0 : index
    %c0_4 = arith.constant 0 : index
    %c0_5 = arith.constant 0 : index
    %3 = vector.load %arg3[%c0_3, %c0_4, %c0_5] : memref<1x2x256xf32, #tpu.memory_space<vmem>>, vector<1x2x256xf32>
    %4 = vector.shape_cast %3 : vector<1x2x256xf32> to vector<2x256xf32>
    %c0_6 = arith.constant 0 : index
    %c0_7 = arith.constant 0 : index
    %c0_8 = arith.constant 0 : index
    %5 = vector.load %arg4[%c0_6, %c0_7, %c0_8] : memref<1x4x256xf32, #tpu.memory_space<vmem>>, vector<1x4x256xf32>
    %6 = vector.shape_cast %5 : vector<1x4x256xf32> to vector<4x256xf32>
    %c0_9 = arith.constant 0 : index
    %c0_10 = arith.constant 0 : index
    %c0_11 = arith.constant 0 : index
    %7 = vector.load %arg5[%c0_9, %c0_10, %c0_11] : memref<1x4x256xf32, #tpu.memory_space<vmem>>, vector<1x4x256xf32>
    %8 = vector.shape_cast %7 : vector<1x4x256xf32> to vector<4x256xf32>
    %c0_12 = arith.constant 0 : index
    %c0_13 = arith.constant 0 : index
    %c0_14 = arith.constant 0 : index
    %9 = vector.load %arg6[%c0_12, %c0_13, %c0_14] : memref<1x1x256xf32, #tpu.memory_space<vmem>>, vector<1x1x256xf32>
    %10 = vector.shape_cast %9 : vector<1x1x256xf32> to vector<1x256xf32>
    %11 = vector.shape_cast %10 : vector<1x256xf32> to vector<1x256xf32>
    %12 = vector.broadcast %11 : vector<1x256xf32> to vector<4x256xf32>
    %cst = arith.constant 0.000000e+00 : f32
    %13 = vector.broadcast %cst : f32 to vector<4x256xf32>
    %14 = arith.cmpf ogt, %12, %13 : vector<4x256xf32>
    %c0_15 = arith.constant 0 : index
    %c0_16 = arith.constant 0 : index
    %15 = vector.load %arg7[%c0_15, %c0_16] : memref<32x2xf32, #tpu.memory_space<vmem>>, vector<32x2xf32>
    %c0_17 = arith.constant 0 : index
    %c0_18 = arith.constant 0 : index
    %16 = vector.load %arg8[%c0_17, %c0_18] : memref<32x2xf32, #tpu.memory_space<vmem>>, vector<32x2xf32>
    %c0_19 = arith.constant 0 : index
    %c0_20 = arith.constant 0 : index
    %17 = vector.load %arg9[%c0_19, %c0_20] : memref<32x1xf32, #tpu.memory_space<vmem>>, vector<32x1xf32>
    %c0_21 = arith.constant 0 : index
    %c0_22 = arith.constant 0 : index
    %18 = vector.load %arg10[%c0_21, %c0_22] : memref<4x32xf32, #tpu.memory_space<vmem>>, vector<4x32xf32>
    %c0_23 = arith.constant 0 : index
    %c0_24 = arith.constant 0 : index
    %19 = vector.load %arg11[%c0_23, %c0_24] : memref<4x32xf32, #tpu.memory_space<vmem>>, vector<4x32xf32>
    %c0_25 = arith.constant 0 : index
    %c0_26 = arith.constant 0 : index
    %20 = vector.load %arg12[%c0_25, %c0_26] : memref<4x1xf32, #tpu.memory_space<vmem>>, vector<4x1xf32>
    %c0_27 = arith.constant 0 : index
    %c0_28 = arith.constant 0 : index
    %21 = vector.load %arg13[%c0_27, %c0_28] : memref<4x1xf32, #tpu.memory_space<vmem>>, vector<4x1xf32>
    %c0_29 = arith.constant 0 : index
    %c0_30 = arith.constant 0 : index
    %22 = vector.load %arg14[%c0_29, %c0_30] : memref<32x4xf32, #tpu.memory_space<vmem>>, vector<32x4xf32>
    %c0_31 = arith.constant 0 : index
    %c0_32 = arith.constant 0 : index
    %23 = vector.load %arg15[%c0_31, %c0_32] : memref<32x4xf32, #tpu.memory_space<vmem>>, vector<32x4xf32>
    %c0_33 = arith.constant 0 : index
    %c0_34 = arith.constant 0 : index
    %24 = vector.load %arg16[%c0_33, %c0_34] : memref<32x1xf32, #tpu.memory_space<vmem>>, vector<32x1xf32>
    %c0_35 = arith.constant 0 : index
    %c0_36 = arith.constant 0 : index
    %25 = vector.load %arg17[%c0_35, %c0_36] : memref<2x32xf32, #tpu.memory_space<vmem>>, vector<2x32xf32>
    %c0_37 = arith.constant 0 : index
    %c0_38 = arith.constant 0 : index
    %26 = vector.load %arg18[%c0_37, %c0_38] : memref<2x1xf32, #tpu.memory_space<vmem>>, vector<2x1xf32>
    %c0_39 = arith.constant 0 : index
    %c0_40 = arith.constant 0 : index
    %27 = vector.load %arg19[%c0_39, %c0_40] : memref<256x256xf32, #tpu.memory_space<vmem>>, vector<256x256xf32>
    %c0_41 = arith.constant 0 : index
    %c0_42 = arith.constant 0 : index
    %28 = vector.load %arg20[%c0_41, %c0_42] : memref<256x256xf32, #tpu.memory_space<vmem>>, vector<256x256xf32>
    %c0_43 = arith.constant 0 : index
    %c0_44 = arith.constant 0 : index
    %29 = vector.load %arg21[%c0_43, %c0_44] : memref<256x256xf32, #tpu.memory_space<vmem>>, vector<256x256xf32>
    %c0_45 = arith.constant 0 : index
    %c0_46 = arith.constant 0 : index
    %30 = vector.load %arg22[%c0_45, %c0_46] : memref<256x256xf32, #tpu.memory_space<vmem>>, vector<256x256xf32>
    %cst_47 = arith.constant dense<0.000000e+00> : vector<32x256xf32>
    %31 = tpu.matmul %15, %2, %cst_47 {dimension_numbers = #tpu.dot_dimension_numbers<[1], [0], [0], [1], [0, 0, 1, 1], [], []>} : vector<32x2xf32>, vector<2x256xf32>, vector<32x256xf32> -> vector<32x256xf32>
    %32 = arith.mulf %4, %4 : vector<2x256xf32>
    %cst_48 = arith.constant dense<0.000000e+00> : vector<32x256xf32>
    %33 = tpu.matmul %16, %32, %cst_48 {dimension_numbers = #tpu.dot_dimension_numbers<[1], [0], [0], [1], [0, 0, 1, 1], [], []>} : vector<32x2xf32>, vector<2x256xf32>, vector<32x256xf32> -> vector<32x256xf32>
    %34 = arith.addf %31, %33 : vector<32x256xf32>
    %35 = vector.broadcast %17 : vector<32x1xf32> to vector<32x256xf32>
    %36 = arith.addf %34, %35 : vector<32x256xf32>
    %cst_49 = arith.constant 0.000000e+00 : f32
    %37 = vector.broadcast %cst_49 : f32 to vector<32x256xf32>
    %38 = arith.maximumf %36, %37 : vector<32x256xf32>
    %cst_50 = arith.constant dense<0.000000e+00> : vector<4x256xf32>
    %39 = tpu.matmul %18, %38, %cst_50 {dimension_numbers = #tpu.dot_dimension_numbers<[1], [0], [0], [1], [0, 0, 1, 1], [], []>} : vector<4x32xf32>, vector<32x256xf32>, vector<4x256xf32> -> vector<4x256xf32>
    %40 = vector.broadcast %20 : vector<4x1xf32> to vector<4x256xf32>
    %41 = arith.addf %39, %40 : vector<4x256xf32>
    %cst_51 = arith.constant dense<0.000000e+00> : vector<4x256xf32>
    %42 = tpu.matmul %19, %38, %cst_51 {dimension_numbers = #tpu.dot_dimension_numbers<[1], [0], [0], [1], [0, 0, 1, 1], [], []>} : vector<4x32xf32>, vector<32x256xf32>, vector<4x256xf32> -> vector<4x256xf32>
    %43 = vector.broadcast %21 : vector<4x1xf32> to vector<4x256xf32>
    %44 = arith.addf %42, %43 : vector<4x256xf32>
    %cst_52 = arith.constant dense<0.000000e+00> : vector<4x256xf32>
    %45 = tpu.matmul %41, %27, %cst_52 {dimension_numbers = #tpu.dot_dimension_numbers<[1], [0], [0], [1], [0, 0, 1, 1], [], []>} : vector<4x256xf32>, vector<256x256xf32>, vector<4x256xf32> -> vector<4x256xf32>
    %cst_53 = arith.constant dense<0.000000e+00> : vector<4x256xf32>
    %46 = tpu.matmul %44, %28, %cst_53 {dimension_numbers = #tpu.dot_dimension_numbers<[1], [0], [0], [1], [0, 0, 1, 1], [], []>} : vector<4x256xf32>, vector<256x256xf32>, vector<4x256xf32> -> vector<4x256xf32>
    %47 = arith.subf %45, %46 : vector<4x256xf32>
    %cst_54 = arith.constant dense<0.000000e+00> : vector<4x256xf32>
    %48 = tpu.matmul %41, %28, %cst_54 {dimension_numbers = #tpu.dot_dimension_numbers<[1], [0], [0], [1], [0, 0, 1, 1], [], []>} : vector<4x256xf32>, vector<256x256xf32>, vector<4x256xf32> -> vector<4x256xf32>
    %cst_55 = arith.constant dense<0.000000e+00> : vector<4x256xf32>
    %49 = tpu.matmul %44, %27, %cst_55 {dimension_numbers = #tpu.dot_dimension_numbers<[1], [0], [0], [1], [0, 0, 1, 1], [], []>} : vector<4x256xf32>, vector<256x256xf32>, vector<4x256xf32> -> vector<4x256xf32>
    %50 = arith.addf %48, %49 : vector<4x256xf32>
    %51 = arith.subf %47, %6 : vector<4x256xf32>
    %cst_56 = arith.constant 0.000000e+00 : f32
    %52 = vector.broadcast %cst_56 : f32 to vector<4x256xf32>
    %53 = arith.select %14, %51, %52 : vector<4x256xi1>, vector<4x256xf32>
    %54 = vector.broadcast %0 : f32 to vector<4x256xf32>
    %55 = arith.mulf %53, %54 : vector<4x256xf32>
    %56 = arith.subf %50, %8 : vector<4x256xf32>
    %cst_57 = arith.constant 0.000000e+00 : f32
    %57 = vector.broadcast %cst_57 : f32 to vector<4x256xf32>
    %58 = arith.select %14, %56, %57 : vector<4x256xi1>, vector<4x256xf32>
    %59 = vector.broadcast %0 : f32 to vector<4x256xf32>
    %60 = arith.mulf %58, %59 : vector<4x256xf32>
    %61 = arith.subf %6, %55 : vector<4x256xf32>
    %62 = arith.subf %61, %47 : vector<4x256xf32>
    %63 = arith.subf %8, %60 : vector<4x256xf32>
    %64 = arith.subf %63, %50 : vector<4x256xf32>
    %cst_58 = arith.constant dense<0.000000e+00> : vector<4x256xf32>
    %65 = tpu.matmul %62, %29, %cst_58 {dimension_numbers = #tpu.dot_dimension_numbers<[1], [0], [0], [1], [0, 0, 1, 1], [], []>} : vector<4x256xf32>, vector<256x256xf32>, vector<4x256xf32> -> vector<4x256xf32>
    %cst_59 = arith.constant dense<0.000000e+00> : vector<4x256xf32>
    %66 = tpu.matmul %64, %30, %cst_59 {dimension_numbers = #tpu.dot_dimension_numbers<[1], [0], [0], [1], [0, 0, 1, 1], [], []>} : vector<4x256xf32>, vector<256x256xf32>, vector<4x256xf32> -> vector<4x256xf32>
    %67 = arith.subf %65, %66 : vector<4x256xf32>
    %cst_60 = arith.constant dense<0.000000e+00> : vector<4x256xf32>
    %68 = tpu.matmul %62, %30, %cst_60 {dimension_numbers = #tpu.dot_dimension_numbers<[1], [0], [0], [1], [0, 0, 1, 1], [], []>} : vector<4x256xf32>, vector<256x256xf32>, vector<4x256xf32> -> vector<4x256xf32>
    %cst_61 = arith.constant dense<0.000000e+00> : vector<4x256xf32>
    %69 = tpu.matmul %64, %29, %cst_61 {dimension_numbers = #tpu.dot_dimension_numbers<[1], [0], [0], [1], [0, 0, 1, 1], [], []>} : vector<4x256xf32>, vector<256x256xf32>, vector<4x256xf32> -> vector<4x256xf32>
    %70 = arith.addf %68, %69 : vector<4x256xf32>
    %cst_62 = arith.constant dense<0.000000e+00> : vector<32x256xf32>
    %71 = tpu.matmul %22, %67, %cst_62 {dimension_numbers = #tpu.dot_dimension_numbers<[1], [0], [0], [1], [0, 0, 1, 1], [], []>} : vector<32x4xf32>, vector<4x256xf32>, vector<32x256xf32> -> vector<32x256xf32>
    %cst_63 = arith.constant dense<0.000000e+00> : vector<32x256xf32>
    %72 = tpu.matmul %23, %70, %cst_63 {dimension_numbers = #tpu.dot_dimension_numbers<[1], [0], [0], [1], [0, 0, 1, 1], [], []>} : vector<32x4xf32>, vector<4x256xf32>, vector<32x256xf32> -> vector<32x256xf32>
    %73 = arith.addf %71, %72 : vector<32x256xf32>
    %74 = vector.broadcast %24 : vector<32x1xf32> to vector<32x256xf32>
    %75 = arith.addf %73, %74 : vector<32x256xf32>
    %cst_64 = arith.constant 0.000000e+00 : f32
    %76 = vector.broadcast %cst_64 : f32 to vector<32x256xf32>
    %77 = arith.maximumf %75, %76 : vector<32x256xf32>
    %cst_65 = arith.constant dense<0.000000e+00> : vector<2x256xf32>
    %78 = tpu.matmul %25, %77, %cst_65 {dimension_numbers = #tpu.dot_dimension_numbers<[1], [0], [0], [1], [0, 0, 1, 1], [], []>} : vector<2x32xf32>, vector<32x256xf32>, vector<2x256xf32> -> vector<2x256xf32>
    %79 = vector.broadcast %26 : vector<2x1xf32> to vector<2x256xf32>
    %80 = arith.addf %78, %79 : vector<2x256xf32>
    %cst_66 = arith.constant dense<0.000000e+00> : vector<32x256xf32>
    %81 = tpu.matmul %15, %2, %cst_66 {dimension_numbers = #tpu.dot_dimension_numbers<[1], [0], [0], [1], [0, 0, 1, 1], [], []>} : vector<32x2xf32>, vector<2x256xf32>, vector<32x256xf32> -> vector<32x256xf32>
    %82 = arith.mulf %80, %4 : vector<2x256xf32>
    %cst_67 = arith.constant dense<0.000000e+00> : vector<32x256xf32>
    %83 = tpu.matmul %16, %82, %cst_67 {dimension_numbers = #tpu.dot_dimension_numbers<[1], [0], [0], [1], [0, 0, 1, 1], [], []>} : vector<32x2xf32>, vector<2x256xf32>, vector<32x256xf32> -> vector<32x256xf32>
    %84 = arith.addf %81, %83 : vector<32x256xf32>
    %85 = vector.broadcast %17 : vector<32x1xf32> to vector<32x256xf32>
    %86 = arith.addf %84, %85 : vector<32x256xf32>
    %cst_68 = arith.constant 0.000000e+00 : f32
    %87 = vector.broadcast %cst_68 : f32 to vector<32x256xf32>
    %88 = arith.maximumf %86, %87 : vector<32x256xf32>
    %cst_69 = arith.constant dense<0.000000e+00> : vector<4x256xf32>
    %89 = tpu.matmul %18, %88, %cst_69 {dimension_numbers = #tpu.dot_dimension_numbers<[1], [0], [0], [1], [0, 0, 1, 1], [], []>} : vector<4x32xf32>, vector<32x256xf32>, vector<4x256xf32> -> vector<4x256xf32>
    %90 = vector.broadcast %20 : vector<4x1xf32> to vector<4x256xf32>
    %91 = arith.addf %89, %90 : vector<4x256xf32>
    %cst_70 = arith.constant dense<0.000000e+00> : vector<4x256xf32>
    %92 = tpu.matmul %19, %88, %cst_70 {dimension_numbers = #tpu.dot_dimension_numbers<[1], [0], [0], [1], [0, 0, 1, 1], [], []>} : vector<4x32xf32>, vector<32x256xf32>, vector<4x256xf32> -> vector<4x256xf32>
    %93 = vector.broadcast %21 : vector<4x1xf32> to vector<4x256xf32>
    %94 = arith.addf %92, %93 : vector<4x256xf32>
    %cst_71 = arith.constant dense<0.000000e+00> : vector<4x256xf32>
    %95 = tpu.matmul %91, %27, %cst_71 {dimension_numbers = #tpu.dot_dimension_numbers<[1], [0], [0], [1], [0, 0, 1, 1], [], []>} : vector<4x256xf32>, vector<256x256xf32>, vector<4x256xf32> -> vector<4x256xf32>
    %cst_72 = arith.constant dense<0.000000e+00> : vector<4x256xf32>
    %96 = tpu.matmul %94, %28, %cst_72 {dimension_numbers = #tpu.dot_dimension_numbers<[1], [0], [0], [1], [0, 0, 1, 1], [], []>} : vector<4x256xf32>, vector<256x256xf32>, vector<4x256xf32> -> vector<4x256xf32>
    %97 = arith.subf %95, %96 : vector<4x256xf32>
    %cst_73 = arith.constant dense<0.000000e+00> : vector<4x256xf32>
    %98 = tpu.matmul %91, %28, %cst_73 {dimension_numbers = #tpu.dot_dimension_numbers<[1], [0], [0], [1], [0, 0, 1, 1], [], []>} : vector<4x256xf32>, vector<256x256xf32>, vector<4x256xf32> -> vector<4x256xf32>
    %cst_74 = arith.constant dense<0.000000e+00> : vector<4x256xf32>
    %99 = tpu.matmul %94, %27, %cst_74 {dimension_numbers = #tpu.dot_dimension_numbers<[1], [0], [0], [1], [0, 0, 1, 1], [], []>} : vector<4x256xf32>, vector<256x256xf32>, vector<4x256xf32> -> vector<4x256xf32>
    %100 = arith.addf %98, %99 : vector<4x256xf32>
    %101 = arith.subf %97, %6 : vector<4x256xf32>
    %cst_75 = arith.constant 0.000000e+00 : f32
    %102 = vector.broadcast %cst_75 : f32 to vector<4x256xf32>
    %103 = arith.select %14, %101, %102 : vector<4x256xi1>, vector<4x256xf32>
    %104 = vector.broadcast %0 : f32 to vector<4x256xf32>
    %105 = arith.mulf %103, %104 : vector<4x256xf32>
    %106 = arith.subf %100, %8 : vector<4x256xf32>
    %cst_76 = arith.constant 0.000000e+00 : f32
    %107 = vector.broadcast %cst_76 : f32 to vector<4x256xf32>
    %108 = arith.select %14, %106, %107 : vector<4x256xi1>, vector<4x256xf32>
    %109 = vector.broadcast %0 : f32 to vector<4x256xf32>
    %110 = arith.mulf %108, %109 : vector<4x256xf32>
    %111 = arith.subf %67, %105 : vector<4x256xf32>
    %112 = arith.subf %111, %97 : vector<4x256xf32>
    %113 = arith.subf %70, %110 : vector<4x256xf32>
    %114 = arith.subf %113, %100 : vector<4x256xf32>
    %cst_77 = arith.constant dense<0.000000e+00> : vector<4x256xf32>
    %115 = tpu.matmul %112, %29, %cst_77 {dimension_numbers = #tpu.dot_dimension_numbers<[1], [0], [0], [1], [0, 0, 1, 1], [], []>} : vector<4x256xf32>, vector<256x256xf32>, vector<4x256xf32> -> vector<4x256xf32>
    %cst_78 = arith.constant dense<0.000000e+00> : vector<4x256xf32>
    %116 = tpu.matmul %114, %30, %cst_78 {dimension_numbers = #tpu.dot_dimension_numbers<[1], [0], [0], [1], [0, 0, 1, 1], [], []>} : vector<4x256xf32>, vector<256x256xf32>, vector<4x256xf32> -> vector<4x256xf32>
    %117 = arith.subf %115, %116 : vector<4x256xf32>
    %cst_79 = arith.constant dense<0.000000e+00> : vector<4x256xf32>
    %118 = tpu.matmul %112, %30, %cst_79 {dimension_numbers = #tpu.dot_dimension_numbers<[1], [0], [0], [1], [0, 0, 1, 1], [], []>} : vector<4x256xf32>, vector<256x256xf32>, vector<4x256xf32> -> vector<4x256xf32>
    %cst_80 = arith.constant dense<0.000000e+00> : vector<4x256xf32>
    %119 = tpu.matmul %114, %29, %cst_80 {dimension_numbers = #tpu.dot_dimension_numbers<[1], [0], [0], [1], [0, 0, 1, 1], [], []>} : vector<4x256xf32>, vector<256x256xf32>, vector<4x256xf32> -> vector<4x256xf32>
    %120 = arith.addf %118, %119 : vector<4x256xf32>
    %cst_81 = arith.constant dense<0.000000e+00> : vector<32x256xf32>
    %121 = tpu.matmul %22, %117, %cst_81 {dimension_numbers = #tpu.dot_dimension_numbers<[1], [0], [0], [1], [0, 0, 1, 1], [], []>} : vector<32x4xf32>, vector<4x256xf32>, vector<32x256xf32> -> vector<32x256xf32>
    %cst_82 = arith.constant dense<0.000000e+00> : vector<32x256xf32>
    %122 = tpu.matmul %23, %120, %cst_82 {dimension_numbers = #tpu.dot_dimension_numbers<[1], [0], [0], [1], [0, 0, 1, 1], [], []>} : vector<32x4xf32>, vector<4x256xf32>, vector<32x256xf32> -> vector<32x256xf32>
    %123 = arith.addf %121, %122 : vector<32x256xf32>
    %124 = vector.broadcast %24 : vector<32x1xf32> to vector<32x256xf32>
    %125 = arith.addf %123, %124 : vector<32x256xf32>
    %cst_83 = arith.constant 0.000000e+00 : f32
    %126 = vector.broadcast %cst_83 : f32 to vector<32x256xf32>
    %127 = arith.maximumf %125, %126 : vector<32x256xf32>
    %cst_84 = arith.constant dense<0.000000e+00> : vector<2x256xf32>
    %128 = tpu.matmul %25, %127, %cst_84 {dimension_numbers = #tpu.dot_dimension_numbers<[1], [0], [0], [1], [0, 0, 1, 1], [], []>} : vector<2x32xf32>, vector<32x256xf32>, vector<2x256xf32> -> vector<2x256xf32>
    %129 = vector.broadcast %26 : vector<2x1xf32> to vector<2x256xf32>
    %130 = arith.addf %128, %129 : vector<2x256xf32>
    %c0_85 = arith.constant 0 : index
    %c0_86 = arith.constant 0 : index
    %c0_87 = arith.constant 0 : index
    %131 = vector.load %arg23[%c0_85, %c0_86, %c0_87] : memref<1x2x256xf32, #tpu.memory_space<vmem>>, vector<1x2x256xf32>
    %132 = vector.shape_cast %131 : vector<1x2x256xf32> to vector<2x256xf32>
    %133 = vector.shape_cast %130 : vector<2x256xf32> to vector<1x2x256xf32>
    tpu.vector_store %arg23[%c0_85, %c0_86, %c0_87], %133 {strides = array<i32>} : memref<1x2x256xf32, #tpu.memory_space<vmem>>, vector<1x2x256xf32>,
    return
  }
  func.func @transform_0(%arg0: i32) -> i32 {
    %c0_i32 = arith.constant 0 : i32
    %c0_i32_0 = arith.constant 0 : i32
    return %c0_i32 : i32
  }
  func.func @transform_1(%arg0: i32) -> (i32, i32, i32) {
    %c0_i32 = arith.constant 0 : i32
    %c0_i32_0 = arith.constant 0 : i32
    %c0_i32_1 = arith.constant 0 : i32
    return %arg0, %c0_i32, %c0_i32_0 : i32, i32, i32
  }
  func.func @transform_2(%arg0: i32) -> (i32, i32, i32) {
    %c0_i32 = arith.constant 0 : i32
    %c0_i32_0 = arith.constant 0 : i32
    %c0_i32_1 = arith.constant 0 : i32
    return %arg0, %c0_i32, %c0_i32_0 : i32, i32, i32
  }
  func.func @transform_3(%arg0: i32) -> (i32, i32, i32) {
    %c0_i32 = arith.constant 0 : i32
    %c0_i32_0 = arith.constant 0 : i32
    %c0_i32_1 = arith.constant 0 : i32
    return %arg0, %c0_i32, %c0_i32_0 : i32, i32, i32
  }
  func.func @transform_4(%arg0: i32) -> (i32, i32, i32) {
    %c0_i32 = arith.constant 0 : i32
    %c0_i32_0 = arith.constant 0 : i32
    %c0_i32_1 = arith.constant 0 : i32
    return %arg0, %c0_i32, %c0_i32_0 : i32, i32, i32
  }
  func.func @transform_5(%arg0: i32) -> (i32, i32, i32) {
    %c0_i32 = arith.constant 0 : i32
    %c0_i32_0 = arith.constant 0 : i32
    %c0_i32_1 = arith.constant 0 : i32
    return %arg0, %c0_i32, %c0_i32_0 : i32, i32, i32
  }
  func.func @transform_6(%arg0: i32) -> (i32, i32) {
    %c0_i32 = arith.constant 0 : i32
    %c0_i32_0 = arith.constant 0 : i32
    %c0_i32_1 = arith.constant 0 : i32
    return %c0_i32, %c0_i32_0 : i32, i32
  }
  func.func @transform_7(%arg0: i32) -> (i32, i32) {
    %c0_i32 = arith.constant 0 : i32
    %c0_i32_0 = arith.constant 0 : i32
    %c0_i32_1 = arith.constant 0 : i32
    return %c0_i32, %c0_i32_0 : i32, i32
  }
  func.func @transform_8(%arg0: i32) -> (i32, i32) {
    %c0_i32 = arith.constant 0 : i32
    %c0_i32_0 = arith.constant 0 : i32
    %c0_i32_1 = arith.constant 0 : i32
    return %c0_i32, %c0_i32_0 : i32, i32
  }
  func.func @transform_9(%arg0: i32) -> (i32, i32) {
    %c0_i32 = arith.constant 0 : i32
    %c0_i32_0 = arith.constant 0 : i32
    %c0_i32_1 = arith.constant 0 : i32
    return %c0_i32, %c0_i32_0 : i32, i32
  }
  func.func @transform_10(%arg0: i32) -> (i32, i32) {
    %c0_i32 = arith.constant 0 : i32
    %c0_i32_0 = arith.constant 0 : i32
    %c0_i32_1 = arith.constant 0 : i32
    return %c0_i32, %c0_i32_0 : i32, i32
  }
  func.func @transform_11(%arg0: i32) -> (i32, i32) {
    %c0_i32 = arith.constant 0 : i32
    %c0_i32_0 = arith.constant 0 : i32
    %c0_i32_1 = arith.constant 0 : i32
    return %c0_i32, %c0_i32_0 : i32, i32
  }
  func.func @transform_12(%arg0: i32) -> (i32, i32) {
    %c0_i32 = arith.constant 0 : i32
    %c0_i32_0 = arith.constant 0 : i32
    %c0_i32_1 = arith.constant 0 : i32
    return %c0_i32, %c0_i32_0 : i32, i32
  }
  func.func @transform_13(%arg0: i32) -> (i32, i32) {
    %c0_i32 = arith.constant 0 : i32
    %c0_i32_0 = arith.constant 0 : i32
    %c0_i32_1 = arith.constant 0 : i32
    return %c0_i32, %c0_i32_0 : i32, i32
  }
  func.func @transform_14(%arg0: i32) -> (i32, i32) {
    %c0_i32 = arith.constant 0 : i32
    %c0_i32_0 = arith.constant 0 : i32
    %c0_i32_1 = arith.constant 0 : i32
    return %c0_i32, %c0_i32_0 : i32, i32
  }
  func.func @transform_15(%arg0: i32) -> (i32, i32) {
    %c0_i32 = arith.constant 0 : i32
    %c0_i32_0 = arith.constant 0 : i32
    %c0_i32_1 = arith.constant 0 : i32
    return %c0_i32, %c0_i32_0 : i32, i32
  }
  func.func @transform_16(%arg0: i32) -> (i32, i32) {
    %c0_i32 = arith.constant 0 : i32
    %c0_i32_0 = arith.constant 0 : i32
    %c0_i32_1 = arith.constant 0 : i32
    return %c0_i32, %c0_i32_0 : i32, i32
  }
  func.func @transform_17(%arg0: i32) -> (i32, i32) {
    %c0_i32 = arith.constant 0 : i32
    %c0_i32_0 = arith.constant 0 : i32
    %c0_i32_1 = arith.constant 0 : i32
    return %c0_i32, %c0_i32_0 : i32, i32
  }
  func.func @transform_18(%arg0: i32) -> (i32, i32) {
    %c0_i32 = arith.constant 0 : i32
    %c0_i32_0 = arith.constant 0 : i32
    %c0_i32_1 = arith.constant 0 : i32
    return %c0_i32, %c0_i32_0 : i32, i32
  }
  func.func @transform_19(%arg0: i32) -> (i32, i32) {
    %c0_i32 = arith.constant 0 : i32
    %c0_i32_0 = arith.constant 0 : i32
    %c0_i32_1 = arith.constant 0 : i32
    return %c0_i32, %c0_i32_0 : i32, i32
  }
  func.func @transform_20(%arg0: i32) -> (i32, i32) {
    %c0_i32 = arith.constant 0 : i32
    %c0_i32_0 = arith.constant 0 : i32
    %c0_i32_1 = arith.constant 0 : i32
    return %c0_i32, %c0_i32_0 : i32, i32
  }
  func.func @transform_21(%arg0: i32) -> (i32, i32) {
    %c0_i32 = arith.constant 0 : i32
    %c0_i32_0 = arith.constant 0 : i32
    %c0_i32_1 = arith.constant 0 : i32
    return %c0_i32, %c0_i32_0 : i32, i32
  }
  func.func @transform_22(%arg0: i32) -> (i32, i32, i32) {
    %c0_i32 = arith.constant 0 : i32
    %c0_i32_0 = arith.constant 0 : i32
    %c0_i32_1 = arith.constant 0 : i32
    return %arg0, %c0_i32, %c0_i32_0 : i32, i32, i32
  }
}

</mosaic_0001>

<bundles_post_ra>
// kernel: squeeze.3
= control target key start
LH: loop header
LB: loop body
LE: loop exit
PB: predicated region body
PF: predicated region fallthrough
CT: control target
= control target key end

     0   :  { %vm35_vm0 = vcmask 1043458   ;;  %vm40_vm1 = vcmask 1045508   ;;  %vm45_vm2 = vcmask 1047558   ;;  %s79_s6 = smov 3  ;;  %s82_s7 = smov 12  ;;  %vm4_vm3 = vcmask 1047556   ;;  %s726_s0 = inlined_call_operand.vmem [shape: f32[2,4,16,16], index: 0, kind: input, shape index: {}]   ;;  %s727_s1 = inlined_call_operand.vmem [shape: f32[2,4,256], index: 1, kind: output, shape index: {}]  }
   0x1   :  { %v407_v0 = vld [vmem:[%s726_s0 + $0x6] ss:$16 sm:%s79_s6]   ;;  %s87_s12 = smov 48  ;;  %s92_s13 = smov 192  ;;  %vm6_vm4 = vcmask 130048   ;;  %vm49_vm5 = vcmask 1048448  }
   0x2   :  { %v408_v1 = vld [vmem:[%s726_s0 + $0x6] ss:$16 sm:%s82_s7]   ;;  %v409_v3 = vld [vmem:[%s726_s0 - $0x32] ss:$16 sm:%s87_s12]   ;;  %s30_s18 = smov 3  ;;  %s33_s21 = smov 12 }
   0x3   :  { %v85_v2 = vsel %vm35_vm0, %v408_v1, %v407_v0  ;;  %v410_v4 = vld [vmem:[%s726_s0 - $0x32] ss:$16 sm:%s92_s13]   ;;  %v399_v6 = vld [vmem:[%s726_s0 + $0x7] ss:$16 sm:%s30_s18]   ;;  %s38_s22 = smov 48  ;;  %s43_s27 = smov 192 }
   0x4   :  { %v90_v5 = vsel %vm40_vm1, %v409_v3, %v85_v2  ;;  %v400_v8 = vld [vmem:[%s726_s0 + $0x7] ss:$16 sm:%s33_s21]   ;;  %v401_v9 = vld [vmem:[%s726_s0 - $0x31] ss:$16 sm:%s38_s22]   ;;  %s465_s28 = smov 96   ;;  %s103_s2 = smov 3 }
   0x5   :  { %v95_v7 = vsel %vm45_vm2, %v410_v4, %v90_v5  ;;  %v36_v10 = vsel %vm35_vm0, %v400_v8, %v399_v6  ;;  %v402_v11 = vld [vmem:[%s726_s0 - $0x31] ss:$16 sm:%s43_s27]   ;;  %s106_s3 = smov 12  ;;  %v411_v13 = vld [vmem:[%s726_s0 + $0x46] ss:$16 sm:%s103_s2]   ;;  %s111_s8 = smov 48 }
   0x6   :  { %96 = vrot.lane.b32.xlu1 %v95_v7, %s465_s28  ;;  %v41_v12 = vsel %vm40_vm1, %v401_v9, %v36_v10  ;;  %v412_v14 = vld [vmem:[%s726_s0 + $0x46] ss:$16 sm:%s106_s3]   ;;  %s116_s9 = smov 192  ;;  %s54_s14 = smov 3  ;;  %vm98_vm6 = vcmask 917248   ;;  %vm147_vm7 = vcmask 786048  }
   0x7   :  { %v46_v15 = vsel %vm45_vm2, %v402_v11, %v41_v12  ;;  %v109_v16 = vsel %vm35_vm0, %v412_v14, %v411_v13  ;;  %v413_v17 = vld [vmem:[%s726_s0 + $0xe] ss:$16 sm:%s111_s8]   ;;  %s57_s15 = smov 12  ;;  %s466_s16 = smov 112   ;;  %v403_v20 = vld [vmem:[%s726_s0 + $0x47] ss:$16 sm:%s54_s14]  }
   0x8   :  { %v414_v18 = vld [vmem:[%s726_s0 + $0xe] ss:$16 sm:%s116_s9]   ;;  %47 = vrot.lane.b32.xlu0 %v46_v15, %s466_s16  ;;  %v114_v19 = vsel %vm40_vm1, %v413_v17, %v109_v16  ;;  %s62_s19 = smov 48  ;;  %s67_s20 = smov 192  ;;  %vm196_vm8 = vcmask 654848   ;;  %vm245_vm9 = vcmask 523648  }
   0x9   :  { %v119_v21 = vsel %vm45_vm2, %v414_v18, %v114_v19  ;;  %v404_v22 = vld [vmem:[%s726_s0 + $0x47] ss:$16 sm:%s57_s15]   ;;  %v405_v23 = vld [vmem:[%s726_s0 + $0xf] ss:$16 sm:%s62_s19]   ;;  %s152_s25 = smov 3  ;;  %s160_s29 = smov 48 }
   0xa   :  { %120 = vrot.lane.b32.xlu1 %v119_v21, %s465_s28  ;;  %v60_v24 = vsel %vm35_vm0, %v404_v22, %v403_v20  ;;  %v406_v25 = vld [vmem:[%s726_s0 + $0xf] ss:$16 sm:%s67_s20]   ;;  %s155_s28 = smov 12  ;;  %s165_s5 = smov 192  ;;  %vm294_vm10 = vcmask 392448   ;;  %vm343_vm11 = vcmask 261248  }
   0xb   :  { %v65_v26 = vsel %vm40_vm1, %v405_v23, %v60_v24  ;;  %v419_v27 = vld [vmem:[%s726_s0 + $0x45] ss:$16 sm:%s152_s25]   ;;  %s128_s6 = smov 3  ;;  %v421_v31 = vld [vmem:[%s726_s0 + $0xd] ss:$16 sm:%s160_s29]   ;;  %s131_s11 = smov 12 }
   0xc   :  { %v420_v28 = vld [vmem:[%s726_s0 + $0x45] ss:$16 sm:%s155_s28]   ;;  %v70_v29 = vsel %vm45_vm2, %v406_v25, %v65_v26  ;;  %v422_v32 = vld [vmem:[%s726_s0 + $0xd] ss:$16 sm:%s165_s5]   ;;  %s136_s12 = smov 48  ;;  %s141_s15 = smov 192 }
   0xd   :  { %v158_v30 = vsel %vm35_vm0, %v420_v28, %v419_v27  ;;  %71 = vrot.lane.b32.xlu0 %v70_v29, %s466_s16  ;;  %v415_v34 = vld [vmem:[%s726_s0 + $0x5] ss:$16 sm:%s128_s6]   ;;  %s201_s20 = smov 3  ;;  %s204_s21 = smov 12 }
   0xe   :  { %v163_v33 = vsel %vm40_vm1, %v421_v31, %v158_v30  ;;  %v416_v36 = vld [vmem:[%s726_s0 + $0x5] ss:$16 sm:%s131_s11]   ;;  %v417_v37 = vld [vmem:[%s726_s0 - $0x33] ss:$16 sm:%s136_s12]   ;;  %s467_s22 = smov 80   ;;  %s209_s25 = smov 48 }
   0xf   :  { %v168_v35 = vsel %vm45_vm2, %v422_v32, %v163_v33  ;;  %v134_v38 = vsel %vm35_vm0, %v416_v36, %v415_v34  ;;  %v418_v39 = vld [vmem:[%s726_s0 - $0x33] ss:$16 sm:%s141_s15]   ;;  %s214_s26 = smov 192  ;;  %v427_v41 = vld [vmem:[%s726_s0 + $0x44] ss:$16 sm:%s201_s20]   ;;  %s177_s2 = smov 3 }
  0x10   :  { %169 = vrot.lane.b32.xlu1 %v168_v35, %s467_s22  ;;  %v139_v40 = vsel %vm40_vm1, %v417_v37, %v134_v38  ;;  %v428_v42 = vld [vmem:[%s726_s0 + $0x44] ss:$16 sm:%s204_s21]   ;;  %s180_s3 = smov 12  ;;  %s185_s8 = smov 48 }
  0x11   :  { %v144_v43 = vsel %vm45_vm2, %v418_v39, %v139_v40  ;;  %v207_v44 = vsel %vm35_vm0, %v428_v42, %v427_v41  ;;  %v429_v45 = vld [vmem:[%s726_s0 + $0xc] ss:$16 sm:%s209_s25]   ;;  %s190_s9 = smov 192  ;;  %v423_v48 = vld [vmem:[%s726_s0 + $0x4] ss:$16 sm:%s177_s2]   ;;  %s250_s12 = smov 3 }
  0x12   :  { %v430_v46 = vld [vmem:[%s726_s0 + $0xc] ss:$16 sm:%s214_s26]   ;;  %145 = vrot.lane.b32.xlu0 %v144_v43, %s467_s22  ;;  %v212_v47 = vsel %vm40_vm1, %v429_v45, %v207_v44  ;;  %s253_s17 = smov 12  ;;  %s258_s18 = smov 48 }
  0x13   :  { %v217_v49 = vsel %vm45_vm2, %v430_v46, %v212_v47  ;;  %v424_v50 = vld [vmem:[%s726_s0 + $0x4] ss:$16 sm:%s180_s3]   ;;  %v425_v51 = vld [vmem:[%s726_s0 - $0x34] ss:$16 sm:%s185_s8]   ;;  %s468_s19 = smov 64   ;;  %s263_s22 = smov 192 }
  0x14   :  { %218 = vrot.lane.b32.xlu1 %v217_v49, %s468_s19  ;;  %v183_v52 = vsel %vm35_vm0, %v424_v50, %v423_v48  ;;  %v426_v53 = vld [vmem:[%s726_s0 - $0x34] ss:$16 sm:%s190_s9]   ;;  %s226_s23 = smov 3  ;;  %s229_s28 = smov 12 }
  0x15   :  { %v188_v54 = vsel %vm40_vm1, %v425_v51, %v183_v52  ;;  %v435_v55 = vld [vmem:[%s726_s0 + $0x43] ss:$16 sm:%s250_s12]   ;;  %s234_s29 = smov 48  ;;  %v437_v59 = vld [vmem:[%s726_s0 + $0xb] ss:$16 sm:%s258_s18]   ;;  %s239_s5 = smov 192 }
  0x16   :  { %v436_v56 = vld [vmem:[%s726_s0 + $0x43] ss:$16 sm:%s253_s17]   ;;  %v193_v57 = vsel %vm45_vm2, %v426_v53, %v188_v54  ;;  %v438_v60 = vld [vmem:[%s726_s0 + $0xb] ss:$16 sm:%s263_s22]   ;;  %s299_s8 = smov 3  ;;  %s302_s9 = smov 12 }
  0x17   :  { %v256_v58 = vsel %vm35_vm0, %v436_v56, %v435_v55  ;;  %194 = vrot.lane.b32.xlu0 %v193_v57, %s468_s19  ;;  %v431_v62 = vld [vmem:[%s726_s0 + $0x3] ss:$16 sm:%s226_s23]   ;;  %s307_s14 = smov 48  ;;  %s312_s15 = smov 192 }
  0x18   :  { %v261_v61 = vsel %vm40_vm1, %v437_v59, %v256_v58  ;;  %v432_v0 = vld [vmem:[%s726_s0 + $0x3] ss:$16 sm:%s229_s28]   ;;  %v433_v1 = vld [vmem:[%s726_s0 - $0x35] ss:$16 sm:%s234_s29]   ;;  %s469_s16 = smov 48   ;;  %s275_s19 = smov 3 }
  0x19   :  { %v266_v63 = vsel %vm45_vm2, %v438_v60, %v261_v61  ;;  %v232_v2 = vsel %vm35_vm0, %v432_v0, %v431_v62  ;;  %v434_v3 = vld [vmem:[%s726_s0 - $0x35] ss:$16 sm:%s239_s5]   ;;  %v443_v5 = vld [vmem:[%s726_s0 + $0x42] ss:$16 sm:%s299_s8]   ;;  %s278_s24 = smov 12  ;;  %s283_s25 = smov 48 }
  0x1a   :  { %267 = vrot.lane.b32.xlu1 %v266_v63, %s469_s16  ;;  %v237_v4 = vsel %vm40_vm1, %v433_v1, %v232_v2  ;;  %v444_v6 = vld [vmem:[%s726_s0 + $0x42] ss:$16 sm:%s302_s9]   ;;  %s288_s30 = smov 192  ;;  %s348_s4 = smov 3 }
  0x1b   :  { %v242_v7 = vsel %vm45_vm2, %v434_v3, %v237_v4  ;;  %v305_v8 = vsel %vm35_vm0, %v444_v6, %v443_v5  ;;  %v445_v9 = vld [vmem:[%s726_s0 + $0xa] ss:$16 sm:%s307_s14]   ;;  %v439_v12 = vld [vmem:[%s726_s0 + $0x2] ss:$16 sm:%s275_s19]   ;;  %s351_s5 = smov 12  ;;  %s356_s10 = smov 48 }
  0x1c   :  { %v446_v10 = vld [vmem:[%s726_s0 + $0xa] ss:$16 sm:%s312_s15]   ;;  %243 = vrot.lane.b32.xlu0 %v242_v7, %s469_s16  ;;  %v310_v11 = vsel %vm40_vm1, %v445_v9, %v305_v8  ;;  %s361_s11 = smov 192  ;;  %s470_s12 = smov 32  }
  0x1d   :  { %v315_v13 = vsel %vm45_vm2, %v446_v10, %v310_v11  ;;  %v440_v14 = vld [vmem:[%s726_s0 + $0x2] ss:$16 sm:%s278_s24]   ;;  %v441_v15 = vld [vmem:[%s726_s0 - $0x36] ss:$16 sm:%s283_s25]   ;;  %s324_s15 = smov 3  ;;  %s327_s20 = smov 12 }
  0x1e   :  { %316 = vrot.lane.b32.xlu1 %v315_v13, %s470_s12  ;;  %v281_v16 = vsel %vm35_vm0, %v440_v14, %v439_v12  ;;  %v442_v17 = vld [vmem:[%s726_s0 - $0x36] ss:$16 sm:%s288_s30]   ;;  %s332_s21 = smov 48  ;;  %s337_s26 = smov 192 }
  0x1f   :  { %v286_v18 = vsel %vm40_vm1, %v441_v15, %v281_v16  ;;  %v451_v19 = vld [vmem:[%s726_s0 + $0x41] ss:$16 sm:%s348_s4]   ;;  %v453_v23 = vld [vmem:[%s726_s0 + $0x9] ss:$16 sm:%s356_s10]   ;;  %s471_s6 = smov 16  }
  0x20   :  { %v452_v20 = vld [vmem:[%s726_s0 + $0x41] ss:$16 sm:%s351_s5]   ;;  %v291_v21 = vsel %vm45_vm2, %v442_v17, %v286_v18  ;;  %v454_v24 = vld [vmem:[%s726_s0 + $0x9] ss:$16 sm:%s361_s11]  }
  0x21   :  { %v354_v22 = vsel %vm35_vm0, %v452_v20, %v451_v19  ;;  %292 = vrot.lane.b32.xlu0 %v291_v21, %s470_s12  ;;  %v447_v26 = vld [vmem:[%s726_s0 + $0x1] ss:$16 sm:%s324_s15]   ;;  %v2_v27 = vld [vmem:[%s726_s0] ss:$8 sm:$0xf]  }
  0x22   :  { %v359_v25 = vsel %vm40_vm1, %v453_v23, %v354_v22  ;;  %v448_v29 = vld [vmem:[%s726_s0 + $0x1] ss:$16 sm:%s327_s20]   ;;  %v449_v30 = vld [vmem:[%s726_s0 - $0x37] ss:$16 sm:%s332_s21]  }
  0x23   :  { %v364_v28 = vsel %vm45_vm2, %v454_v24, %v359_v25  ;;  %v330_v31 = vsel %vm35_vm0, %v448_v29, %v447_v26  ;;  %v450_v32 = vld [vmem:[%s726_s0 - $0x37] ss:$16 sm:%s337_s26]   ;;  %v3_v33 = vld [vmem:[%s726_s0] ss:$8 sm:$0xf0]  }
  0x24   :  { %365 = vrot.lane.b32.xlu1 %v364_v28, %s471_s6  ;;  %v335_v34 = vsel %vm40_vm1, %v449_v30, %v330_v31  ;;  %v5_v35 = vsel %vm4_vm3, %v3_v33, %v2_v27  ;;  %v397_v36 = vld [vmem:[%s726_s0 + $0x40] ss:$8 sm:$0xf]  }
  0x25   :  { %v398_v37 = vld [vmem:[%s726_s0 + $0x40] ss:$8 sm:$0xf0]   ;;  %v340_v38 = vsel %vm45_vm2, %v450_v32, %v335_v34  ;;  %7 = vst.msk [vmem:[#allocation0] ss:$8 sm:$0x3] %vm6_vm4, %v5_v35  }
  0x26   :  { %9 = vst.msk [vmem:[#allocation0 - $0xf] ss:$8 sm:$0xc] %vm6_vm4, %v5_v35   ;;  %11 = vst.msk [vmem:[#allocation0 - $0x1e] ss:$8 sm:$0x30] %vm6_vm4, %v5_v35   ;;  %v19_v39 = vsel %vm4_vm3, %v398_v37, %v397_v36  ;;  %341 = vrot.lane.b32.xlu0 %v340_v38, %s471_s6 }
  0x27   :  { %13 = vst.msk [vmem:[#allocation0 - $0x2d] ss:$8 sm:$0xc0] %vm6_vm4, %v5_v35   ;;  %22 = vst.msk [vmem:[#allocation0 + $0x10] ss:$8 sm:$0x3] %vm6_vm4, %v19_v39  }
  0x28   :  { %24 = vst.msk [vmem:[#allocation0 + $0x1] ss:$8 sm:$0xc] %vm6_vm4, %v19_v39   ;;  %26 = vst.msk [vmem:[#allocation0 - $0xe] ss:$8 sm:$0x30] %vm6_vm4, %v19_v39  }
  0x29   :  { %28 = vst.msk [vmem:[#allocation0 - $0x1d] ss:$8 sm:$0xc0] %vm6_vm4, %v19_v39  }
  0x78   :  { %v97_v40 = vpop.permute.xlu1 %96  }
  0x7a   :  { %v48_v41 = vpop.permute.xlu0 %47  }
  0x7b   :  { %50 = vst.msk [vmem:[#allocation0] sm:$0xf] %vm49_vm5, %v48_v41   ;;  %52 = vst.msk [vmem:[#allocation0 + $0x4] sm:$0xf0] %vm49_vm5, %v48_v41  }
  0x7c   :  { %v121_v42 = vpop.permute.xlu1 %120   ;;  %99 = vst.msk [vmem:[#allocation0] sm:$0xf] %vm98_vm6, %v97_v40   ;;  %101 = vst.msk [vmem:[#allocation0 + $0x4] sm:$0xf0] %vm98_vm6, %v97_v40  }
  0x7f   :  { %v72_v43 = vpop.permute.xlu0 %71  }
  0x80   :  { %75 = vst.msk [vmem:[#allocation0 + $0x10] sm:$0xf] %vm49_vm5, %v72_v43   ;;  %77 = vst.msk [vmem:[#allocation0 + $0x14] sm:$0xf0] %vm49_vm5, %v72_v43  }
  0x81   :  { %124 = vst.msk [vmem:[#allocation0 + $0x10] sm:$0xf] %vm98_vm6, %v121_v42   ;;  %126 = vst.msk [vmem:[#allocation0 + $0x14] sm:$0xf0] %vm98_vm6, %v121_v42  }
  0x82   :  { %v170_v44 = vpop.permute.xlu1 %169  }
  0x83   :  { %173 = vst.msk [vmem:[#allocation0 + $0x10] sm:$0xf] %vm147_vm7, %v170_v44   ;;  %175 = vst.msk [vmem:[#allocation0 + $0x14] sm:$0xf0] %vm147_vm7, %v170_v44  }
  0x84   :  { %v146_v45 = vpop.permute.xlu0 %145  }
  0x85   :  { %148 = vst.msk [vmem:[#allocation0] sm:$0xf] %vm147_vm7, %v146_v45   ;;  %150 = vst.msk [vmem:[#allocation0 + $0x4] sm:$0xf0] %vm147_vm7, %v146_v45  }
  0x86   :  { %v219_v46 = vpop.permute.xlu1 %218  }
  0x87   :  { %222 = vst.msk [vmem:[#allocation0 + $0x10] sm:$0xf] %vm196_vm8, %v219_v46   ;;  %224 = vst.msk [vmem:[#allocation0 + $0x14] sm:$0xf0] %vm196_vm8, %v219_v46  }
  0x89   :  { %v195_v47 = vpop.permute.xlu0 %194  }
  0x8a   :  { %197 = vst.msk [vmem:[#allocation0] sm:$0xf] %vm196_vm8, %v195_v47   ;;  %199 = vst.msk [vmem:[#allocation0 + $0x4] sm:$0xf0] %vm196_vm8, %v195_v47  }
  0x8c   :  { %v268_v48 = vpop.permute.xlu1 %267  }
  0x8d   :  { %271 = vst.msk [vmem:[#allocation0 + $0x10] sm:$0xf] %vm245_vm9, %v268_v48   ;;  %273 = vst.msk [vmem:[#allocation0 + $0x14] sm:$0xf0] %vm245_vm9, %v268_v48  }
  0x8e   :  { %v244_v49 = vpop.permute.xlu0 %243  }
  0x8f   :  { %246 = vst.msk [vmem:[#allocation0] sm:$0xf] %vm245_vm9, %v244_v49   ;;  %248 = vst.msk [vmem:[#allocation0 + $0x4] sm:$0xf0] %vm245_vm9, %v244_v49  }
  0x90   :  { %v317_v50 = vpop.permute.xlu1 %316  }
  0x91   :  { %320 = vst.msk [vmem:[#allocation0 + $0x10] sm:$0xf] %vm294_vm10, %v317_v50   ;;  %322 = vst.msk [vmem:[#allocation0 + $0x14] sm:$0xf0] %vm294_vm10, %v317_v50  }
  0x93   :  { %v293_v51 = vpop.permute.xlu0 %292  }
  0x94   :  { %295 = vst.msk [vmem:[#allocation0] sm:$0xf] %vm294_vm10, %v293_v51   ;;  %297 = vst.msk [vmem:[#allocation0 + $0x4] sm:$0xf0] %vm294_vm10, %v293_v51  }
  0x96   :  { %v366_v52 = vpop.permute.xlu1 %365  }
  0x97   :  { %369 = vst.msk [vmem:[#allocation0 + $0x10] sm:$0xf] %vm343_vm11, %v366_v52   ;;  %371 = vst.msk [vmem:[#allocation0 + $0x14] sm:$0xf0] %vm343_vm11, %v366_v52  }
  0x98   :  { %v342_v53 = vpop.permute.xlu0 %341  }
  0x99   :  { %344 = vst.msk [vmem:[#allocation0] sm:$0xf] %vm343_vm11, %v342_v53   ;;  %346 = vst.msk [vmem:[#allocation0 + $0x4] sm:$0xf0] %vm343_vm11, %v342_v53  }
  0x9e   :  { %v384_v54 = vld [vmem:[#allocation0 + $0x10] sm:$0xf]  ;;  %v390_v55 = vld [vmem:[#allocation0 + $0x18] sm:$0xf] }
  0x9f   :  { %456 = vst [vmem:[%s727_s1 + $0x8] sm:$0xf] %v384_v54  ;;  %457 = vst [vmem:[%s727_s1 + $0xc] sm:$0xf] %v390_v55 }
  0xa0   :  { %v375_v56 = vld [vmem:[#allocation0] sm:$0xf]  ;;  %v379_v57 = vld [vmem:[#allocation0 + $0x8] sm:$0xf] }
  0xa1   :  { %377 = vst [vmem:[%s727_s1] sm:$0xf] %v375_v56  ;;  %455 = vst [vmem:[%s727_s1 + $0x4] sm:$0xf] %v379_v57 }

// kernel: squeeze.5
= control target key start
LH: loop header
LB: loop body
LE: loop exit
PB: predicated region body
PF: predicated region fallthrough
CT: control target
= control target key end

     0   :  { %s89_s8 = smov 112   ;;  %s90_s11 = smov 80   ;;  %vm3_vm0 = vcmask 130048   ;;  %vm9_vm1 = vcmask 1048448   ;;  %vm15_vm2 = vcmask 917248   ;;  %vm21_vm3 = vcmask 786048   ;;  %s142_s0 = inlined_call_operand.vmem [shape: f32[2,16,16], index: 0, kind: input, shape index: {}]   ;;  %s143_s1 = inlined_call_operand.vmem [shape: f32[2,1,256], index: 1, kind: output, shape index: {}]  }
   0x1   :  { %v72_v0 = vld [vmem:[%s142_s0 + $0x7] ss:$8 sm:$0xf]   ;;  %v74_v1 = vld [vmem:[%s142_s0 + $0x5] ss:$8 sm:$0xf]  }
   0x2   :  { %7 = vrot.lane.b32.xlu0 %v72_v0, %s89_s8  ;;  %19 = vrot.lane.b32.xlu1 %v74_v1, %s90_s11  ;;  %v73_v2 = vld [vmem:[%s142_s0 + $0x6] ss:$8 sm:$0xf]   ;;  %v75_v3 = vld [vmem:[%s142_s0 + $0x4] ss:$8 sm:$0xf]  }
   0x3   :  { %s91_s16 = smov 96   ;;  %v2_v4 = vld [vmem:[%s142_s0] ss:$8 sm:$0xf]   ;;  %s92_s19 = smov 64   ;;  %vm27_vm4 = vcmask 654848  }
   0x4   :  { %v76_v5 = vld [vmem:[%s142_s0 + $0x3] ss:$8 sm:$0xf]   ;;  %4 = vst.msk [vmem:[#allocation0] ss:$8 sm:$0xf] %vm3_vm0, %v2_v4  }
   0x5   :  { %v77_v6 = vld [vmem:[%s142_s0 + $0x2] ss:$8 sm:$0xf]   ;;  %s93_s24 = smov 48   ;;  %s94_s25 = smov 32   ;;  %vm33_vm5 = vcmask 523648  }
   0x6   :  { %13 = vrot.lane.b32.xlu0 %v73_v2, %s91_s16  ;;  %25 = vrot.lane.b32.xlu1 %v75_v3, %s92_s19  ;;  %v78_v7 = vld [vmem:[%s142_s0 + $0x1] ss:$8 sm:$0xf]   ;;  %s95_s0 = smov 16   ;;  %vm39_vm6 = vcmask 392448   ;;  %vm45_vm7 = vcmask 261248  }
   0xa   :  { %31 = vrot.lane.b32.xlu0 %v76_v5, %s93_s24  ;;  %37 = vrot.lane.b32.xlu1 %v77_v6, %s94_s25 }
   0xe   :  { %43 = vrot.lane.b32.xlu0 %v78_v7, %s95_s0 }
  0x74   :  { %v8_v8 = vpop.permute.xlu0 %7   ;;  %v20_v9 = vpop.permute.xlu1 %19  }
  0x75   :  { %10 = vst.msk [vmem:[#allocation0] ss:$8 sm:$0xf] %vm9_vm1, %v8_v8  }
  0x78   :  { %v14_v10 = vpop.permute.xlu0 %13   ;;  %v26_v11 = vpop.permute.xlu1 %25  }
  0x79   :  { %16 = vst.msk [vmem:[#allocation0] ss:$8 sm:$0xf] %vm15_vm2, %v14_v10  }
  0x7a   :  { %22 = vst.msk [vmem:[#allocation0] ss:$8 sm:$0xf] %vm21_vm3, %v20_v9  }
  0x7b   :  { %28 = vst.msk [vmem:[#allocation0] ss:$8 sm:$0xf] %vm27_vm4, %v26_v11  }
  0x7c   :  { %v32_v12 = vpop.permute.xlu0 %31   ;;  %v38_v13 = vpop.permute.xlu1 %37  }
  0x7d   :  { %34 = vst.msk [vmem:[#allocation0] ss:$8 sm:$0xf] %vm33_vm5, %v32_v12  }
  0x7e   :  { %40 = vst.msk [vmem:[#allocation0] ss:$8 sm:$0xf] %vm39_vm6, %v38_v13  }
  0x80   :  { %v44_v14 = vpop.permute.xlu0 %43  }
  0x81   :  { %46 = vst.msk [vmem:[#allocation0] ss:$8 sm:$0xf] %vm45_vm7, %v44_v14  }
  0x88   :  { %v50_v15 = vld [vmem:[#allocation0] sm:$0x1]  ;;  %v54_v16 = vld [vmem:[#allocation0 + $0x8] sm:$0x1]  ;;  %v59_v17 = vld [vmem:[#allocation0 + $0x10] sm:$0x1] }
  0x89   :  { %52 = vst [vmem:[%s143_s1] sm:$0x1] %v50_v15  ;;  %79 = vst [vmem:[%s143_s1 + $0x1] sm:$0x1] %v54_v16  ;;  %v65_v18 = vld [vmem:[#allocation0 + $0x18] sm:$0x1] }
  0x8a   :  { %80 = vst [vmem:[%s143_s1 + $0x2] sm:$0x1] %v59_v17  ;;  %81 = vst [vmem:[%s143_s1 + $0x3] sm:$0x1] %v65_v18 }

// kernel: seranet_recurrent_block.1
= control target key start
LH: loop header
LB: loop body
LE: loop exit
PB: predicated region body
PF: predicated region fallthrough
CT: control target
= control target key end

     0   :  { %s7064_s0 = inlined_call_operand.<no memory space> [shape: f32[1], index: 0, kind: input, shape index: {}]   ;;  %s7065_s1 = inlined_call_operand.vmem [shape: f32[2,2,256], index: 1, kind: input, shape index: {}]   ;;  %s7066_s2 = inlined_call_operand.vmem [shape: f32[2,2,256], index: 2, kind: input, shape index: {}]   ;;  %s7067_s3 = inlined_call_operand.vmem [shape: f32[2,4,256], index: 3, kind: input, shape index: {}]   ;;  %s7068_s4 = inlined_call_operand.vmem [shape: f32[2,4,256], index: 4, kind: input, shape index: {}]   ;;  %s7069_s5 = inlined_call_operand.vmem [shape: f32[2,1,256], index: 5, kind: input, shape index: {}]   ;;  %s7070_s6 = inlined_call_operand.vmem [shape: f32[32,2], index: 6, kind: input, shape index: {}]   ;;  %s7071_s7 = inlined_call_operand.vmem [shape: f32[32,2], index: 7, kind: input, shape index: {}]   ;;  %s7072_s8 = inlined_call_operand.vmem [shape: f32[32,1], index: 8, kind: input, shape index: {}]   ;;  %s7073_s9 = inlined_call_operand.vmem [shape: f32[4,32], index: 9, kind: input, shape index: {}]   ;;  %s7074_s10 = inlined_call_operand.vmem [shape: f32[4,32], index: 10, kind: input, shape index: {}]   ;;  %s7075_s11 = inlined_call_operand.vmem [shape: f32[4,1], index: 11, kind: input, shape index: {}]   ;;  %s7076_s12 = inlined_call_operand.vmem [shape: f32[4,1], index: 12, kind: input, shape index: {}]   ;;  %s7077_s13 = inlined_call_operand.vmem [shape: f32[32,4], index: 13, kind: input, shape index: {}]   ;;  %s7078_s14 = inlined_call_operand.vmem [shape: f32[32,4], index: 14, kind: input, shape index: {}]   ;;  %s7079_s15 = inlined_call_operand.vmem [shape: f32[32,1], index: 15, kind: input, shape index: {}]   ;;  %s7080_s16 = inlined_call_operand.vmem [shape: f32[2,32], index: 16, kind: input, shape index: {}]   ;;  %s7081_s17 = inlined_call_operand.vmem [shape: f32[2,1], index: 17, kind: input, shape index: {}]   ;;  %s7082_s18 = inlined_call_operand.vmem [shape: f32[256,256], index: 18, kind: input, shape index: {}]   ;;  %s7083_s19 = inlined_call_operand.vmem [shape: f32[256,256], index: 19, kind: input, shape index: {}]   ;;  %s7084_s20 = inlined_call_operand.vmem [shape: f32[256,256], index: 20, kind: input, shape index: {}]   ;;  %s7085_s21 = inlined_call_operand.hbm [shape: f32[256,256], index: 21, kind: input, shape index: {}]   ;;  %s7086_s22 = inlined_call_operand.vmem [shape: f32[2,2,256], index: 22, kind: output, shape index: {}]  }
   0x1   :  { %7371 = sst [smem:[#allocation146_spill]] %s7064_s0 }
   0x2   :  { %7372 = sst [smem:[#allocation147_spill]] %s7065_s1  ;;  %s7380_s29 = sld [smem:[#allocation146_spill]] }
   0x3   :  { %7373 = sst [smem:[#allocation148_spill]] %s7066_s2 }
   0x4   :  { %7374 = sst [smem:[#allocation149_spill]] %s7067_s3 }
   0x5   :  { %7375 = sst [smem:[#allocation150_spill]] %s7068_s4 }
   0x6   :  { %7376 = sst [smem:[#allocation151_spill]] %s7069_s5 }
   0x7   :  { %7377 = sst [smem:[#allocation152_spill]] %s7070_s6 }
   0x8   :  { %7378 = sst [smem:[#allocation153_spill]] %s7072_s8 }
   0x9   :  { %7379 = sst [smem:[#allocation154_spill]] %s7075_s11 }
   0xa   :  { %27 = sst [smem:[#allocation2]] %s7380_s29 }
   0xb   :  { %28 = vsyncpa [#allocation4], 0  ;;  %s5206_s30 = smov 0  }
   0xc LB: > { %s5212_s4 = sadd.s32 4294967295, %s5080_s30   ;;  %p3809_p0 = scmp.ge.s32.totalorder %s5080_s30, 1  ;;  %s5080_s30 = sphi %s5206_s30, %s34_s30  }
   0xd   : > { %p552_p1 = scmp.lt.s32.totalorder %s5080_s30, 3  ;;  %s5082_s0 = smov [#allocation3]  }
   0xe   : > { %s612_s23 = sshll.u32 %s5082_s0, 4  ;;  %p7088_p3 = scmp.eq.s32.totalorder %s5212_s4, 0  ;;  %s613_s23 = int_to_ptr.vmem [resolvable:$true] %s612_s23 }
   0xf   : > { %p5216_p2 = pnand %p3809_p0, %p552_p1  ;;  %s5042_s25 = scalar_lea.hbm %s7085_s21, 8192 }
  0x10   : > { %p5043_p6 = scmp.ne.s32.totalorder %s7085_s21, %s5042_s25  ;;  %p5049_p10 = scmp.lt.u32.totalorder %s5042_s25, %s7085_s21 }
  0x11   : > { %s7381_s1 = scalar_select %p5216_p2, 1, 0 }
  0x12   : > { %p5004_p4 = pneg %p5216_p2 }
  0x14   : > { %p5225_p5 = pnand %p7088_p3, %p5004_p4 }
  0x16   : > { %p5044_p7 = pneg %p5225_p5 }
  0x18   : > { %p5045_p8 = pnand %p5044_p7, %p5043_p6 }
  0x1a   : > { %p5046_p9 = pneg %p5045_p8 }
  0x1c   : > { %p5051_p11 = pnand %p5049_p10, %p5046_p9 }
  0x1e   : > { %5054 = shalt.err (!%p5051_p11)
}
  0x1f   : > { %s5055_s28 = scalar_lea.vmem %s613_s23, 8192  ;;  %p5063_p1 = scmp.lt.s32.totalorder %s613_s23, %s613_s23 }
  0x20   : > { %p5056_p12 = scmp.ne.s32.totalorder %s613_s23, %s5055_s28  ;;  %p5064_p4 = scmp.lt.s32.totalorder %s5055_s28, %s5055_s28 }
  0x22   : > { %p5058_p13 = pnand %p5056_p12, %p5044_p7  ;;  %p5065_p3 = por %p5064_p4, %p5063_p1 }
  0x24   : > { %p5059_p0 = pneg %p5058_p13 }
  0x26   : > { %p5066_p2 = pnand %p5065_p3, %p5059_p0 }
  0x28   : > { %5069 = shalt.err (!%p5066_p2)
}
  0x29   : > { %s5083_s29 = smov 256   ;;  %s5084_s0 = smov 16  }
  0x2a   : > { %5007 = dma.hbm_to_vmem [thread:$0]  (!%p5225_p5), %s7085_s21, 8192, %s613_s23, [#allocation4], %s5083_s29, %s5083_s29, %s5084_s0  }
  0x2b   : > { %p7383_p6 = scmp.ne.s32.totalorder %s7381_s1, 0 }
  0x2d   : > { %667 = sbr.rel (%p7383_p6) target bundleno = 3181 (0xc6d), region = 108 }
  0x34   : > { %p7384_p8 = scmp.eq.s32.totalorder %s5212_s4, 0 }
  0x36   : > { %5075 = dma.done.wait (%p7384_p8), [#allocation4], 8192   ;;  %p7385_p7 = pmov %p7384_p8 }
  0x37   : > { %p748_p2 = scmp.lt.s32.totalorder %s5212_s4, 1  ;;  %v784_v0 = vlaneseq  ;;  %v5085_v1 = vmov 1983009808   ;;  %v7090_v4 = vmov 0.0   ;;  %v5087_v6 = vmov 0   ;;  %s7387_s25 = sld [smem:[#allocation147_spill]] }
  0x38   : > { %5077 = vsyncadd (%p7385_p7), [#allocation4], 4294959104  ;;  %v1085_v2 = vunpack.c.l.s4 %v5085_v1  ;;  %1288 = vmatprep.mubr.f32.mxu0 %v7090_v4  ;;  %1174 = vmatprep.mubr.f32.mxu1 %v7090_v4  ;;  %s7388_s3 = sld [smem:[#allocation148_spill]]  ;;  %vm1105_vm0 = vcmask 1041408   ;;  %s7390_s24 = sld [smem:[#allocation152_spill]]  ;;  %vm1092_vm1 = vcmask 15360  }
  0x39   : > { %s7714_s4 = smov (!%p748_p2, %s5212_s4), 1  ;;  %v5255_v3 = vshrl.u32 %v784_v0, 7  ;;  %5024 = vset.pattern.permute.xlu0 %v5087_v6  ;;  %5025 = vset.pattern.permute.xlu1 %v5087_v6  ;;  %s7391_s8 = sld [smem:[#allocation153_spill]]  ;;  %v800_v18 = vld [vmem:[%s7071_s7] sm:$0xff]  ;;  %v801_v22 = vld [vmem:[%s7071_s7 + $0x8] sm:$0xff]  ;;  %v802_v26 = vld [vmem:[%s7071_s7 + $0x10] sm:$0xff] }
  0x3a   : > { %v1086_v5 = vunpack.c.0.s8 %v1085_v2  ;;  %s5260_s23 = sshll.u32 %s7714_s4, 2  ;;  %s7392_s11 = sld [smem:[#allocation154_spill]]  ;;  %v811_v24 = vld [vmem:[%s7076_s12] sm:$0xf]  ;;  %v821_v28 = vld [vmem:[%s7079_s15 + $0x8] sm:$0xff]  ;;  %v822_v29 = vld [vmem:[%s7079_s15 + $0x10] sm:$0xff] }
  0x3b   : > { %7386 = vst [vmem:[#allocation6_spill] sm:$0xff] %v5255_v3  ;;  %v820_v25 = vld [vmem:[%s7079_s15] sm:$0xff]  ;;  %v803_v30 = vld [vmem:[%s7071_s7 + $0x18] sm:$0xff]  ;;  %v891_v33 = vld [vmem:[%s7083_s19 + $0x8] sm:$0xff]  ;;  %vm1354_vm2 = vcmask 261120   ;;  %s3822_s6 = sshll.u32 %s7714_s4, 1 }
  0x3c   : > { %v1089_v7 = vsub.s32 %v1086_v5, %v5255_v3  ;;  %v823_v31 = vld [vmem:[%s7079_s15 + $0x18] sm:$0xff]  ;;  %v825_v32 = vld [vmem:[%s7081_s17] sm:$0x3]  ;;  %v892_v37 = vld [vmem:[%s7083_s19 + $0x10] sm:$0xff]  ;;  %s3885_s1 = sshll.u32 %s7714_s4, 3  ;;  %s7497_s2 = sld [smem:[#allocation151_spill]] }
  0x3d   : > { %s5266_s26 = scalar_lea.vmem %s7387_s25, %s5260_s23  ;;  %v893_v34 = vld [vmem:[%s7083_s19 + $0x18] sm:$0xff]  ;;  %v890_v35 = vld [vmem:[%s7083_s19] sm:$0xff]  ;;  %v895_v39 = vld [vmem:[%s7083_s19 + $0x28] sm:$0xff]  ;;  %s7535_s5 = sld [smem:[#allocation150_spill]]  ;;  %vm2138_vm5 = vcmask 1043456   ;;  %vm2125_vm6 = vcmask 31744  }
  0x3e   : > { %s5272_s28 = scalar_lea.vmem %s7388_s3, %s5260_s23  ;;  %v3831_v8 = vld.sshfl [vmem:[%s5266_s26] sm:$0x33 pattern:$0x76325410]  ;;  %v797_v19 = vld [vmem:[%s7390_s24 + $0x8] sm:$0xff]  ;;  %v798_v23 = vld [vmem:[%s7390_s24 + $0x10] sm:$0xff]  ;;  %v5365_v36 = vpack.c.bf16 %v893_v34, %v891_v33  ;;  %v5370_v38 = vpack.c.bf16 %v892_v37, %v890_v35 }
  0x3f   : > { %v779_v9 = vld [vmem:[%s5272_s28] sm:$0xf]  ;;  %v5277_v10 = vcombine.high %v3831_v8, %v3831_v8  ;;  %v806_v15 = vld [vmem:[%s7391_s8 + $0x10] sm:$0xff]  ;;  %v805_v17 = vld [vmem:[%s7391_s8 + $0x8] sm:$0xff] }
  0x40   : > { %v1082_v11 = vmul.f32 %v779_v9, %v779_v9  ;;  %v796_v12 = vld [vmem:[%s7390_s24] sm:$0xff]  ;;  %1325 = vperm.xlu1 %5025, %v806_v15   ;;  %v807_v20 = vld [vmem:[%s7391_s8 + $0x18] sm:$0xff]  ;;  %v896_v43 = vld [vmem:[%s7083_s19 + $0x30] sm:$0xff] }
  0x41   : > { %7389 = vst [vmem:[#allocation7_spill] sm:$0xff] %v5277_v10  ;;  %3832 = vmatprep.subr.msk.mxu0 %vm1105_vm0, %v5277_v10  ;;  %v804_v14 = vld [vmem:[%s7391_s8] sm:$0xff]  ;;  %v799_v27 = vld [vmem:[%s7390_s24 + $0x18] sm:$0xff]  ;;  %v899_v45 = vld [vmem:[%s7083_s19 + $0x48] sm:$0xff]  ;;  %s7498_s8 = sld [smem:[#allocation149_spill]] }
  0x42   : > { %v1090_v13 = vrot.slane %v1082_v11, %v1089_v7  ;;  %3833 = vmatpush1.msk.msra.mxu0 %vm1105_vm0, %v3831_v8  ;;  %1315 = vperm.xlu0 %5024, %v804_v14   ;;  %v810_v21 = vld [vmem:[%s7392_s11] sm:$0xf]  ;;  %v897_v40 = vld [vmem:[%s7083_s19 + $0x38] sm:$0xff]  ;;  %v900_v49 = vld [vmem:[%s7083_s19 + $0x50] sm:$0xff]  ;;  %s771_s27 = scalar_lea.vmem %s7497_s2, %s3822_s6  ;;  %s777_s11 = sld [smem:[#allocation2]] }
  0x43   : > { %3834 = vmatmul.mubr.msk.f32.vlgmr.msra.gmra.mrb[0].mxu0 %vm1092_vm1, %v796_v12  ;;  %3969 = vmatprep.subr.bf16.mxu0 %v5365_v36  ;;  %v894_v41 = vld [vmem:[%s7083_s19 + $0x20] sm:$0xff]  ;;  %v5383_v42 = vpack.c.bf16 %v897_v40, %v895_v39  ;;  %v901_v46 = vld [vmem:[%s7083_s19 + $0x58] sm:$0xff]  ;;  %v903_v51 = vld [vmem:[%s7083_s19 + $0x68] sm:$0xff]  ;;  %s767_s25 = scalar_lea.vmem %s7535_s5, %s3885_s1  ;;  %s776_s2 = scalar_lea.vmem %s7086_s22, %s5260_s23 }
  0x44   : > { %v1091_v16 = vcombine.high %v1090_v13, %v1090_v13  ;;  %1294 = vmatprep.mubr.f32.mxu0 %v7090_v4  ;;  %1330 = vperm.xlu1 %5025, %v807_v20   ;;  %v5388_v44 = vpack.c.bf16 %v896_v43, %v894_v41  ;;  %v898_v47 = vld [vmem:[%s7083_s19 + $0x40] sm:$0xff]  ;;  %v5401_v48 = vpack.c.bf16 %v901_v46, %v899_v45  ;;  %v905_v52 = vld [vmem:[%s7083_s19 + $0x78] sm:$0xff]  ;;  %v904_v55 = vld [vmem:[%s7083_s19 + $0x70] sm:$0xff] }
  0x45   : > { %3971 = vmatpush1.bf16.msra.mxu0 %v5370_v38  ;;  %v5406_v50 = vpack.c.bf16 %v900_v49, %v898_v47  ;;  %v902_v53 = vld [vmem:[%s7083_s19 + $0x60] sm:$0xff]  ;;  %v5419_v54 = vpack.c.bf16 %v905_v52, %v903_v51  ;;  %v907_v57 = vld [vmem:[%s7083_s19 + $0x88] sm:$0xff]  ;;  %v909_v58 = vld [vmem:[%s7083_s19 + $0x98] sm:$0xff] }
  0x46   : > { %3825 = vmatprep.subr.msk.mxu1 %vm1105_vm0, %v1091_v16  ;;  %1320 = vperm.xlu0 %5024, %v805_v17   ;;  %v5424_v56 = vpack.c.bf16 %v904_v55, %v902_v53  ;;  %v906_v59 = vld [vmem:[%s7083_s19 + $0x80] sm:$0xff]  ;;  %v5437_v60 = vpack.c.bf16 %v909_v58, %v907_v57  ;;  %v908_v61 = vld [vmem:[%s7083_s19 + $0x90] sm:$0xff]  ;;  %v911_v63 = vld [vmem:[%s7083_s19 + $0xa8] sm:$0xff] }
  0x47   : > { %3826 = vmatpush1.msk.msra.mxu1 %vm1105_vm0, %v1090_v13  ;;  %3835 = vmatmul.mubr.msk.f32.gmra.mrb[2].mxu0 %vm1092_vm1, %v797_v19  ;;  %v5442_v62 = vpack.c.bf16 %v908_v61, %v906_v59  ;;  %v913_v0 = vld [vmem:[%s7083_s19 + $0xb8] sm:$0xff]  ;;  %v910_v1 = vld [vmem:[%s7083_s19 + $0xa0] sm:$0xff]  ;;  %v912_v5 = vld [vmem:[%s7083_s19 + $0xb0] sm:$0xff]  ;;  %s6375_s0 = scalar_lea.vmem %s7498_s8, %s3885_s1 }
  0x48   : > { %3827 = vmatmul.mubr.msk.f32.vlgmr.msra.gmra.mrb[0].mxu1 %vm1092_vm1, %v800_v18  ;;  %1300 = vmatprep.mubr.f32.mxu0 %v7090_v4  ;;  %v5455_v2 = vpack.c.bf16 %v913_v0, %v911_v63  ;;  %v5460_v6 = vpack.c.bf16 %v912_v5, %v910_v1  ;;  %v915_v7 = vld [vmem:[%s7083_s19 + $0xc8] sm:$0xff]  ;;  %v917_v8 = vld [vmem:[%s7083_s19 + $0xd8] sm:$0xff]  ;;  %v914_v9 = vld [vmem:[%s7083_s19 + $0xc0] sm:$0xff] }
  0x49   : > { %1180 = vmatprep.mubr.f32.mxu1 %v7090_v4  ;;  %1431 = vperm.xlu1 %5025, %v811_v24   ;;  %v5473_v11 = vpack.c.bf16 %v917_v8, %v915_v7  ;;  %v916_v12 = vld [vmem:[%s7083_s19 + $0xd0] sm:$0xff]  ;;  %v919_v14 = vld [vmem:[%s7083_s19 + $0xe8] sm:$0xff]  ;;  %v921_v15 = vld [vmem:[%s7083_s19 + $0xf8] sm:$0xff] }
  0x4a   : > { %1351 = vperm.xlu0 %5024, %v810_v21   ;;  %3973 = vmatprep.subr.bf16.mxu0 %v5383_v42  ;;  %v5478_v13 = vpack.c.bf16 %v916_v12, %v914_v9  ;;  %v918_v16 = vld [vmem:[%s7083_s19 + $0xe0] sm:$0xff]  ;;  %v5491_v17 = vpack.c.bf16 %v921_v15, %v919_v14  ;;  %v920_v18 = vld [vmem:[%s7083_s19 + $0xf0] sm:$0xff]  ;;  %v923_v20 = vld [vmem:[%s7083_s19 + $0x108] sm:$0xff] }
  0x4b   : > { %3836 = vmatmul.mubr.msk.f32.gmra.mrb[4].mxu0 %vm1092_vm1, %v798_v23  ;;  %v5496_v19 = vpack.c.bf16 %v920_v18, %v918_v16  ;;  %v925_v21 = vld [vmem:[%s7083_s19 + $0x118] sm:$0xff]  ;;  %v924_v24 = vld [vmem:[%s7083_s19 + $0x110] sm:$0xff]  ;;  %v930_v34 = vld [vmem:[%s7083_s19 + $0x140] sm:$0xff] }
  0x4c   : > { %3828 = vmatmul.mubr.msk.f32.gmra.mrb[2].mxu1 %vm1092_vm1, %v801_v22  ;;  %1306 = vmatprep.mubr.f32.mxu0 %v7090_v4  ;;  %7393 = vst [vmem:[#allocation8_spill] sm:$0xff] %v5478_v13  ;;  %7394 = vst [vmem:[#allocation9_spill] sm:$0xff] %v5491_v17  ;;  %v922_v22 = vld [vmem:[%s7083_s19 + $0x100] sm:$0xff]  ;;  %v5509_v23 = vpack.c.bf16 %v925_v21, %v923_v20  ;;  %v933_v33 = vld [vmem:[%s7083_s19 + $0x158] sm:$0xff] }
  0x4d   : > { %1186 = vmatprep.mubr.f32.mxu1 %v7090_v4  ;;  %2348 = vperm.xlu1 %5025, %v821_v28   ;;  %7395 = vst [vmem:[#allocation10_spill] sm:$0xff] %v5496_v19  ;;  %v926_v28 = vld [vmem:[%s7083_s19 + $0x120] sm:$0xff]  ;;  %v932_v37 = vld [vmem:[%s7083_s19 + $0x150] sm:$0xff]  ;;  %v935_v40 = vld [vmem:[%s7083_s19 + $0x168] sm:$0xff] }
  0x4e   : > { %2343 = vperm.xlu0 %5024, %v820_v25   ;;  %3975 = vmatpush1.bf16.msra.mxu0 %v5388_v44  ;;  %7396 = vst [vmem:[#allocation11_spill] sm:$0xff] %v5509_v23  ;;  %v5514_v25 = vpack.c.bf16 %v924_v24, %v922_v22  ;;  %v5550_v39 = vpack.c.bf16 %v932_v37, %v930_v34  ;;  %v937_v41 = vld [vmem:[%s7083_s19 + $0x178] sm:$0xff]  ;;  %v934_v43 = vld [vmem:[%s7083_s19 + $0x160] sm:$0xff]  ;;  %v936_v46 = vld [vmem:[%s7083_s19 + $0x170] sm:$0xff] }
  0x4f   : > { %3837 = vmatmul.mubr.msk.f32.gmra.mrb[6].mxu0 %vm1092_vm1, %v799_v27  ;;  %3977 = vmatprep.subr.bf16.mxu0 %v5401_v48  ;;  %v929_v27 = vld [vmem:[%s7083_s19 + $0x138] sm:$0xff]  ;;  %v5563_v45 = vpack.c.bf16 %v937_v41, %v935_v40  ;;  %v5568_v47 = vpack.c.bf16 %v936_v46, %v934_v43  ;;  %v939_v49 = vld [vmem:[%s7083_s19 + $0x188] sm:$0xff]  ;;  %v938_v52 = vld [vmem:[%s7083_s19 + $0x180] sm:$0xff] }
  0x50   : > { %3829 = vmatmul.mubr.msk.f32.gmra.mrb[4].mxu1 %vm1092_vm1, %v802_v26  ;;  %7397 = vst [vmem:[#allocation12_spill] sm:$0xff] %v5514_v25  ;;  %v927_v26 = vld [vmem:[%s7083_s19 + $0x128] sm:$0xff]  ;;  %7401 = vst [vmem:[#allocation16_spill] sm:$0xff] %v5550_v39  ;;  %v941_v51 = vld [vmem:[%s7083_s19 + $0x198] sm:$0xff] }
  0x51   : > { %1192 = vmatprep.mubr.f32.mxu1 %v7090_v4  ;;  %2358 = vperm.xlu1 %5025, %v823_v31   ;;  %7402 = vst [vmem:[#allocation17_spill] sm:$0xff] %v5563_v45  ;;  %7403 = vst [vmem:[#allocation18_spill] sm:$0xff] %v5568_v47  ;;  %v5581_v53 = vpack.c.bf16 %v941_v51, %v939_v49  ;;  %v940_v55 = vld [vmem:[%s7083_s19 + $0x190] sm:$0xff]  ;;  %v945_v3 = vld [vmem:[%s7083_s19 + $0x1b8] sm:$0xff] }
  0x52   : > { %2353 = vperm.xlu0 %5024, %v822_v29   ;;  %3979 = vmatpush1.bf16.msra.mxu0 %v5406_v50  ;;  %v5527_v29 = vpack.c.bf16 %v929_v27, %v927_v26  ;;  %v5586_v57 = vpack.c.bf16 %v940_v55, %v938_v52 }
  0x53   : > { %3981 = vmatprep.subr.bf16.mxu0 %v5419_v54  ;;  %7404 = vst [vmem:[#allocation19_spill] sm:$0xff] %v5581_v53 }
  0x54   : > { %3830 = vmatmul.mubr.msk.f32.gmra.mrb[6].mxu1 %vm1092_vm1, %v803_v30  ;;  %7398 = vst [vmem:[#allocation13_spill] sm:$0xff] %v5527_v29  ;;  %v928_v30 = vld [vmem:[%s7083_s19 + $0x130] sm:$0xff]  ;;  %7405 = vst [vmem:[#allocation20_spill] sm:$0xff] %v5586_v57 }
  0x55   : > { %1422 = vmatprep.mubr.f32.mxu1 %v7090_v4  ;;  %v5532_v31 = vpack.c.bf16 %v928_v30, %v926_v28 }
  0x56   : > { %2379 = vperm.xlu0 %5024, %v825_v32   ;;  %3983 = vmatpush1.bf16.msra.mxu0 %v5424_v56  ;;  %v931_v32 = vld [vmem:[%s7083_s19 + $0x148] sm:$0xff] }
  0x57   : > { %3985 = vmatprep.subr.bf16.mxu0 %v5437_v60  ;;  %7399 = vst [vmem:[#allocation14_spill] sm:$0xff] %v5532_v31  ;;  %v5545_v35 = vpack.c.bf16 %v933_v33, %v931_v32 }
  0x59   : > { %7400 = vst [vmem:[#allocation15_spill] sm:$0xff] %v5545_v35 }
  0x5a   : > { %3987 = vmatpush1.bf16.msra.mxu0 %v5442_v62 }
  0x5b   : > { %3989 = vmatprep.subr.bf16.mxu0 %v5455_v2 }
  0x5e   : > { %3991 = vmatpush1.bf16.msra.mxu0 %v5460_v6 }
  0x5f   : > { %3993 = vmatprep.subr.bf16.mxu0 %v5473_v11 }
  0x62   : > { %3995 = vmatpush1.bf16.msra.mxu0 %v5478_v13 }
  0x63   : > { %3997 = vmatprep.subr.bf16.mxu0 %v5491_v17 }
  0x66   : > { %3999 = vmatpush1.bf16.msra.mxu0 %v5496_v19 }
  0x67   : > { %4001 = vmatprep.subr.bf16.mxu0 %v5509_v23 }
  0x6a   : > { %4003 = vmatpush1.bf16.msra.mxu0 %v5514_v25 }
  0x6b   : > { %4005 = vmatprep.subr.bf16.mxu0 %v5527_v29 }
  0x6e   : > { %4007 = vmatpush1.bf16.msra.mxu0 %v5532_v31 }
  0x6f   : > { %4009 = vmatprep.subr.bf16.mxu0 %v5545_v35 }
  0x72   : > { %4011 = vmatpush1.bf16.msra.mxu0 %v5550_v39  ;;  %v960_v39 = vld [vmem:[%s7084_s20 + $0x30] sm:$0xff] }
  0x73   : > { %4013 = vmatprep.subr.bf16.mxu0 %v5563_v45  ;;  %v958_v45 = vld [vmem:[%s7084_s20 + $0x20] sm:$0xff] }
  0x76   : > { %4015 = vmatpush1.bf16.msra.mxu0 %v5568_v47 }
  0x77   : > { %4017 = vmatprep.subr.bf16.mxu0 %v5581_v53 }
  0x7a   : > { %4019 = vmatpush1.bf16.msra.mxu0 %v5586_v57 }
  0xbf   : > { %v5596_v24 = vpop.permute.xlu1 %1325 }
  0xc0   : > { %7408 = vst [vmem:[#allocation23_spill] sm:$0xff] %v5596_v24 }
  0xc1   : > { %v5590_v61 = vpop.permute.xlu0 %1315 }
  0xc2   : > { %7406 = vst [vmem:[#allocation21_spill] sm:$0xff] %v5590_v61 }
  0xc5   : > { %v5593_v20 = vpop.permute.xlu0 %1320 }
  0xc6   : > { %7407 = vst [vmem:[#allocation22_spill] sm:$0xff] %v5593_v20 }
 0x116   : > { %v1290_v58 = vpop.f32.mrb[0].mxu0 }
 0x117   : > { %v1292_v59 = vpop.f32.mrb[1].mxu0 }
 0x11a   : > { %v1296_v0 = vpop.f32.mrb[2].mxu0 }
 0x11b   : > { %v1176_v63 = vpop.f32.mrb[0].mxu1  ;;  %v1298_v7 = vpop.f32.mrb[3].mxu0 }
 0x11c   : > { %v1291_v1 = vadd.f32 %v1290_v58, %v1176_v63  ;;  %v1178_v5 = vpop.f32.mrb[1].mxu1  ;;  %v5601_v63 = vpop.permute.xlu1 %1330 }
 0x11d   : > { %v1293_v8 = vadd.f32 %v1292_v59, %v1178_v5  ;;  %7409 = vst [vmem:[#allocation24_spill] sm:$0xff] %v5601_v63 }
 0x11e   : > { %v1302_v12 = vpop.f32.mrb[4].mxu0  ;;  %v1333_v14 = vadd.f32 %v5590_v61, %v1291_v1 }
 0x11f   : > { %v1182_v9 = vpop.f32.mrb[2].mxu1  ;;  %v1304_v18 = vpop.f32.mrb[5].mxu0  ;;  %v1334_v21 = vadd.f32 %v5590_v61, %v1293_v8 }
 0x120   : > { %v1297_v15 = vadd.f32 %v1296_v0, %v1182_v9  ;;  %v1184_v16 = vpop.f32.mrb[3].mxu1  ;;  %v1341_v32 = vmax.f32 %v1333_v14, 0.0 }
 0x121   : > { %v1299_v22 = vadd.f32 %v1298_v7, %v1184_v16  ;;  %v1342_v41 = vmax.f32 %v1334_v21, 0.0  ;;  %v827_v21 = vld [vmem:[%s7082_s18 + $0x8] sm:$0xff] }
 0x122   : > { %v1335_v26 = vadd.f32 %v5593_v20, %v1297_v15  ;;  %v1308_v30 = vpop.f32.mrb[6].mxu0 }
 0x123   : > { %v1336_v27 = vadd.f32 %v5593_v20, %v1299_v22  ;;  %v1188_v28 = vpop.f32.mrb[4].mxu1  ;;  %v1310_v40 = vpop.f32.mrb[7].mxu0  ;;  %v829_v22 = vld [vmem:[%s7082_s18 + $0x18] sm:$0xff]  ;;  %v884_v20 = vld [vmem:[%s7082_s18 + $0x1d0] sm:$0xff] }
 0x124   : > { %v1343_v33 = vmax.f32 %v1335_v26, 0.0  ;;  %v1303_v34 = vadd.f32 %v1302_v12, %v1188_v28  ;;  %v1190_v37 = vpop.f32.mrb[5].mxu1  ;;  %v5617_v26 = vpack.c.bf16 %v829_v22, %v827_v21  ;;  %v828_v28 = vld [vmem:[%s7082_s18 + $0x10] sm:$0xff]  ;;  %v849_v21 = vld [vmem:[%s7082_s18 + $0xb8] sm:$0xff] }
 0x125   : > { %v1344_v43 = vmax.f32 %v1336_v27, 0.0  ;;  %v1305_v46 = vadd.f32 %v1304_v18, %v1190_v37  ;;  %v808_v18 = vld [vmem:[%s7073_s9] sm:$0xf] }
 0x126   : > { %v3890_v49 = vpack.c.bf16 %v1343_v33, %v1341_v32  ;;  %v1337_v55 = vadd.f32 %v5596_v24, %v1303_v34  ;;  %7410 = vst [vmem:[#allocation25_spill] sm:$0xff] %v5617_v26  ;;  %v826_v27 = vld [vmem:[%s7082_s18] sm:$0xff]  ;;  %v833_v32 = vld [vmem:[%s7082_s18 + $0x38] sm:$0xff] }
 0x127   : > { %v1194_v51 = vpop.f32.mrb[6].mxu1  ;;  %v3888_v52 = vpack.c.bf16 %v1344_v43, %v1342_v41  ;;  %v1338_v0 = vadd.f32 %v5596_v24, %v1305_v46  ;;  %v809_v33 = vld [vmem:[%s7074_s10] sm:$0xf]  ;;  %v5634_v34 = vpack.c.bf16 %v828_v28, %v826_v27  ;;  %v832_v41 = vld [vmem:[%s7082_s18 + $0x30] sm:$0xff]  ;;  %v835_v43 = vld [vmem:[%s7082_s18 + $0x48] sm:$0xff] }
 0x128   : > { %v1309_v58 = vadd.f32 %v1308_v30, %v1194_v51  ;;  %v1196_v59 = vpop.f32.mrb[7].mxu1  ;;  %v1345_v8 = vmax.f32 %v1337_v55, 0.0  ;;  %v831_v30 = vld [vmem:[%s7082_s18 + $0x28] sm:$0xff]  ;;  %v837_v46 = vld [vmem:[%s7082_s18 + $0x58] sm:$0xff]  ;;  %v836_v55 = vld [vmem:[%s7082_s18 + $0x50] sm:$0xff] }
 0x129   : > { %v1311_v1 = vadd.f32 %v1310_v40, %v1196_v59  ;;  %3889 = vmatprep.subr.bf16.mxu1 %v3888_v52  ;;  %v1346_v12 = vmax.f32 %v1338_v0, 0.0  ;;  %7411 = vst [vmem:[#allocation26_spill] sm:$0xff] %v5634_v34  ;;  %v5637_v37 = vpack.c.bf16 %v833_v32, %v831_v30  ;;  %v830_v40 = vld [vmem:[%s7082_s18 + $0x20] sm:$0xff]  ;;  %v5656_v51 = vpack.c.bf16 %v837_v46, %v835_v43  ;;  %v841_v59 = vld [vmem:[%s7082_s18 + $0x78] sm:$0xff]  ;;  %v848_v30 = vld [vmem:[%s7082_s18 + $0xb0] sm:$0xff] }
 0x12a   : > { %v1339_v5 = vadd.f32 %v5601_v63, %v1309_v58  ;;  %3891 = vmatpush1.bf16.msra.mxu1 %v3890_v49  ;;  %v839_v58 = vld [vmem:[%s7082_s18 + $0x68] sm:$0xff]  ;;  %v846_v28 = vld [vmem:[%s7082_s18 + $0xa0] sm:$0xff]  ;;  %v852_v46 = vld [vmem:[%s7082_s18 + $0xd0] sm:$0xff] }
 0x12b   : > { %v1340_v7 = vadd.f32 %v5601_v63, %v1311_v1  ;;  %7412 = vst [vmem:[#allocation27_spill] sm:$0xff] %v5637_v37  ;;  %7414 = vst [vmem:[#allocation29_spill] sm:$0xff] %v5656_v51  ;;  %v5674_v1 = vpack.c.bf16 %v841_v59, %v839_v58  ;;  %v851_v32 = vld [vmem:[%s7082_s18 + $0xc8] sm:$0xff]  ;;  %v850_v43 = vld [vmem:[%s7082_s18 + $0xc0] sm:$0xff] }
 0x12c   : > { %v1347_v9 = vmax.f32 %v1339_v5, 0.0  ;;  %v838_v5 = vld [vmem:[%s7082_s18 + $0x60] sm:$0xff]  ;;  %v5743_v58 = vpack.c.bf16 %v852_v46, %v850_v43  ;;  %v864_v46 = vld [vmem:[%s7082_s18 + $0x130] sm:$0xff]  ;;  %v883_v24 = vld [vmem:[%s7082_s18 + $0x1c8] sm:$0xff] }
 0x12d   : > { %v1348_v14 = vmax.f32 %v1340_v7, 0.0  ;;  %7416 = vst [vmem:[#allocation31_spill] sm:$0xff] %v5674_v1  ;;  %v840_v7 = vld [vmem:[%s7082_s18 + $0x70] sm:$0xff]  ;;  %v862_v43 = vld [vmem:[%s7082_s18 + $0x120] sm:$0xff] }
 0x12e   : > { %v3894_v15 = vpack.c.bf16 %v1347_v9, %v1345_v8  ;;  %v843_v8 = vld [vmem:[%s7082_s18 + $0x88] sm:$0xff]  ;;  %v845_v9 = vld [vmem:[%s7082_s18 + $0x98] sm:$0xff]  ;;  %7423 = vst [vmem:[#allocation38_spill] sm:$0xff] %v5743_v58  ;;  %v880_v63 = vld [vmem:[%s7082_s18 + $0x1b0] sm:$0xff] }
 0x12f   : > { %v3892_v16 = vpack.c.bf16 %v1348_v14, %v1346_v12  ;;  %v5689_v12 = vpack.c.bf16 %v840_v7, %v838_v5  ;;  %v5692_v14 = vpack.c.bf16 %v845_v9, %v843_v8  ;;  %v854_v5 = vld [vmem:[%s7082_s18 + $0xe0] sm:$0xff]  ;;  %v856_v7 = vld [vmem:[%s7082_s18 + $0xf0] sm:$0xff]  ;;  %v859_v8 = vld [vmem:[%s7082_s18 + $0x108] sm:$0xff] }
 0x130   : > { %v861_v9 = vld [vmem:[%s7082_s18 + $0x118] sm:$0xff] }
 0x131   : > { %3893 = vmatprep.subr.bf16.mxu1 %v3892_v16  ;;  %7417 = vst [vmem:[#allocation32_spill] sm:$0xff] %v5689_v12  ;;  %7418 = vst [vmem:[#allocation33_spill] sm:$0xff] %v5692_v14 }
 0x132   : > { %3895 = vmatpush1.bf16.msra.mxu1 %v3894_v15 }
 0x133   : > { %3897 = vmatprep.subr.bf16.mxu1 %v3888_v52  ;;  %v834_v52 = vld [vmem:[%s7082_s18 + $0x40] sm:$0xff] }
 0x134   : > { %v5671_v0 = vpack.c.bf16 %v836_v55, %v834_v52  ;;  %v855_v52 = vld [vmem:[%s7082_s18 + $0xe8] sm:$0xff]  ;;  %v857_v55 = vld [vmem:[%s7082_s18 + $0xf8] sm:$0xff] }
 0x135   : > { %3838 = vmatmul.mubr.msk.f32.vlgmr.msra.gmra.mrb[8].mxu1 %vm1354_vm2, %v808_v18  ;;  %v847_v18 = vld [vmem:[%s7082_s18 + $0xa8] sm:$0xff]  ;;  %v5746_v59 = vpack.c.bf16 %v857_v55, %v855_v52  ;;  %v869_v55 = vld [vmem:[%s7082_s18 + $0x158] sm:$0xff] }
 0x136   : > { %3899 = vmatpush1.bf16.msra.mxu1 %v3890_v49  ;;  %1501 = vmatprep.mubr.f32.mxu1 %v7090_v4  ;;  %v5653_v49 = vpack.c.bf16 %v832_v41, %v830_v40  ;;  %7415 = vst [vmem:[#allocation30_spill] sm:$0xff] %v5671_v0  ;;  %v5710_v27 = vpack.c.bf16 %v849_v21, %v847_v18  ;;  %v858_v18 = vld [vmem:[%s7082_s18 + $0x100] sm:$0xff]  ;;  %v860_v21 = vld [vmem:[%s7082_s18 + $0x110] sm:$0xff]  ;;  %v867_v52 = vld [vmem:[%s7082_s18 + $0x148] sm:$0xff] }
 0x137   : > { %3901 = vmatprep.subr.bf16.mxu1 %v3892_v16  ;;  %v844_v16 = vld [vmem:[%s7082_s18 + $0x90] sm:$0xff]  ;;  %v5725_v40 = vpack.c.bf16 %v848_v30, %v846_v28  ;;  %7424 = vst [vmem:[#allocation39_spill] sm:$0xff] %v5746_v59  ;;  %v863_v28 = vld [vmem:[%s7082_s18 + $0x128] sm:$0xff]  ;;  %v865_v30 = vld [vmem:[%s7082_s18 + $0x138] sm:$0xff] }
 0x138   : > { %7413 = vst [vmem:[#allocation28_spill] sm:$0xff] %v5653_v49  ;;  %7420 = vst [vmem:[#allocation35_spill] sm:$0xff] %v5710_v27  ;;  %v879_v4 = vld [vmem:[%s7082_s18 + $0x1a8] sm:$0xff] }
 0x139   : > { %7421 = vst [vmem:[#allocation36_spill] sm:$0xff] %v5725_v40 }
 0x13a   : > { %3903 = vmatpush1.bf16.msra.mxu1 %v3894_v15  ;;  %v842_v15 = vld [vmem:[%s7082_s18 + $0x80] sm:$0xff] }
 0x13b   : > { %3905 = vmatprep.subr.bf16.mxu1 %v5617_v26  ;;  %v5707_v22 = vpack.c.bf16 %v844_v16, %v842_v15  ;;  %v5761_v15 = vpack.c.bf16 %v856_v7, %v854_v5  ;;  %v5764_v16 = vpack.c.bf16 %v861_v9, %v859_v8  ;;  %v5797_v5 = vpack.c.bf16 %v864_v46, %v862_v43  ;;  %v866_v8 = vld [vmem:[%s7082_s18 + $0x140] sm:$0xff]  ;;  %v868_v9 = vld [vmem:[%s7082_s18 + $0x150] sm:$0xff] }
 0x13c   : > { %v5800_v7 = vpack.c.bf16 %v869_v55, %v867_v52  ;;  %v870_v43 = vld [vmem:[%s7082_s18 + $0x160] sm:$0xff]  ;;  %v872_v46 = vld [vmem:[%s7082_s18 + $0x170] sm:$0xff]  ;;  %v875_v52 = vld [vmem:[%s7082_s18 + $0x188] sm:$0xff] }
 0x13d   : > { %3839 = vmatmul.mubr.msk.f32.vlgmr.msra.gmra.mrb[10].mxu1 %vm1354_vm2, %v809_v33  ;;  %7419 = vst [vmem:[#allocation34_spill] sm:$0xff] %v5707_v22  ;;  %v853_v33 = vld [vmem:[%s7082_s18 + $0xd8] sm:$0xff]  ;;  %7425 = vst [vmem:[#allocation40_spill] sm:$0xff] %v5761_v15 }
 0x13e   : > { %3907 = vmatpush1.bf16.msra.mxu1 %v5634_v34  ;;  %v5728_v41 = vpack.c.bf16 %v853_v33, %v851_v32  ;;  %7426 = vst [vmem:[#allocation41_spill] sm:$0xff] %v5764_v16  ;;  %v5779_v32 = vpack.c.bf16 %v860_v21, %v858_v18  ;;  %v5782_v33 = vpack.c.bf16 %v865_v30, %v863_v28  ;;  %7429 = vst [vmem:[#allocation44_spill] sm:$0xff] %v5797_v5  ;;  %v871_v18 = vld [vmem:[%s7082_s18 + $0x168] sm:$0xff]  ;;  %v873_v21 = vld [vmem:[%s7082_s18 + $0x178] sm:$0xff] }
 0x13f   : > { %3909 = vmatprep.subr.bf16.mxu1 %v5637_v37  ;;  %7430 = vst [vmem:[#allocation45_spill] sm:$0xff] %v5800_v7  ;;  %v5815_v28 = vpack.c.bf16 %v868_v9, %v866_v8  ;;  %v5818_v30 = vpack.c.bf16 %v873_v21, %v871_v18  ;;  %v877_v55 = vld [vmem:[%s7082_s18 + $0x198] sm:$0xff]  ;;  %v5833_v8 = vpack.c.bf16 %v872_v46, %v870_v43  ;;  %v874_v18 = vld [vmem:[%s7082_s18 + $0x180] sm:$0xff]  ;;  %v876_v21 = vld [vmem:[%s7082_s18 + $0x190] sm:$0xff] }
 0x140   : > { %7422 = vst [vmem:[#allocation37_spill] sm:$0xff] %v5728_v41  ;;  %7427 = vst [vmem:[#allocation42_spill] sm:$0xff] %v5779_v32  ;;  %v5836_v9 = vpack.c.bf16 %v877_v55, %v875_v52  ;;  %v881_v43 = vld [vmem:[%s7082_s18 + $0x1b8] sm:$0xff]  ;;  %v5851_v46 = vpack.c.bf16 %v876_v21, %v874_v18  ;;  %v878_v55 = vld [vmem:[%s7082_s18 + $0x1a0] sm:$0xff] }
 0x141   : > { %7428 = vst [vmem:[#allocation43_spill] sm:$0xff] %v5782_v33  ;;  %7431 = vst [vmem:[#allocation46_spill] sm:$0xff] %v5815_v28  ;;  %v5854_v52 = vpack.c.bf16 %v881_v43, %v879_v4  ;;  %v885_v18 = vld [vmem:[%s7082_s18 + $0x1d8] sm:$0xff]  ;;  %v5869_v4 = vpack.c.bf16 %v880_v63, %v878_v55  ;;  %v882_v43 = vld [vmem:[%s7082_s18 + $0x1c0] sm:$0xff] }
 0x142   : > { %3911 = vmatpush1.bf16.msra.mxu1 %v5653_v49  ;;  %7432 = vst [vmem:[#allocation47_spill] sm:$0xff] %v5818_v30  ;;  %7433 = vst [vmem:[#allocation48_spill] sm:$0xff] %v5833_v8  ;;  %v5872_v21 = vpack.c.bf16 %v885_v18, %v883_v24  ;;  %v5881_v61 = vpack.c.bf16 %v884_v20, %v882_v43  ;;  %v887_v24 = vld [vmem:[%s7082_s18 + $0x1e8] sm:$0xff]  ;;  %v889_v63 = vld [vmem:[%s7082_s18 + $0x1f8] sm:$0xff] }
 0x143   : > { %3913 = vmatprep.subr.bf16.mxu1 %v5656_v51  ;;  %7434 = vst [vmem:[#allocation49_spill] sm:$0xff] %v5836_v9  ;;  %7435 = vst [vmem:[#allocation50_spill] sm:$0xff] %v5851_v46  ;;  %v5891_v55 = vpack.c.bf16 %v889_v63, %v887_v24  ;;  %v886_v18 = vld [vmem:[%s7082_s18 + $0x1e0] sm:$0xff]  ;;  %v888_v20 = vld [vmem:[%s7082_s18 + $0x1f0] sm:$0xff] }
 0x144   : > { %7436 = vst [vmem:[#allocation51_spill] sm:$0xff] %v5854_v52  ;;  %7437 = vst [vmem:[#allocation52_spill] sm:$0xff] %v5869_v4  ;;  %v943_v43 = vld [vmem:[%s7083_s19 + $0x1a8] sm:$0xff]  ;;  %v5902_v10 = vpack.c.bf16 %v888_v20, %v886_v18  ;;  %v942_v24 = vld [vmem:[%s7083_s19 + $0x1a0] sm:$0xff] }
 0x145   : > { %7438 = vst [vmem:[#allocation53_spill] sm:$0xff] %v5872_v21  ;;  %7439 = vst [vmem:[#allocation54_spill] sm:$0xff] %v5881_v61  ;;  %v944_v63 = vld [vmem:[%s7083_s19 + $0x1b0] sm:$0xff]  ;;  %v5914_v57 = vpack.c.bf16 %v945_v3, %v943_v43  ;;  %v947_v18 = vld [vmem:[%s7083_s19 + $0x1c8] sm:$0xff] }
 0x146   : > { %3915 = vmatpush1.bf16.msra.mxu1 %v5671_v0  ;;  %7440 = vst [vmem:[#allocation55_spill] sm:$0xff] %v5891_v55  ;;  %7441 = vst [vmem:[#allocation56_spill] sm:$0xff] %v5902_v10  ;;  %v5916_v53 = vpack.c.bf16 %v944_v63, %v942_v24  ;;  %v949_v20 = vld [vmem:[%s7083_s19 + $0x1d8] sm:$0xff]  ;;  %v946_v43 = vld [vmem:[%s7083_s19 + $0x1c0] sm:$0xff] }
 0x147   : > { %3917 = vmatprep.subr.bf16.mxu1 %v5674_v1  ;;  %7442 = vst [vmem:[#allocation57_spill] sm:$0xff] %v5914_v57  ;;  %4021 = vmatprep.subr.bf16.mxu0 %v5914_v57  ;;  %v5928_v3 = vpack.c.bf16 %v949_v20, %v947_v18  ;;  %v948_v24 = vld [vmem:[%s7083_s19 + $0x1d0] sm:$0xff]  ;;  %v953_v18 = vld [vmem:[%s7083_s19 + $0x1f8] sm:$0xff] }
 0x148   : > { %7443 = vst [vmem:[#allocation58_spill] sm:$0xff] %v5916_v53  ;;  %4023 = vmatpush1.bf16.msra.mxu0 %v5916_v53  ;;  %v5937_v63 = vpack.c.bf16 %v948_v24, %v946_v43  ;;  %v950_v53 = vld [vmem:[%s7083_s19 + $0x1e0] sm:$0xff]  ;;  %v952_v43 = vld [vmem:[%s7083_s19 + $0x1f0] sm:$0xff] }
 0x149   : > { %7444 = vst [vmem:[#allocation59_spill] sm:$0xff] %v5928_v3  ;;  %4025 = vmatprep.subr.bf16.mxu0 %v5928_v3  ;;  %v5954_v24 = vpack.c.bf16 %v952_v43, %v950_v53  ;;  %v5958_v3 = vpop.permute.xlu0 %1351  ;;  %v955_v53 = vld [vmem:[%s7084_s20 + $0x8] sm:$0xff]  ;;  %v957_v43 = vld [vmem:[%s7084_s20 + $0x18] sm:$0xff] }
 0x14a   : > { %3919 = vmatpush1.bf16.msra.mxu1 %v5689_v12  ;;  %7445 = vst [vmem:[#allocation60_spill] sm:$0xff] %v5937_v63  ;;  %7448 = vst [vmem:[#allocation63_spill] sm:$0xff] %v5958_v3 }
 0x14b   : > { %3921 = vmatprep.subr.bf16.mxu1 %v5692_v14  ;;  %7447 = vst [vmem:[#allocation62_spill] sm:$0xff] %v5954_v24 }
 0x14c   : > { %4027 = vmatpush1.bf16.msra.mxu0 %v5937_v63 }
 0x14e   : > { %3923 = vmatpush1.bf16.msra.mxu1 %v5707_v22 }
 0x14f   : > { %3925 = vmatprep.subr.bf16.mxu1 %v5710_v27 }
 0x152   : > { %3927 = vmatpush1.bf16.msra.mxu1 %v5725_v40 }
 0x153   : > { %3929 = vmatprep.subr.bf16.mxu1 %v5728_v41 }
 0x156   : > { %3931 = vmatpush1.bf16.msra.mxu1 %v5743_v58 }
 0x157   : > { %3933 = vmatprep.subr.bf16.mxu1 %v5746_v59 }
 0x15a   : > { %3935 = vmatpush1.bf16.msra.mxu1 %v5761_v15 }
 0x15b   : > { %3937 = vmatprep.subr.bf16.mxu1 %v5764_v16 }
 0x15e   : > { %3939 = vmatpush1.bf16.msra.mxu1 %v5779_v32 }
 0x15f   : > { %3941 = vmatprep.subr.bf16.mxu1 %v5782_v33 }
 0x162   : > { %3943 = vmatpush1.bf16.msra.mxu1 %v5797_v5 }
 0x163   : > { %3945 = vmatprep.subr.bf16.mxu1 %v5800_v7 }
 0x166   : > { %3947 = vmatpush1.bf16.msra.mxu1 %v5815_v28 }
 0x167   : > { %3949 = vmatprep.subr.bf16.mxu1 %v5818_v30 }
 0x16a   : > { %3951 = vmatpush1.bf16.msra.mxu1 %v5833_v8 }
 0x16b   : > { %3953 = vmatprep.subr.bf16.mxu1 %v5836_v9 }
 0x16e   : > { %3955 = vmatpush1.bf16.msra.mxu1 %v5851_v46 }
 0x16f   : > { %3957 = vmatprep.subr.bf16.mxu1 %v5854_v52 }
 0x172   : > { %3959 = vmatpush1.bf16.msra.mxu1 %v5869_v4 }
 0x173   : > { %3961 = vmatprep.subr.bf16.mxu1 %v5872_v21 }
 0x176   : > { %3963 = vmatpush1.bf16.msra.mxu1 %v5881_v61 }
 0x177   : > { %3965 = vmatprep.subr.bf16.mxu1 %v5891_v55 }
 0x17a   : > { %3967 = vmatpush1.bf16.msra.mxu1 %v5902_v10 }
 0x17b   : > { %4033 = vmatprep.subr.bf16.mxu1 %v5617_v26  ;;  %v951_v26 = vld [vmem:[%s7083_s19 + $0x1e8] sm:$0xff] }
 0x17c   : > { %v5946_v20 = vpack.c.bf16 %v953_v18, %v951_v26 }
 0x17e   : > { %7446 = vst [vmem:[#allocation61_spill] sm:$0xff] %v5946_v20  ;;  %4029 = vmatprep.subr.bf16.mxu0 %v5946_v20 }
 0x17f   : > { %4031 = vmatpush1.bf16.msra.mxu0 %v5954_v24  ;;  %v5975_v24 = vpack.c.bf16 %v957_v43, %v955_v53  ;;  %v961_v53 = vld [vmem:[%s7084_s20 + $0x38] sm:$0xff]  ;;  %v5991_v43 = vpop.permute.xlu1 %1431 }
 0x180   : > { %7451 = vst [vmem:[#allocation66_spill] sm:$0xff] %v5991_v43 }
 0x181   : > { %7450 = vst [vmem:[#allocation65_spill] sm:$0xff] %v5975_v24  ;;  %4161 = vmatprep.subr.bf16.mxu0 %v5975_v24 }
 0x208   : > { %v1424_v63 = vpop.f32.mrb[8].mxu1 }
 0x209   : > { %v1426_v57 = vpop.f32.mrb[9].mxu1  ;;  %v5964_v18 = vadd.f32 %v1424_v63, %v5958_v3  ;;  %v956_v63 = vld [vmem:[%s7084_s20 + $0x10] sm:$0xff] }
 0x20a   : > { %v5961_v26 = vadd.f32 %v1426_v57, %v5958_v3  ;;  %v954_v57 = vld [vmem:[%s7084_s20] sm:$0xff] }
 0x20b   : > { %7449 = vst [vmem:[#allocation64_spill] sm:$0xff] %v5964_v18  ;;  %v5995_v20 = vpack.c.bf16 %v956_v63, %v954_v57  ;;  %v962_v57 = vld [vmem:[%s7084_s20 + $0x40] sm:$0xff]  ;;  %v964_v63 = vld [vmem:[%s7084_s20 + $0x50] sm:$0xff] }
 0x20c   : > { %1572 = vmatprep.mubr.f32.mxu1 %v5961_v26 }
 0x20d   : > { %1573 = vmatmul.mubr.f32.vlgmr.msra.gmra.mrb[12].mxu1 %v5964_v18  ;;  %v959_v18 = vld [vmem:[%s7084_s20 + $0x28] sm:$0xff]  ;;  %7452 = vst [vmem:[#allocation67_spill] sm:$0xff] %v5995_v20 }
 0x20e   : > { %4035 = vmatpush1.bf16.msra.mxu1 %v5634_v34  ;;  %v6001_v24 = vpack.c.bf16 %v961_v53, %v959_v18  ;;  %v6018_v18 = vpack.c.bf16 %v960_v39, %v958_v45  ;;  %v967_v53 = vld [vmem:[%s7084_s20 + $0x68] sm:$0xff]  ;;  %v969_v39 = vld [vmem:[%s7084_s20 + $0x78] sm:$0xff]  ;;  %v6038_v45 = vpack.c.bf16 %v964_v63, %v962_v57 }
 0x20f   : > { %4037 = vmatprep.subr.bf16.mxu1 %v5637_v37  ;;  %v973_v57 = vld [vmem:[%s7084_s20 + $0x98] sm:$0xff] }
 0x210   : > { %v1503_v3 = vpop.f32.mrb[10].mxu1  ;;  %7453 = vst [vmem:[#allocation68_spill] sm:$0xff] %v6001_v24  ;;  %7454 = vst [vmem:[#allocation69_spill] sm:$0xff] %v6018_v18 }
 0x211   : > { %v1505_v37 = vpop.f32.mrb[11].mxu1  ;;  %v5998_v47 = vadd.f32 %v1503_v3, %v5991_v43  ;;  %v965_v3 = vld [vmem:[%s7084_s20 + $0x58] sm:$0xff]  ;;  %7456 = vst [vmem:[#allocation71_spill] sm:$0xff] %v6038_v45 }
 0x212   : > { %v1506_v34 = vadd.f32 %v1505_v37, %v5991_v43  ;;  %4039 = vmatpush1.bf16.msra.mxu1 %v5653_v49  ;;  %v963_v37 = vld [vmem:[%s7084_s20 + $0x48] sm:$0xff]  ;;  %v968_v43 = vld [vmem:[%s7084_s20 + $0x70] sm:$0xff] }
 0x213   : > { %4041 = vmatprep.subr.bf16.mxu1 %v5656_v51  ;;  %v7491_v51 = vld [vmem:[#allocation59_spill] sm:$0xff]  ;;  %v7492_v49 = vld [vmem:[#allocation60_spill] sm:$0xff] }
 0x214   : > { %1643 = vmatprep.mubr.f32.mxu0 %v1506_v34  ;;  %1716 = vmatprep.mubr.f32.mxu1 %v1506_v34  ;;  %v6022_v34 = vpack.c.bf16 %v965_v3, %v963_v37  ;;  %v6042_v37 = vpack.c.bf16 %v969_v39, %v967_v53  ;;  %v966_v3 = vld [vmem:[%s7084_s20 + $0x60] sm:$0xff] }
 0x215   : > { %1644 = vmatmul.mubr.f32.vlgmr.msra.gmra.mrb[8].mxu0 %v5998_v47  ;;  %v6058_v63 = vpack.c.bf16 %v968_v43, %v966_v3  ;;  %v970_v39 = vld [vmem:[%s7084_s20 + $0x80] sm:$0xff]  ;;  %v977_v43 = vld [vmem:[%s7084_s20 + $0xb8] sm:$0xff] }
 0x216   : > { %4043 = vmatpush1.bf16.msra.mxu1 %v5671_v0  ;;  %4163 = vmatpush1.bf16.msra.mxu0 %v5995_v20  ;;  %7455 = vst [vmem:[#allocation70_spill] sm:$0xff] %v6022_v34  ;;  %7457 = vst [vmem:[#allocation72_spill] sm:$0xff] %v6042_v37  ;;  %v7488_v0 = vld [vmem:[#allocation20_spill] sm:$0xff] }
 0x217   : > { %4045 = vmatprep.subr.bf16.mxu1 %v5674_v1  ;;  %4165 = vmatprep.subr.bf16.mxu0 %v6001_v24  ;;  %7458 = vst [vmem:[#allocation73_spill] sm:$0xff] %v6058_v63 }
 0x21a   : > { %4047 = vmatpush1.bf16.msra.mxu1 %v5689_v12  ;;  %4167 = vmatpush1.bf16.msra.mxu0 %v6018_v18  ;;  %v971_v12 = vld [vmem:[%s7084_s20 + $0x88] sm:$0xff] }
 0x21b   : > { %4049 = vmatprep.subr.bf16.mxu1 %v5692_v14  ;;  %4169 = vmatprep.subr.bf16.mxu0 %v6022_v34  ;;  %v6062_v53 = vpack.c.bf16 %v973_v57, %v971_v12  ;;  %v972_v14 = vld [vmem:[%s7084_s20 + $0x90] sm:$0xff]  ;;  %v974_v57 = vld [vmem:[%s7084_s20 + $0xa0] sm:$0xff] }
 0x21c   : > { %v6078_v12 = vpack.c.bf16 %v972_v14, %v970_v39  ;;  %v981_v14 = vld [vmem:[%s7084_s20 + $0xd8] sm:$0xff] }
 0x21d   : > { %7459 = vst [vmem:[#allocation74_spill] sm:$0xff] %v6062_v53 }
 0x21e   : > { %4051 = vmatpush1.bf16.msra.mxu1 %v5707_v22  ;;  %4171 = vmatpush1.bf16.msra.mxu0 %v6038_v45  ;;  %v975_v22 = vld [vmem:[%s7084_s20 + $0xa8] sm:$0xff]  ;;  %7460 = vst [vmem:[#allocation75_spill] sm:$0xff] %v6078_v12 }
 0x21f   : > { %4053 = vmatprep.subr.bf16.mxu1 %v5710_v27  ;;  %4173 = vmatprep.subr.bf16.mxu0 %v6042_v37  ;;  %v6082_v3 = vpack.c.bf16 %v977_v43, %v975_v22  ;;  %v976_v27 = vld [vmem:[%s7084_s20 + $0xb0] sm:$0xff]  ;;  %v978_v43 = vld [vmem:[%s7084_s20 + $0xc0] sm:$0xff] }
 0x220   : > { %v6098_v22 = vpack.c.bf16 %v976_v27, %v974_v57  ;;  %v985_v27 = vld [vmem:[%s7084_s20 + $0xf8] sm:$0xff] }
 0x221   : > { %7461 = vst [vmem:[#allocation76_spill] sm:$0xff] %v6082_v3 }
 0x222   : > { %4055 = vmatpush1.bf16.msra.mxu1 %v5725_v40  ;;  %4175 = vmatpush1.bf16.msra.mxu0 %v6058_v63  ;;  %v979_v40 = vld [vmem:[%s7084_s20 + $0xc8] sm:$0xff]  ;;  %7462 = vst [vmem:[#allocation77_spill] sm:$0xff] %v6098_v22 }
 0x223   : > { %4057 = vmatprep.subr.bf16.mxu1 %v5728_v41  ;;  %4177 = vmatprep.subr.bf16.mxu0 %v6062_v53  ;;  %v6102_v39 = vpack.c.bf16 %v981_v14, %v979_v40  ;;  %v980_v41 = vld [vmem:[%s7084_s20 + $0xd0] sm:$0xff]  ;;  %v982_v14 = vld [vmem:[%s7084_s20 + $0xe0] sm:$0xff] }
 0x224   : > { %v6118_v40 = vpack.c.bf16 %v980_v41, %v978_v43  ;;  %v989_v41 = vld [vmem:[%s7084_s20 + $0x118] sm:$0xff] }
 0x225   : > { %7463 = vst [vmem:[#allocation78_spill] sm:$0xff] %v6102_v39 }
 0x226   : > { %4059 = vmatpush1.bf16.msra.mxu1 %v5743_v58  ;;  %4179 = vmatpush1.bf16.msra.mxu0 %v6078_v12  ;;  %v983_v58 = vld [vmem:[%s7084_s20 + $0xe8] sm:$0xff]  ;;  %7464 = vst [vmem:[#allocation79_spill] sm:$0xff] %v6118_v40 }
 0x227   : > { %4061 = vmatprep.subr.bf16.mxu1 %v5746_v59  ;;  %4181 = vmatprep.subr.bf16.mxu0 %v6082_v3  ;;  %v6122_v57 = vpack.c.bf16 %v985_v27, %v983_v58  ;;  %v984_v59 = vld [vmem:[%s7084_s20 + $0xf0] sm:$0xff]  ;;  %v986_v27 = vld [vmem:[%s7084_s20 + $0x100] sm:$0xff] }
 0x228   : > { %v6138_v58 = vpack.c.bf16 %v984_v59, %v982_v14  ;;  %v993_v59 = vld [vmem:[%s7084_s20 + $0x138] sm:$0xff] }
 0x229   : > { %7465 = vst [vmem:[#allocation80_spill] sm:$0xff] %v6122_v57 }
 0x22a   : > { %4063 = vmatpush1.bf16.msra.mxu1 %v5761_v15  ;;  %4183 = vmatpush1.bf16.msra.mxu0 %v6098_v22  ;;  %v987_v15 = vld [vmem:[%s7084_s20 + $0x108] sm:$0xff]  ;;  %7466 = vst [vmem:[#allocation81_spill] sm:$0xff] %v6138_v58 }
 0x22b   : > { %4065 = vmatprep.subr.bf16.mxu1 %v5764_v16  ;;  %4185 = vmatprep.subr.bf16.mxu0 %v6102_v39  ;;  %v6142_v43 = vpack.c.bf16 %v989_v41, %v987_v15  ;;  %v988_v16 = vld [vmem:[%s7084_s20 + $0x110] sm:$0xff]  ;;  %v990_v41 = vld [vmem:[%s7084_s20 + $0x120] sm:$0xff] }
 0x22c   : > { %v6158_v15 = vpack.c.bf16 %v988_v16, %v986_v27  ;;  %v996_v27 = vld [vmem:[%s7084_s20 + $0x150] sm:$0xff] }
 0x22d   : > { %7467 = vst [vmem:[#allocation82_spill] sm:$0xff] %v6142_v43 }
 0x22e   : > { %4067 = vmatpush1.bf16.msra.mxu1 %v5779_v32  ;;  %4187 = vmatpush1.bf16.msra.mxu0 %v6118_v40  ;;  %v991_v32 = vld [vmem:[%s7084_s20 + $0x128] sm:$0xff]  ;;  %7468 = vst [vmem:[#allocation83_spill] sm:$0xff] %v6158_v15 }
 0x22f   : > { %4069 = vmatprep.subr.bf16.mxu1 %v5782_v33  ;;  %4189 = vmatprep.subr.bf16.mxu0 %v6122_v57  ;;  %v6162_v14 = vpack.c.bf16 %v993_v59, %v991_v32  ;;  %v992_v33 = vld [vmem:[%s7084_s20 + $0x130] sm:$0xff]  ;;  %v997_v32 = vld [vmem:[%s7084_s20 + $0x158] sm:$0xff]  ;;  %v999_v59 = vld [vmem:[%s7084_s20 + $0x168] sm:$0xff] }
 0x230   : > { %v6172_v16 = vpack.c.bf16 %v992_v33, %v990_v41 }
 0x231   : > { %7469 = vst [vmem:[#allocation84_spill] sm:$0xff] %v6162_v14 }
 0x232   : > { %4071 = vmatpush1.bf16.msra.mxu1 %v5797_v5  ;;  %4191 = vmatpush1.bf16.msra.mxu0 %v6138_v58  ;;  %7470 = vst [vmem:[#allocation85_spill] sm:$0xff] %v6172_v16  ;;  %v7486_v5 = vld [vmem:[#allocation19_spill] sm:$0xff] }
 0x233   : > { %4073 = vmatprep.subr.bf16.mxu1 %v5800_v7  ;;  %4193 = vmatprep.subr.bf16.mxu0 %v6142_v43  ;;  %v1021_v7 = vld [vmem:[#allocation3 + $0x18] sm:$0xff] }
 0x236   : > { %4075 = vmatpush1.bf16.msra.mxu1 %v5815_v28  ;;  %4195 = vmatpush1.bf16.msra.mxu0 %v6158_v15  ;;  %v7484_v28 = vld [vmem:[#allocation17_spill] sm:$0xff] }
 0x237   : > { %4077 = vmatprep.subr.bf16.mxu1 %v5818_v30  ;;  %4197 = vmatprep.subr.bf16.mxu0 %v6162_v14 }
 0x23a   : > { %4079 = vmatpush1.bf16.msra.mxu1 %v5833_v8  ;;  %4199 = vmatpush1.bf16.msra.mxu0 %v6172_v16  ;;  %v7482_v8 = vld [vmem:[#allocation16_spill] sm:$0xff] }
 0x23b   : > { %4081 = vmatprep.subr.bf16.mxu1 %v5836_v9 }
 0x23e   : > { %4083 = vmatpush1.bf16.msra.mxu1 %v5851_v46 }
 0x23f   : > { %4085 = vmatprep.subr.bf16.mxu1 %v5854_v52 }
 0x242   : > { %4087 = vmatpush1.bf16.msra.mxu1 %v5869_v4 }
 0x243   : > { %4089 = vmatprep.subr.bf16.mxu1 %v5872_v21 }
 0x246   : > { %4091 = vmatpush1.bf16.msra.mxu1 %v5881_v61 }
 0x247   : > { %4093 = vmatprep.subr.bf16.mxu1 %v5891_v55 }
 0x24a   : > { %4095 = vmatpush1.bf16.msra.mxu1 %v5902_v10  ;;  %v1000_v10 = vld [vmem:[%s7084_s20 + $0x170] sm:$0xff] }
 0x24b   : > { %4097 = vmatprep.subr.bf16.mxu1 %v5365_v36 }
 0x24d   : > { %1717 = vmatmul.mubr.f32.vlgmr.msra.gmra.mrb[14].mxu1 %v5998_v47  ;;  %v995_v47 = vld [vmem:[%s7084_s20 + $0x148] sm:$0xff] }
 0x24e   : > { %4099 = vmatpush1.bf16.msra.mxu1 %v5370_v38  ;;  %1787 = vmatprep.mubr.f32.mxu1 %v5961_v26  ;;  %v6205_v33 = vpack.c.bf16 %v997_v32, %v995_v47  ;;  %v994_v26 = vld [vmem:[%s7084_s20 + $0x140] sm:$0xff]  ;;  %v1001_v47 = vld [vmem:[%s7084_s20 + $0x178] sm:$0xff] }
 0x24f   : > { %4101 = vmatprep.subr.bf16.mxu1 %v5383_v42  ;;  %v6217_v41 = vpack.c.bf16 %v996_v27, %v994_v26  ;;  %v998_v32 = vld [vmem:[%s7084_s20 + $0x160] sm:$0xff]  ;;  %v6230_v55 = vpack.c.bf16 %v1001_v47, %v999_v59  ;;  %v1003_v27 = vld [vmem:[%s7084_s20 + $0x188] sm:$0xff]  ;;  %v1005_v59 = vld [vmem:[%s7084_s20 + $0x198] sm:$0xff] }
 0x250   : > { %7471 = vst [vmem:[#allocation86_spill] sm:$0xff] %v6205_v33  ;;  %4201 = vmatprep.subr.bf16.mxu0 %v6205_v33  ;;  %v6233_v26 = vpack.c.bf16 %v1000_v10, %v998_v32  ;;  %v6245_v47 = vpack.c.bf16 %v1005_v59, %v1003_v27  ;;  %v1002_v10 = vld [vmem:[%s7084_s20 + $0x180] sm:$0xff]  ;;  %v1004_v32 = vld [vmem:[%s7084_s20 + $0x190] sm:$0xff]  ;;  %v1007_v27 = vld [vmem:[%s7084_s20 + $0x1a8] sm:$0xff] }
 0x251   : > { %7472 = vst [vmem:[#allocation87_spill] sm:$0xff] %v6217_v41  ;;  %7473 = vst [vmem:[#allocation88_spill] sm:$0xff] %v6230_v55  ;;  %4203 = vmatpush1.bf16.msra.mxu0 %v6217_v41  ;;  %v6254_v61 = vpack.c.bf16 %v1004_v32, %v1002_v10  ;;  %v1009_v59 = vld [vmem:[%s7084_s20 + $0x1b8] sm:$0xff]  ;;  %v1006_v10 = vld [vmem:[%s7084_s20 + $0x1a0] sm:$0xff] }
 0x252   : > { %4103 = vmatpush1.bf16.msra.mxu1 %v5388_v44  ;;  %7474 = vst [vmem:[#allocation89_spill] sm:$0xff] %v6233_v26  ;;  %4205 = vmatprep.subr.bf16.mxu0 %v6230_v55  ;;  %7475 = vst [vmem:[#allocation90_spill] sm:$0xff] %v6245_v47  ;;  %v6265_v21 = vpack.c.bf16 %v1009_v59, %v1007_v27  ;;  %v1008_v32 = vld [vmem:[%s7084_s20 + $0x1b0] sm:$0xff]  ;;  %v1011_v27 = vld [vmem:[%s7084_s20 + $0x1c8] sm:$0xff] }
 0x253   : > { %4105 = vmatprep.subr.bf16.mxu1 %v5401_v48  ;;  %7476 = vst [vmem:[#allocation91_spill] sm:$0xff] %v6254_v61  ;;  %v6274_v4 = vpack.c.bf16 %v1008_v32, %v1006_v10  ;;  %v1013_v59 = vld [vmem:[%s7084_s20 + $0x1d8] sm:$0xff]  ;;  %v1010_v10 = vld [vmem:[%s7084_s20 + $0x1c0] sm:$0xff]  ;;  %v1012_v32 = vld [vmem:[%s7084_s20 + $0x1d0] sm:$0xff] }
 0x254   : > { %7477 = vst [vmem:[#allocation92_spill] sm:$0xff] %v6265_v21  ;;  %v6285_v52 = vpack.c.bf16 %v1013_v59, %v1011_v27  ;;  %v6294_v46 = vpack.c.bf16 %v1012_v32, %v1010_v10  ;;  %v1015_v27 = vld [vmem:[%s7084_s20 + $0x1e8] sm:$0xff]  ;;  %v1017_v59 = vld [vmem:[%s7084_s20 + $0x1f8] sm:$0xff]  ;;  %v1014_v10 = vld [vmem:[%s7084_s20 + $0x1e0] sm:$0xff] }
 0x255   : > { %4207 = vmatpush1.bf16.msra.mxu0 %v6233_v26  ;;  %7478 = vst [vmem:[#allocation93_spill] sm:$0xff] %v6274_v4  ;;  %v6305_v9 = vpack.c.bf16 %v1017_v59, %v1015_v27  ;;  %v1016_v32 = vld [vmem:[%s7084_s20 + $0x1f0] sm:$0xff]  ;;  %v7485_v27 = vld [vmem:[#allocation18_spill] sm:$0xff]  ;;  %v1019_v59 = vld [vmem:[#allocation3 + $0x8] sm:$0xff] }
 0x256   : > { %4107 = vmatpush1.bf16.msra.mxu1 %v5406_v50  ;;  %4209 = vmatprep.subr.bf16.mxu0 %v6245_v47  ;;  %7479 = vst [vmem:[#allocation94_spill] sm:$0xff] %v6285_v52  ;;  %7480 = vst [vmem:[#allocation95_spill] sm:$0xff] %v6294_v46  ;;  %v6314_v30 = vpack.c.bf16 %v1016_v32, %v1014_v10  ;;  %v6321_v1 = vpack.c.bf16 %v1021_v7, %v1019_v59  ;;  %v7489_v10 = vld [vmem:[#allocation57_spill] sm:$0xff]  ;;  %v7490_v32 = vld [vmem:[#allocation58_spill] sm:$0xff] }
 0x257   : > { %4109 = vmatprep.subr.bf16.mxu1 %v5419_v54  ;;  %7481 = vst [vmem:[#allocation96_spill] sm:$0xff] %v6305_v9  ;;  %v7496_v7 = vld [vmem:[#allocation64_spill] sm:$0xff] }
 0x258   : > { %7483 = vst [vmem:[#allocation97_spill] sm:$0xff] %v6314_v30  ;;  %7487 = vst [vmem:[#allocation98_spill] sm:$0xff] %v6321_v1 }
 0x259   : > { %4211 = vmatpush1.bf16.msra.mxu0 %v6254_v61 }
 0x25a   : > { %4111 = vmatpush1.bf16.msra.mxu1 %v5424_v56  ;;  %4213 = vmatprep.subr.bf16.mxu0 %v6265_v21 }
 0x25b   : > { %4113 = vmatprep.subr.bf16.mxu1 %v5437_v60 }
 0x25d   : > { %4215 = vmatpush1.bf16.msra.mxu0 %v6274_v4 }
 0x25e   : > { %4115 = vmatpush1.bf16.msra.mxu1 %v5442_v62  ;;  %4217 = vmatprep.subr.bf16.mxu0 %v6285_v52 }
 0x25f   : > { %4117 = vmatprep.subr.bf16.mxu1 %v5455_v2 }
 0x261   : > { %4219 = vmatpush1.bf16.msra.mxu0 %v6294_v46 }
 0x262   : > { %4119 = vmatpush1.bf16.msra.mxu1 %v5460_v6  ;;  %4221 = vmatprep.subr.bf16.mxu0 %v6305_v9 }
 0x263   : > { %4121 = vmatprep.subr.bf16.mxu1 %v5473_v11 }
 0x265   : > { %4223 = vmatpush1.bf16.msra.mxu0 %v6314_v30 }
 0x266   : > { %4123 = vmatpush1.bf16.msra.mxu1 %v5478_v13  ;;  %4225 = vmatprep.subr.bf16.mxu0 %v6321_v1 }
 0x267   : > { %4125 = vmatprep.subr.bf16.mxu1 %v5491_v17 }
 0x26a   : > { %4127 = vmatpush1.bf16.msra.mxu1 %v5496_v19 }
 0x26b   : > { %4129 = vmatprep.subr.bf16.mxu1 %v5509_v23 }
 0x26e   : > { %4131 = vmatpush1.bf16.msra.mxu1 %v5514_v25 }
 0x26f   : > { %4133 = vmatprep.subr.bf16.mxu1 %v5527_v29 }
 0x272   : > { %4135 = vmatpush1.bf16.msra.mxu1 %v5532_v31 }
 0x273   : > { %4137 = vmatprep.subr.bf16.mxu1 %v5545_v35  ;;  %v1078_v35 = vld [vmem:[#allocation3 + $0x1e0] sm:$0xff] }
 0x276   : > { %4139 = vmatpush1.bf16.msra.mxu1 %v7482_v8  ;;  %v7495_v8 = vld [vmem:[#allocation65_spill] sm:$0xff] }
 0x277   : > { %4141 = vmatprep.subr.bf16.mxu1 %v7484_v28  ;;  %v7493_v28 = vld [vmem:[#allocation61_spill] sm:$0xff] }
 0x27a   : > { %4143 = vmatpush1.bf16.msra.mxu1 %v7485_v27  ;;  %v7494_v27 = vld [vmem:[#allocation62_spill] sm:$0xff] }
 0x27b   : > { %4145 = vmatprep.subr.bf16.mxu1 %v7486_v5  ;;  %v1081_v5 = vld [vmem:[#allocation3 + $0x1f8] sm:$0xff] }
 0x27e   : > { %4147 = vmatpush1.bf16.msra.mxu1 %v7488_v0  ;;  %v1074_v0 = vld [vmem:[#allocation3 + $0x1c0] sm:$0xff] }
 0x27f   : > { %4149 = vmatprep.subr.bf16.mxu1 %v7489_v10  ;;  %v1072_v10 = vld [vmem:[#allocation3 + $0x1b0] sm:$0xff] }
 0x282   : > { %4151 = vmatpush1.bf16.msra.mxu1 %v7490_v32  ;;  %v1070_v32 = vld [vmem:[#allocation3 + $0x1a0] sm:$0xff] }
 0x283   : > { %4153 = vmatprep.subr.bf16.mxu1 %v7491_v51  ;;  %v1068_v51 = vld [vmem:[#allocation3 + $0x190] sm:$0xff] }
 0x286   : > { %4155 = vmatpush1.bf16.msra.mxu1 %v7492_v49  ;;  %v1066_v49 = vld [vmem:[#allocation3 + $0x180] sm:$0xff] }
 0x287   : > { %4157 = vmatprep.subr.bf16.mxu1 %v7493_v28  ;;  %v1064_v28 = vld [vmem:[#allocation3 + $0x170] sm:$0xff] }
 0x28a   : > { %4159 = vmatpush1.bf16.msra.mxu1 %v7494_v27  ;;  %v1062_v27 = vld [vmem:[#allocation3 + $0x160] sm:$0xff] }
 0x28b   : > { %4289 = vmatprep.subr.bf16.mxu1 %v7495_v8  ;;  %v1060_v8 = vld [vmem:[#allocation3 + $0x150] sm:$0xff] }
 0x28d   : > { %1788 = vmatmul.mubr.f32.vlgmr.msra.gmra.mrb[14].mxu1 %v7496_v7 }
 0x28e   : > { %4291 = vmatpush1.bf16.msra.mxu1 %v5995_v20  ;;  %v1058_v20 = vld [vmem:[#allocation3 + $0x140] sm:$0xff] }
 0x28f   : > { %4293 = vmatprep.subr.bf16.mxu1 %v6001_v24  ;;  %v1056_v24 = vld [vmem:[#allocation3 + $0x130] sm:$0xff] }
 0x292   : > { %4295 = vmatpush1.bf16.msra.mxu1 %v6018_v18  ;;  %v1054_v18 = vld [vmem:[#allocation3 + $0x120] sm:$0xff] }
 0x293   : > { %4297 = vmatprep.subr.bf16.mxu1 %v6022_v34  ;;  %v1052_v34 = vld [vmem:[#allocation3 + $0x110] sm:$0xff] }
 0x296   : > { %4299 = vmatpush1.bf16.msra.mxu1 %v6038_v45  ;;  %v1050_v45 = vld [vmem:[#allocation3 + $0x100] sm:$0xff] }
 0x297   : > { %4301 = vmatprep.subr.bf16.mxu1 %v6042_v37  ;;  %v1048_v37 = vld [vmem:[#allocation3 + $0xf0] sm:$0xff] }
 0x29a   : > { %4303 = vmatpush1.bf16.msra.mxu1 %v6058_v63  ;;  %v1046_v63 = vld [vmem:[#allocation3 + $0xe0] sm:$0xff] }
 0x29b   : > { %4305 = vmatprep.subr.bf16.mxu1 %v6062_v53  ;;  %v1044_v53 = vld [vmem:[#allocation3 + $0xd0] sm:$0xff] }
 0x29e   : > { %4307 = vmatpush1.bf16.msra.mxu1 %v6078_v12  ;;  %v1042_v12 = vld [vmem:[#allocation3 + $0xc0] sm:$0xff] }
 0x29f   : > { %4309 = vmatprep.subr.bf16.mxu1 %v6082_v3  ;;  %v1040_v3 = vld [vmem:[#allocation3 + $0xb0] sm:$0xff] }
 0x2a2   : > { %4311 = vmatpush1.bf16.msra.mxu1 %v6098_v22  ;;  %v1038_v22 = vld [vmem:[#allocation3 + $0xa0] sm:$0xff] }
 0x2a3   : > { %4313 = vmatprep.subr.bf16.mxu1 %v6102_v39  ;;  %v1036_v39 = vld [vmem:[#allocation3 + $0x90] sm:$0xff] }
 0x2a6   : > { %4315 = vmatpush1.bf16.msra.mxu1 %v6118_v40  ;;  %v1034_v40 = vld [vmem:[#allocation3 + $0x80] sm:$0xff] }
 0x2a7   : > { %4317 = vmatprep.subr.bf16.mxu1 %v6122_v57  ;;  %v1025_v57 = vld [vmem:[#allocation3 + $0x38] sm:$0xff] }
 0x2aa   : > { %4319 = vmatpush1.bf16.msra.mxu1 %v6138_v58  ;;  %v1023_v58 = vld [vmem:[#allocation3 + $0x28] sm:$0xff] }
 0x2ab   : > { %4321 = vmatprep.subr.bf16.mxu1 %v6142_v43 }
 0x2ae   : > { %4323 = vmatpush1.bf16.msra.mxu1 %v6158_v15  ;;  %v1020_v15 = vld [vmem:[#allocation3 + $0x10] sm:$0xff] }
 0x2af   : > { %4325 = vmatprep.subr.bf16.mxu1 %v6162_v14 }
 0x2b2   : > { %4327 = vmatpush1.bf16.msra.mxu1 %v6172_v16  ;;  %v6387_v16 = vstv %s777_s11 }
 0x2b3   : > { %4329 = vmatprep.subr.bf16.mxu1 %v6205_v33  ;;  %7503 = vst [vmem:[#allocation100_spill] sm:$0xff] %v6387_v16 }
 0x2b6   : > { %4331 = vmatpush1.bf16.msra.mxu1 %v6217_v41 }
 0x2b7   : > { %4333 = vmatprep.subr.bf16.mxu1 %v6230_v55 }
 0x2ba   : > { %4335 = vmatpush1.bf16.msra.mxu1 %v6233_v26 }
 0x2bb   : > { %4337 = vmatprep.subr.bf16.mxu1 %v6245_v47 }
 0x2be   : > { %4339 = vmatpush1.bf16.msra.mxu1 %v6254_v61 }
 0x2bf   : > { %4341 = vmatprep.subr.bf16.mxu1 %v6265_v21 }
 0x2c2   : > { %4343 = vmatpush1.bf16.msra.mxu1 %v6274_v4 }
 0x2c3   : > { %4345 = vmatprep.subr.bf16.mxu1 %v6285_v52  ;;  %v780_v52 = vld [vmem:[%s6375_s0] sm:$0xff] }
 0x2c4   : > { %v6384_v47 = vcombine.high %v780_v52, %v780_v52 }
 0x2c6   : > { %4347 = vmatpush1.bf16.msra.mxu1 %v6294_v46  ;;  %v7499_v46 = vld [vmem:[#allocation6_spill] sm:$0xff]  ;;  %7502 = vst [vmem:[#allocation99_spill] sm:$0xff] %v6384_v47 }
 0x2c7   : > { %4349 = vmatprep.subr.bf16.mxu1 %v6305_v9  ;;  %v786_v9 = vsub.s32 0, %v7499_v46 }
 0x2ca   : > { %4351 = vmatpush1.bf16.msra.mxu1 %v6314_v30  ;;  %v782_v30 = vld [vmem:[%s771_s27] sm:$0x3] }
 0x2cb   : > { %4353 = vmatprep.subr.bf16.mxu1 %v6321_v1  ;;  %v790_v1 = vsub.s32 1, %v7499_v46  ;;  %v6380_v4 = vrot.slane %v782_v30, %v786_v9 }
 0x2cd   : > { %7500 = vst [vmem:[#allocation64_spill] sm:$0xff] %v6380_v4  ;;  %v6382_v21 = vrot.slane %v782_v30, %v790_v1  ;;  %vm794_vm3 = vcmp.gt.f32.partialorder %v6380_v4, 0.0  ;;  %v7612_v4 = vld [vmem:[#allocation55_spill] sm:$0xff] }
 0x2cf   : > { %7501 = vst [vmem:[#allocation6_spill] sm:$0xff] %v6382_v21  ;;  %vm795_vm4 = vcmp.gt.f32.partialorder %v6382_v21, 0.0  ;;  %v7610_v21 = vld [vmem:[#allocation53_spill] sm:$0xff] }
 0x2e0   : > { %v1574_v59 = vpop.f32.mrb[12].mxu1 }
 0x2e1   : > { %v1576_v7 = vpop.f32.mrb[13].mxu1 }
 0x2e8   : > { %v1645_v61 = vpop.f32.mrb[8].mxu0 }
 0x2e9   : > { %v1650_v26 = vsub.f32 %v1574_v59, %v1645_v61  ;;  %v1647_v55 = vpop.f32.mrb[9].mxu0 }
 0x2ea   : > { %v1651_v41 = vsub.f32 %v1576_v7, %v1647_v55  ;;  %v1018_v7 = vld [vmem:[#allocation3] sm:$0xff] }
 0x2eb   : > { %v1797_v33 = vsub.f32 %v1650_v26, %v780_v52 }
 0x2ec   : > { %v1798_v46 = vsub.f32 %v1651_v41, %v6384_v47  ;;  %v1820_v14 = vcombine.low %v1650_v26, %v1651_v41  ;;  %v6405_v26 = vpack.c.bf16 %v1025_v57, %v1023_v58  ;;  %v1031_v57 = vld [vmem:[#allocation3 + $0x68] sm:$0xff]  ;;  %v1033_v58 = vld [vmem:[#allocation3 + $0x78] sm:$0xff]  ;;  %v1032_v47 = vld [vmem:[#allocation3 + $0x70] sm:$0xff] }
 0x2ed   : > { %v1799_v1 = vsel %vm794_vm3, %v1797_v33, 0.0  ;;  %v6403_v33 = vpack.c.bf16 %v1020_v15, %v1018_v7  ;;  %v1026_v15 = vld [vmem:[#allocation3 + $0x40] sm:$0xff] }
 0x2ee   : > { %v1802_v30 = vmul.f32 %v6387_v16, %v1799_v1  ;;  %v1800_v61 = vsel %vm795_vm4, %v1798_v46, 0.0  ;;  %7505 = vst [vmem:[#allocation102_spill] sm:$0xff] %v6405_v26  ;;  %v1022_v1 = vld [vmem:[#allocation3 + $0x20] sm:$0xff]  ;;  %v1024_v46 = vld [vmem:[#allocation3 + $0x30] sm:$0xff] }
 0x2ef   : > { %v1803_v9 = vmul.f32 %v6387_v16, %v1800_v61  ;;  %7504 = vst [vmem:[#allocation101_spill] sm:$0xff] %v6403_v33  ;;  %v1030_v7 = vld [vmem:[#allocation3 + $0x60] sm:$0xff] }
 0x2f1   : > { %v1815_v59 = vcombine.low %v1802_v30, %v1803_v9  ;;  %v1027_v30 = vld [vmem:[#allocation3 + $0x48] sm:$0xff]  ;;  %v1028_v9 = vld [vmem:[#allocation3 + $0x50] sm:$0xff] }
 0x2f3   : > { %v1817_v55 = vsub.f32 %v780_v52, %v1815_v59  ;;  %v1029_v52 = vld [vmem:[#allocation3 + $0x58] sm:$0xff]  ;;  %v6416_v59 = vpack.c.bf16 %v1028_v9, %v1026_v15  ;;  %v1039_v15 = vld [vmem:[#allocation3 + $0xa8] sm:$0xff] }
 0x2f4   : > { %v6413_v61 = vpack.c.bf16 %v1029_v52, %v1027_v30  ;;  %v6422_v30 = vpack.c.bf16 %v1032_v47, %v1030_v7  ;;  %v1041_v9 = vld [vmem:[#allocation3 + $0xb8] sm:$0xff]  ;;  %v1043_v47 = vld [vmem:[#allocation3 + $0xc8] sm:$0xff] }
 0x2f5   : > { %v6397_v43 = vsub.f32 %v1817_v55, %v1820_v14  ;;  %v6410_v14 = vpack.c.bf16 %v1024_v46, %v1022_v1  ;;  %7508 = vst [vmem:[#allocation105_spill] sm:$0xff] %v6416_v59  ;;  %v6419_v55 = vpack.c.bf16 %v1033_v58, %v1031_v57  ;;  %v1035_v1 = vld [vmem:[#allocation3 + $0x88] sm:$0xff]  ;;  %v1037_v46 = vld [vmem:[#allocation3 + $0x98] sm:$0xff]  ;;  %v6428_v57 = vpack.c.bf16 %v1036_v39, %v1034_v40 }
 0x2f6   : > { %7507 = vst [vmem:[#allocation104_spill] sm:$0xff] %v6413_v61  ;;  %7510 = vst [vmem:[#allocation107_spill] sm:$0xff] %v6422_v30  ;;  %v6425_v52 = vpack.c.bf16 %v1037_v46, %v1035_v1  ;;  %v6431_v58 = vpack.c.bf16 %v1041_v9, %v1039_v15  ;;  %v1045_v7 = vld [vmem:[#allocation3 + $0xd8] sm:$0xff]  ;;  %v6434_v1 = vpack.c.bf16 %v1040_v3, %v1038_v22  ;;  %v1047_v39 = vld [vmem:[#allocation3 + $0xe8] sm:$0xff] }
 0x2f7   : > { %v6401_v41 = vcombine.high %v6397_v43, %v6397_v43  ;;  %7506 = vst [vmem:[#allocation103_spill] sm:$0xff] %v6410_v14  ;;  %7509 = vst [vmem:[#allocation106_spill] sm:$0xff] %v6419_v55  ;;  %v6437_v46 = vpack.c.bf16 %v1045_v7, %v1043_v47  ;;  %v1049_v40 = vld [vmem:[#allocation3 + $0xf8] sm:$0xff]  ;;  %v6440_v15 = vpack.c.bf16 %v1044_v53, %v1042_v12  ;;  %v1051_v3 = vld [vmem:[#allocation3 + $0x108] sm:$0xff] }
 0x2f8   : > { %7511 = vst [vmem:[#allocation108_spill] sm:$0xff] %v6425_v52  ;;  %7512 = vst [vmem:[#allocation109_spill] sm:$0xff] %v6428_v57  ;;  %v6443_v9 = vpack.c.bf16 %v1049_v40, %v1047_v39  ;;  %v1053_v22 = vld [vmem:[#allocation3 + $0x118] sm:$0xff]  ;;  %v6446_v47 = vpack.c.bf16 %v1048_v37, %v1046_v63  ;;  %v1055_v53 = vld [vmem:[#allocation3 + $0x128] sm:$0xff]  ;;  %v6452_v39 = vpack.c.bf16 %v1052_v34, %v1050_v45 }
 0x2f9   : > { %1900 = vmatprep.mubr.f32.mxu0 %v6401_v41  ;;  %7513 = vst [vmem:[#allocation110_spill] sm:$0xff] %v6431_v58  ;;  %7514 = vst [vmem:[#allocation111_spill] sm:$0xff] %v6434_v1  ;;  %v6449_v7 = vpack.c.bf16 %v1053_v22, %v1051_v3  ;;  %v1057_v12 = vld [vmem:[#allocation3 + $0x138] sm:$0xff]  ;;  %v1059_v37 = vld [vmem:[#allocation3 + $0x148] sm:$0xff]  ;;  %v6458_v3 = vpack.c.bf16 %v1056_v24, %v1054_v18 }
 0x2fa   : > { %1901 = vmatmul.mubr.f32.vlgmr.msra.gmra.mrb[10].mxu0 %v6397_v43  ;;  %7515 = vst [vmem:[#allocation112_spill] sm:$0xff] %v6437_v46  ;;  %7516 = vst [vmem:[#allocation113_spill] sm:$0xff] %v6440_v15  ;;  %v6455_v40 = vpack.c.bf16 %v1057_v12, %v1055_v53  ;;  %v1061_v63 = vld [vmem:[#allocation3 + $0x158] sm:$0xff]  ;;  %v1063_v34 = vld [vmem:[#allocation3 + $0x168] sm:$0xff]  ;;  %v6464_v53 = vpack.c.bf16 %v1060_v8, %v1058_v20 }
 0x2fb   : > { %4227 = vmatpush1.bf16.msra.mxu0 %v6403_v33  ;;  %7517 = vst [vmem:[#allocation114_spill] sm:$0xff] %v6443_v9  ;;  %7518 = vst [vmem:[#allocation115_spill] sm:$0xff] %v6446_v47  ;;  %v6461_v22 = vpack.c.bf16 %v1061_v63, %v1059_v37  ;;  %v1065_v45 = vld [vmem:[#allocation3 + $0x178] sm:$0xff]  ;;  %v1067_v24 = vld [vmem:[#allocation3 + $0x188] sm:$0xff]  ;;  %v6470_v37 = vpack.c.bf16 %v1064_v28, %v1062_v27 }
 0x2fc   : > { %4229 = vmatprep.subr.bf16.mxu0 %v6405_v26  ;;  %7519 = vst [vmem:[#allocation116_spill] sm:$0xff] %v6449_v7  ;;  %7520 = vst [vmem:[#allocation117_spill] sm:$0xff] %v6452_v39  ;;  %v6467_v12 = vpack.c.bf16 %v1065_v45, %v1063_v34  ;;  %v1069_v18 = vld [vmem:[#allocation3 + $0x198] sm:$0xff]  ;;  %v1071_v8 = vld [vmem:[#allocation3 + $0x1a8] sm:$0xff]  ;;  %v6476_v34 = vpack.c.bf16 %v1068_v51, %v1066_v49 }
 0x2fd   : > { %7521 = vst [vmem:[#allocation118_spill] sm:$0xff] %v6455_v40  ;;  %7522 = vst [vmem:[#allocation119_spill] sm:$0xff] %v6458_v3  ;;  %v6473_v63 = vpack.c.bf16 %v1069_v18, %v1067_v24  ;;  %v1073_v20 = vld [vmem:[#allocation3 + $0x1b8] sm:$0xff]  ;;  %v1075_v28 = vld [vmem:[#allocation3 + $0x1c8] sm:$0xff]  ;;  %v6482_v24 = vpack.c.bf16 %v1072_v10, %v1070_v32 }
 0x2fe   : > { %7523 = vst [vmem:[#allocation120_spill] sm:$0xff] %v6461_v22  ;;  %7524 = vst [vmem:[#allocation121_spill] sm:$0xff] %v6464_v53  ;;  %v6479_v45 = vpack.c.bf16 %v1073_v20, %v1071_v8  ;;  %v1077_v27 = vld [vmem:[#allocation3 + $0x1d8] sm:$0xff]  ;;  %v1076_v49 = vld [vmem:[#allocation3 + $0x1d0] sm:$0xff] }
 0x2ff   : > { %4231 = vmatpush1.bf16.msra.mxu0 %v6410_v14  ;;  %7525 = vst [vmem:[#allocation122_spill] sm:$0xff] %v6467_v12  ;;  %7526 = vst [vmem:[#allocation123_spill] sm:$0xff] %v6470_v37  ;;  %v6485_v18 = vpack.c.bf16 %v1077_v27, %v1075_v28  ;;  %v1079_v51 = vld [vmem:[#allocation3 + $0x1e8] sm:$0xff]  ;;  %v6488_v8 = vpack.c.bf16 %v1076_v49, %v1074_v0  ;;  %v1080_v10 = vld [vmem:[#allocation3 + $0x1f0] sm:$0xff] }
 0x300   : > { %4233 = vmatprep.subr.bf16.mxu0 %v6413_v61  ;;  %7527 = vst [vmem:[#allocation124_spill] sm:$0xff] %v6473_v63  ;;  %7528 = vst [vmem:[#allocation125_spill] sm:$0xff] %v6476_v34  ;;  %v6491_v20 = vpack.c.bf16 %v1081_v5, %v1079_v51  ;;  %v6494_v32 = vpack.c.bf16 %v1080_v10, %v1078_v35  ;;  %v6503_v0 = vld [vmem:[%s767_s25] sm:$0xff] }
 0x301   : > { %7529 = vst [vmem:[#allocation126_spill] sm:$0xff] %v6479_v45  ;;  %7530 = vst [vmem:[#allocation127_spill] sm:$0xff] %v6482_v24  ;;  %v6507_v5 = vcombine.high %v6503_v0, %v6503_v0 }
 0x302   : > { %7531 = vst [vmem:[#allocation128_spill] sm:$0xff] %v6485_v18  ;;  %7532 = vst [vmem:[#allocation129_spill] sm:$0xff] %v6488_v8 }
 0x303   : > { %4235 = vmatpush1.bf16.msra.mxu0 %v6416_v59  ;;  %7533 = vst [vmem:[#allocation130_spill] sm:$0xff] %v6491_v20  ;;  %7534 = vst [vmem:[#allocation131_spill] sm:$0xff] %v6494_v32 }
 0x304   : > { %4237 = vmatprep.subr.bf16.mxu0 %v6419_v55  ;;  %7536 = vst [vmem:[#allocation132_spill] sm:$0xff] %v6503_v0  ;;  %7537 = vst [vmem:[#allocation133_spill] sm:$0xff] %v6507_v5 }
 0x307   : > { %4239 = vmatpush1.bf16.msra.mxu0 %v6422_v30 }
 0x308   : > { %4241 = vmatprep.subr.bf16.mxu0 %v6425_v52 }
 0x30b   : > { %4243 = vmatpush1.bf16.msra.mxu0 %v6428_v57 }
 0x30c   : > { %4245 = vmatprep.subr.bf16.mxu0 %v6431_v58 }
 0x30f   : > { %4247 = vmatpush1.bf16.msra.mxu0 %v6434_v1 }
 0x310   : > { %4249 = vmatprep.subr.bf16.mxu0 %v6437_v46 }
 0x313   : > { %4251 = vmatpush1.bf16.msra.mxu0 %v6440_v15 }
 0x314   : > { %4253 = vmatprep.subr.bf16.mxu0 %v6443_v9 }
 0x317   : > { %4255 = vmatpush1.bf16.msra.mxu0 %v6446_v47 }
 0x318   : > { %4257 = vmatprep.subr.bf16.mxu0 %v6449_v7 }
 0x31b   : > { %4259 = vmatpush1.bf16.msra.mxu0 %v6452_v39 }
 0x31c   : > { %4261 = vmatprep.subr.bf16.mxu0 %v6455_v40 }
 0x31f   : > { %4263 = vmatpush1.bf16.msra.mxu0 %v6458_v3 }
 0x320   : > { %4265 = vmatprep.subr.bf16.mxu0 %v6461_v22 }
 0x323   : > { %4267 = vmatpush1.bf16.msra.mxu0 %v6464_v53 }
 0x324   : > { %4269 = vmatprep.subr.bf16.mxu0 %v6467_v12 }
 0x327   : > { %4271 = vmatpush1.bf16.msra.mxu0 %v6470_v37 }
 0x328   : > { %4273 = vmatprep.subr.bf16.mxu0 %v6473_v63 }
 0x32b   : > { %4275 = vmatpush1.bf16.msra.mxu0 %v6476_v34 }
 0x32c   : > { %4277 = vmatprep.subr.bf16.mxu0 %v6479_v45 }
 0x32f   : > { %4279 = vmatpush1.bf16.msra.mxu0 %v6482_v24 }
 0x330   : > { %4281 = vmatprep.subr.bf16.mxu0 %v6485_v18 }
 0x333   : > { %4283 = vmatpush1.bf16.msra.mxu0 %v6488_v8 }
 0x334   : > { %4285 = vmatprep.subr.bf16.mxu0 %v6491_v20 }
 0x337   : > { %4287 = vmatpush1.bf16.msra.mxu0 %v6494_v32 }
 0x360   : > { %v1789_v28 = vpop.f32.mrb[14].mxu1 }
 0x361   : > { %v1807_v27 = vsub.f32 %v1789_v28, %v6503_v0  ;;  %v1791_v35 = vpop.f32.mrb[15].mxu1 }
 0x362   : > { %v1808_v49 = vsub.f32 %v1791_v35, %v6507_v5  ;;  %v1830_v51 = vcombine.low %v1789_v28, %v1791_v35  ;;  %v7538_v28 = vmov 0.0   ;;  %v7563_v5 = vld [vmem:[#allocation20_spill] sm:$0xff] }
 0x363   : > { %v1809_v10 = vsel %vm794_vm3, %v1807_v27, 0.0  ;;  %v6588_v27 = vld [vmem:[%s7077_s13 + $0x18] sm:$0xff] }
 0x364   : > { %v1811_v31 = vmul.f32 %v1809_v10, %v6387_v16  ;;  %v1810_v29 = vsel %vm795_vm4, %v1808_v49, 0.0  ;;  %7544 = vst [vmem:[#allocation139_spill] sm:$0xff] %v6588_v27  ;;  %v6613_v10 = vld [vmem:[%s7078_s14 + $0x8] sm:$0xff] }
 0x365   : > { %v1812_v25 = vmul.f32 %v1810_v29, %v6387_v16  ;;  %7548 = vst [vmem:[#allocation143_spill] sm:$0xff] %v6613_v10  ;;  %v7611_v16 = vld [vmem:[#allocation54_spill] sm:$0xff] }
 0x367   : > { %v1825_v23 = vcombine.low %v1811_v31, %v1812_v25  ;;  %v6560_v31 = vld [vmem:[%s7077_s13] sm:$0xff] }
 0x368   : > { %7541 = vst [vmem:[#allocation136_spill] sm:$0xff] %v6560_v31 }
 0x369   : > { %v1827_v19 = vsub.f32 %v6503_v0, %v1825_v23  ;;  %v7564_v0 = vld [vmem:[#allocation57_spill] sm:$0xff] }
 0x36b   : > { %v1832_v17 = vsub.f32 %v1827_v19, %v1830_v51  ;;  %v6600_v51 = vld [vmem:[%s7078_s14] sm:$0xff] }
 0x36c   : > { %7547 = vst [vmem:[#allocation142_spill] sm:$0xff] %v6600_v51 }
 0x36d   : > { %v1908_v13 = vcombine.high %v1832_v17, %v1832_v17 }
 0x36f   : > { %1974 = vmatprep.mubr.f32.mxu0 %v1908_v13  ;;  %2047 = vmatprep.mubr.f32.mxu1 %v1908_v13 }
 0x370   : > { %1975 = vmatmul.mubr.f32.vlgmr.msra.gmra.mrb[12].mxu0 %v1832_v17  ;;  %2048 = vmatmul.mubr.f32.vlgmr.msra.gmra.mrb[16].mxu1 %v1832_v17 }
 0x371   : > { %4355 = vmatpush1.bf16.msra.mxu1 %v6403_v33  ;;  %2118 = vmatprep.mubr.f32.mxu1 %v6401_v41  ;;  %v6580_v41 = vld [vmem:[%s7077_s13 + $0x10] sm:$0xff] }
 0x372   : > { %4357 = vmatprep.subr.bf16.mxu1 %v6405_v26  ;;  %2316 = vmatprep.mubr.f32.mxu0 %v7538_v28  ;;  %7543 = vst [vmem:[#allocation138_spill] sm:$0xff] %v6580_v41 }
 0x375   : > { %4359 = vmatpush1.bf16.msra.mxu1 %v6410_v14 }
 0x376   : > { %4361 = vmatprep.subr.bf16.mxu1 %v6413_v61 }
 0x379   : > { %4363 = vmatpush1.bf16.msra.mxu1 %v6416_v59 }
 0x37a   : > { %4365 = vmatprep.subr.bf16.mxu1 %v6419_v55 }
 0x37d   : > { %4367 = vmatpush1.bf16.msra.mxu1 %v6422_v30 }
 0x37e   : > { %4369 = vmatprep.subr.bf16.mxu1 %v6425_v52  ;;  %v6668_v52 = vpop.permute.xlu1 %2348 }
 0x381   : > { %4371 = vmatpush1.bf16.msra.mxu1 %v6428_v57 }
 0x382   : > { %4373 = vmatprep.subr.bf16.mxu1 %v6431_v58 }
 0x385   : > { %4375 = vmatpush1.bf16.msra.mxu1 %v6434_v1 }
 0x386   : > { %4377 = vmatprep.subr.bf16.mxu1 %v6437_v46 }
 0x389   : > { %4379 = vmatpush1.bf16.msra.mxu1 %v6440_v15  ;;  %v6665_v15 = vpop.permute.xlu0 %2343 }
 0x38a   : > { %4381 = vmatprep.subr.bf16.mxu1 %v6443_v9 }
 0x38d   : > { %4383 = vmatpush1.bf16.msra.mxu1 %v6446_v47 }
 0x38e   : > { %4385 = vmatprep.subr.bf16.mxu1 %v6449_v7 }
 0x391   : > { %4387 = vmatpush1.bf16.msra.mxu1 %v6452_v39 }
 0x392   : > { %4389 = vmatprep.subr.bf16.mxu1 %v6455_v40 }
 0x395   : > { %4391 = vmatpush1.bf16.msra.mxu1 %v6458_v3 }
 0x396   : > { %4393 = vmatprep.subr.bf16.mxu1 %v6461_v22 }
 0x399   : > { %4395 = vmatpush1.bf16.msra.mxu1 %v6464_v53 }
 0x39a   : > { %4397 = vmatprep.subr.bf16.mxu1 %v6467_v12 }
 0x39d   : > { %4399 = vmatpush1.bf16.msra.mxu1 %v6470_v37 }
 0x39e   : > { %4401 = vmatprep.subr.bf16.mxu1 %v6473_v63 }
 0x3a1   : > { %4403 = vmatpush1.bf16.msra.mxu1 %v6476_v34 }
 0x3a2   : > { %4405 = vmatprep.subr.bf16.mxu1 %v6479_v45  ;;  %v7570_v45 = vld [vmem:[#allocation65_spill] sm:$0xff] }
 0x3a5   : > { %4407 = vmatpush1.bf16.msra.mxu1 %v6482_v24  ;;  %v7569_v24 = vld [vmem:[#allocation62_spill] sm:$0xff] }
 0x3a6   : > { %4409 = vmatprep.subr.bf16.mxu1 %v6485_v18  ;;  %v7568_v18 = vld [vmem:[#allocation61_spill] sm:$0xff] }
 0x3a9   : > { %4411 = vmatpush1.bf16.msra.mxu1 %v6488_v8  ;;  %v7567_v8 = vld [vmem:[#allocation60_spill] sm:$0xff] }
 0x3aa   : > { %4413 = vmatprep.subr.bf16.mxu1 %v6491_v20  ;;  %v7566_v20 = vld [vmem:[#allocation59_spill] sm:$0xff] }
 0x3ad   : > { %4415 = vmatpush1.bf16.msra.mxu1 %v6494_v32  ;;  %v7565_v32 = vld [vmem:[#allocation58_spill] sm:$0xff] }
 0x3b0   : > { %2119 = vmatmul.mubr.f32.vlgmr.msra.gmra.mrb[16].mxu1 %v6397_v43  ;;  %v6572_v43 = vld [vmem:[%s7077_s13 + $0x8] sm:$0xff] }
 0x3b1   : > { %2209 = vmatprep.mubr.f32.mxu1 %v7538_v28  ;;  %7542 = vst [vmem:[#allocation137_spill] sm:$0xff] %v6572_v43 }
 0x3cd   : > { %v1902_v13 = vpop.f32.mrb[10].mxu0 }
 0x3ce   : > { %v1904_v17 = vpop.f32.mrb[11].mxu0 }
 0x443   : > { %v1976_v19 = vpop.f32.mrb[12].mxu0 }
 0x444   : > { %v6553_v23 = vsub.f32 %v1902_v13, %v1976_v19  ;;  %v1978_v25 = vpop.f32.mrb[13].mxu0  ;;  %v6623_v13 = vld [vmem:[%s7078_s14 + $0x10] sm:$0xff] }
 0x445   : > { %v6555_v29 = vsub.f32 %v1904_v17, %v1978_v25  ;;  %7549 = vst [vmem:[#allocation144_spill] sm:$0xff] %v6623_v13  ;;  %v6633_v17 = vld [vmem:[%s7078_s14 + $0x18] sm:$0xff]  ;;  %v7551_v19 = vld [vmem:[#allocation8_spill] sm:$0xff] }
 0x446   : > { %7539 = vst [vmem:[#allocation134_spill] sm:$0xff] %v6553_v23  ;;  %7550 = vst [vmem:[#allocation145_spill] sm:$0xff] %v6633_v17  ;;  %v7552_v25 = vld [vmem:[#allocation9_spill] sm:$0xff] }
 0x447   : > { %7540 = vst [vmem:[#allocation135_spill] sm:$0xff] %v6555_v29  ;;  %3846 = vmatprep.subr.msk.mxu0 %vm2138_vm5, %v6555_v29  ;;  %7571 = vst [vmem:[#allocation8_spill] sm:$0xff] %v6665_v15 }
 0x448   : > { %3847 = vmatpush1.msk.msra.mxu0 %vm2138_vm5, %v6553_v23  ;;  %7572 = vst [vmem:[#allocation9_spill] sm:$0xff] %v6668_v52 }
 0x449   : > { %3848 = vmatmul.mubr.msk.f32.vlgmr.msra.gmra.mrb[14].mxu0 %vm2125_vm6, %v6560_v31  ;;  %v7556_v31 = vld [vmem:[#allocation13_spill] sm:$0xff] }
 0x44a   : > { %2322 = vmatprep.mubr.f32.mxu0 %v7538_v28 }
 0x44d   : > { %3849 = vmatmul.mubr.msk.f32.gmra.mrb[16].mxu0 %vm2125_vm6, %v6572_v43  ;;  %v7555_v43 = vld [vmem:[#allocation12_spill] sm:$0xff] }
 0x44e   : > { %2328 = vmatprep.mubr.f32.mxu0 %v7538_v28 }
 0x451   : > { %3850 = vmatmul.mubr.msk.f32.gmra.mrb[18].mxu0 %vm2125_vm6, %v6580_v41  ;;  %v7554_v41 = vld [vmem:[#allocation11_spill] sm:$0xff] }
 0x452   : > { %2334 = vmatprep.mubr.f32.mxu0 %v7538_v28 }
 0x455   : > { %3851 = vmatmul.mubr.msk.f32.gmra.mrb[20].mxu0 %vm2125_vm6, %v6588_v27  ;;  %v7553_v27 = vld [vmem:[#allocation10_spill] sm:$0xff] }
 0x456   : > { %2449 = vmatprep.mubr.f32.mxu0 %v7538_v28 }
 0x483   : > { %v6593_v35 = vpop.f32.mrb[16].mxu1 }
 0x484   : > { %7545 = vst [vmem:[#allocation140_spill] sm:$0xff] %v6593_v35  ;;  %v6595_v49 = vpop.f32.mrb[17].mxu1 }
 0x485   : > { %7546 = vst [vmem:[#allocation141_spill] sm:$0xff] %v6595_v49  ;;  %3840 = vmatprep.subr.msk.mxu1 %vm2138_vm5, %v6595_v49  ;;  %v7561_v49 = vld [vmem:[#allocation18_spill] sm:$0xff] }
 0x486   : > { %3841 = vmatpush1.msk.msra.mxu1 %vm2138_vm5, %v6593_v35  ;;  %v7562_v35 = vld [vmem:[#allocation19_spill] sm:$0xff] }
 0x487   : > { %3842 = vmatmul.mubr.msk.f32.vlgmr.msra.gmra.mrb[18].mxu1 %vm2125_vm6, %v6600_v51  ;;  %4505 = vmatprep.subr.bf16.mxu1 %v5365_v36  ;;  %v7560_v51 = vld [vmem:[#allocation17_spill] sm:$0xff] }
 0x488   : > { %2215 = vmatprep.mubr.f32.mxu1 %v7538_v28  ;;  %4507 = vmatpush1.bf16.msra.mxu1 %v5370_v38 }
 0x489   : > { %4509 = vmatprep.subr.bf16.mxu1 %v5383_v42 }
 0x48b   : > { %3843 = vmatmul.mubr.msk.f32.gmra.mrb[20].mxu1 %vm2125_vm6, %v6613_v10  ;;  %v7559_v10 = vld [vmem:[#allocation16_spill] sm:$0xff] }
 0x48c   : > { %2221 = vmatprep.mubr.f32.mxu1 %v7538_v28  ;;  %4511 = vmatpush1.bf16.msra.mxu1 %v5388_v44 }
 0x48d   : > { %4513 = vmatprep.subr.bf16.mxu1 %v5401_v48 }
 0x48f   : > { %3844 = vmatmul.mubr.msk.f32.gmra.mrb[22].mxu1 %vm2125_vm6, %v6623_v13  ;;  %v7558_v13 = vld [vmem:[#allocation15_spill] sm:$0xff] }
 0x490   : > { %2227 = vmatprep.mubr.f32.mxu1 %v7538_v28  ;;  %4515 = vmatpush1.bf16.msra.mxu1 %v5406_v50 }
 0x491   : > { %4517 = vmatprep.subr.bf16.mxu1 %v5419_v54 }
 0x493   : > { %3845 = vmatmul.mubr.msk.f32.gmra.mrb[24].mxu1 %vm2125_vm6, %v6633_v17  ;;  %v7557_v17 = vld [vmem:[#allocation14_spill] sm:$0xff] }
 0x494   : > { %4519 = vmatpush1.bf16.msra.mxu1 %v5424_v56 }
 0x495   : > { %4521 = vmatprep.subr.bf16.mxu1 %v5437_v60 }
 0x498   : > { %4523 = vmatpush1.bf16.msra.mxu1 %v5442_v62 }
 0x499   : > { %4525 = vmatprep.subr.bf16.mxu1 %v5455_v2 }
 0x49c   : > { %4527 = vmatpush1.bf16.msra.mxu1 %v5460_v6 }
 0x49d   : > { %4529 = vmatprep.subr.bf16.mxu1 %v5473_v11 }
 0x4a0   : > { %4531 = vmatpush1.bf16.msra.mxu1 %v7551_v19 }
 0x4a1   : > { %4533 = vmatprep.subr.bf16.mxu1 %v7552_v25 }
 0x4a4   : > { %4535 = vmatpush1.bf16.msra.mxu1 %v7553_v27 }
 0x4a5   : > { %4537 = vmatprep.subr.bf16.mxu1 %v7554_v41 }
 0x4a8   : > { %4539 = vmatpush1.bf16.msra.mxu1 %v7555_v43 }
 0x4a9   : > { %4541 = vmatprep.subr.bf16.mxu1 %v7556_v31 }
 0x4ac   : > { %4543 = vmatpush1.bf16.msra.mxu1 %v7557_v17 }
 0x4ad   : > { %4545 = vmatprep.subr.bf16.mxu1 %v7558_v13 }
 0x4b0   : > { %4547 = vmatpush1.bf16.msra.mxu1 %v7559_v10 }
 0x4b1   : > { %4549 = vmatprep.subr.bf16.mxu1 %v7560_v51 }
 0x4b4   : > { %4551 = vmatpush1.bf16.msra.mxu1 %v7561_v49 }
 0x4b5   : > { %4553 = vmatprep.subr.bf16.mxu1 %v7562_v35  ;;  %v7615_v35 = vld [vmem:[#allocation66_spill] sm:$0xff] }
 0x4b8   : > { %4555 = vmatpush1.bf16.msra.mxu1 %v7563_v5 }
 0x4b9   : > { %4557 = vmatprep.subr.bf16.mxu1 %v7564_v0 }
 0x4bc   : > { %4559 = vmatpush1.bf16.msra.mxu1 %v7565_v32 }
 0x4bd   : > { %4561 = vmatprep.subr.bf16.mxu1 %v7566_v20 }
 0x4c0   : > { %4563 = vmatpush1.bf16.msra.mxu1 %v7567_v8  ;;  %v7614_v8 = vld [vmem:[#allocation63_spill] sm:$0xff] }
 0x4c1   : > { %4565 = vmatprep.subr.bf16.mxu1 %v7568_v18 }
 0x4c4   : > { %4567 = vmatpush1.bf16.msra.mxu1 %v7569_v24 }
 0x4c5   : > { %4697 = vmatprep.subr.bf16.mxu1 %v7570_v45  ;;  %v7613_v45 = vld [vmem:[#allocation56_spill] sm:$0xff] }
 0x51c   : > { %v2318_v34 = vpop.f32.mrb[14].mxu0 }
 0x51d   : > { %v2320_v63 = vpop.f32.mrb[15].mxu0 }
 0x520   : > { %v2324_v37 = vpop.f32.mrb[16].mxu0 }
 0x521   : > { %v2326_v12 = vpop.f32.mrb[17].mxu0 }
 0x524   : > { %v2330_v53 = vpop.f32.mrb[18].mxu0 }
 0x525   : > { %v2332_v22 = vpop.f32.mrb[19].mxu0 }
 0x528   : > { %v2336_v3 = vpop.f32.mrb[20].mxu0 }
 0x529   : > { %v2338_v40 = vpop.f32.mrb[21].mxu0 }
 0x55a   : > { %v2211_v39 = vpop.f32.mrb[18].mxu1 }
 0x55b   : > { %v2319_v7 = vadd.f32 %v2318_v34, %v2211_v39  ;;  %v2213_v47 = vpop.f32.mrb[19].mxu1 }
 0x55c   : > { %v2321_v9 = vadd.f32 %v2320_v63, %v2213_v47 }
 0x55d   : > { %v2361_v1 = vadd.f32 %v6665_v15, %v2319_v7 }
 0x55e   : > { %v2217_v46 = vpop.f32.mrb[20].mxu1  ;;  %v2362_v30 = vadd.f32 %v6665_v15, %v2321_v9  ;;  %v7608_v15 = vld [vmem:[#allocation51_spill] sm:$0xff] }
 0x55f   : > { %v2325_v58 = vadd.f32 %v2324_v37, %v2217_v46  ;;  %v2219_v57 = vpop.f32.mrb[21].mxu1  ;;  %v2369_v39 = vmax.f32 %v2361_v1, 0.0  ;;  %v6673_v46 = vpop.permute.xlu0 %2353 }
 0x560   : > { %v2327_v55 = vadd.f32 %v2326_v12, %v2219_v57  ;;  %v2370_v26 = vmax.f32 %v2362_v30, 0.0  ;;  %7573 = vst [vmem:[#allocation10_spill] sm:$0xff] %v6673_v46 }
 0x561   : > { %v2363_v59 = vadd.f32 %v6668_v52, %v2325_v58  ;;  %v6676_v58 = vpop.permute.xlu1 %2358 }
 0x562   : > { %v2364_v61 = vadd.f32 %v6668_v52, %v2327_v55  ;;  %v2223_v14 = vpop.f32.mrb[22].mxu1  ;;  %7574 = vst [vmem:[#allocation11_spill] sm:$0xff] %v6676_v58  ;;  %v7607_v52 = vld [vmem:[#allocation50_spill] sm:$0xff] }
 0x563   : > { %v2371_v34 = vmax.f32 %v2363_v59, 0.0  ;;  %v2331_v47 = vadd.f32 %v2330_v53, %v2223_v14  ;;  %v2225_v63 = vpop.f32.mrb[23].mxu1 }
 0x564   : > { %v2372_v33 = vmax.f32 %v2364_v61, 0.0  ;;  %v2333_v29 = vadd.f32 %v2332_v22, %v2225_v63 }
 0x565   : > { %v4418_v7 = vpack.c.bf16 %v2371_v34, %v2369_v39  ;;  %v2365_v9 = vadd.f32 %v6673_v46, %v2331_v47 }
 0x566   : > { %v2229_v37 = vpop.f32.mrb[24].mxu1  ;;  %v4416_v23 = vpack.c.bf16 %v2372_v33, %v2370_v26  ;;  %v2366_v55 = vadd.f32 %v6673_v46, %v2333_v29  ;;  %v7606_v46 = vld [vmem:[#allocation49_spill] sm:$0xff] }
 0x567   : > { %v2337_v57 = vadd.f32 %v2336_v3, %v2229_v37  ;;  %v2231_v12 = vpop.f32.mrb[25].mxu1  ;;  %v2373_v59 = vmax.f32 %v2365_v9, 0.0  ;;  %v6684_v3 = vld [vmem:[%s7080_s16] sm:$0x3] }
 0x568   : > { %v2339_v1 = vadd.f32 %v2338_v40, %v2231_v12  ;;  %4417 = vmatprep.subr.bf16.mxu0 %v4416_v23  ;;  %v2374_v22 = vmax.f32 %v2366_v55, 0.0  ;;  %7575 = vst [vmem:[#allocation12_spill] sm:$0xff] %v6684_v3  ;;  %v5041_v40 = vld.sshfl [vmem:[%s5272_s28] sm:$0x33 pattern:$0x76325410]  ;;  %v6690_v23 = vpop.permute.xlu0 %2379 }
 0x569   : > { %v2367_v14 = vadd.f32 %v6676_v58, %v2337_v57  ;;  %4419 = vmatpush1.bf16.msra.mxu0 %v4418_v7  ;;  %7576 = vst [vmem:[#allocation13_spill] sm:$0xff] %v6690_v23  ;;  %v2464_v39 = vcombine.high %v5041_v40, %v5041_v40  ;;  %v5029_v9 = vld [vmem:[%s7071_s7] sm:$0xff]  ;;  %v7577_v57 = vld [vmem:[#allocation7_spill] sm:$0xff] }
 0x56a   : > { %v2368_v61 = vadd.f32 %v6676_v58, %v2339_v1  ;;  %v5030_v12 = vld.sshfl [vmem:[%s5266_s26] sm:$0x33 pattern:$0x76325410]  ;;  %v5031_v55 = vld [vmem:[%s7071_s7 + $0x8] sm:$0xff]  ;;  %v5032_v1 = vld [vmem:[%s7071_s7 + $0x10] sm:$0xff] }
 0x56b   : > { %v2375_v30 = vmax.f32 %v2367_v14, 0.0  ;;  %v5033_v14 = vld [vmem:[%s7071_s7 + $0x18] sm:$0xff]  ;;  %v7605_v58 = vld [vmem:[#allocation48_spill] sm:$0xff] }
 0x56c   : > { %v2376_v33 = vmax.f32 %v2368_v61, 0.0  ;;  %v5034_v61 = vld [vmem:[%s7390_s24] sm:$0xff] }
 0x56d   : > { %v4422_v26 = vpack.c.bf16 %v2375_v30, %v2373_v59  ;;  %v5035_v59 = vld [vmem:[%s7390_s24 + $0x8] sm:$0xff]  ;;  %v5036_v30 = vld [vmem:[%s7390_s24 + $0x10] sm:$0xff] }
 0x56e   : > { %v4420_v53 = vpack.c.bf16 %v2376_v33, %v2374_v22  ;;  %v5037_v22 = vld [vmem:[%s7390_s24 + $0x18] sm:$0xff] }
 0x570   : > { %4421 = vmatprep.subr.bf16.mxu0 %v4420_v53  ;;  %v7578_v53 = vld [vmem:[#allocation21_spill] sm:$0xff] }
 0x571   : > { %4423 = vmatpush1.bf16.msra.mxu0 %v4422_v26 }
 0x574   : > { %3852 = vmatmul.mubr.msk.f32.vlgmr.msra.gmra.mrb[22].mxu0 %vm1354_vm2, %v6684_v3  ;;  %v7604_v3 = vld [vmem:[#allocation47_spill] sm:$0xff] }
 0x575   : > { %2539 = vmatprep.mubr.f32.mxu0 %v7538_v28 }
 0x647   : > { %v2451_v29 = vpop.f32.mrb[22].mxu0 }
 0x648   : > { %v2452_v34 = vadd.f32 %v2451_v29, %v6690_v23  ;;  %v2453_v47 = vpop.f32.mrb[23].mxu0 }
 0x649   : > { %v2454_v63 = vadd.f32 %v2453_v47, %v6690_v23  ;;  %v7603_v23 = vld [vmem:[#allocation46_spill] sm:$0xff] }
 0x64a   : > { %v2467_v37 = vmul.f32 %v5041_v40, %v2452_v34  ;;  %v7579_v34 = vld [vmem:[#allocation22_spill] sm:$0xff] }
 0x64b   : > { %v2468_v7 = vmul.f32 %v2464_v39, %v2454_v63 }
 0x64d   : > { %3853 = vmatprep.subr.msk.mxu0 %vm1105_vm0, %v2468_v7 }
 0x64e   : > { %3854 = vmatpush1.msk.msra.mxu0 %vm1105_vm0, %v2467_v37 }
 0x64f   : > { %3855 = vmatmul.mubr.msk.f32.vlgmr.msra.gmra.mrb[24].mxu0 %vm1092_vm1, %v5029_v9  ;;  %3859 = vmatprep.subr.msk.mxu0 %vm1105_vm0, %v7577_v57 }
 0x650   : > { %2545 = vmatprep.mubr.f32.mxu0 %v7538_v28  ;;  %3860 = vmatpush1.msk.msra.mxu0 %vm1105_vm0, %v5030_v12 }
 0x653   : > { %3856 = vmatmul.mubr.msk.f32.gmra.mrb[26].mxu0 %vm1092_vm1, %v5031_v55 }
 0x654   : > { %2551 = vmatprep.mubr.f32.mxu0 %v7538_v28 }
 0x657   : > { %3857 = vmatmul.mubr.msk.f32.gmra.mrb[28].mxu0 %vm1092_vm1, %v5032_v1 }
 0x658   : > { %2557 = vmatprep.mubr.f32.mxu0 %v7538_v28 }
 0x65b   : > { %3858 = vmatmul.mubr.msk.f32.gmra.mrb[30].mxu0 %vm1092_vm1, %v5033_v14 }
 0x65c   : > { %2628 = vmatprep.mubr.f32.mxu0 %v7538_v28 }
 0x65f   : > { %3861 = vmatmul.mubr.msk.f32.vlgmr.msra.gmra.mrb[24].mxu0 %vm1092_vm1, %v5034_v61 }
 0x660   : > { %2634 = vmatprep.mubr.f32.mxu0 %v7538_v28 }
 0x663   : > { %3862 = vmatmul.mubr.msk.f32.gmra.mrb[26].mxu0 %vm1092_vm1, %v5035_v59  ;;  %v7580_v59 = vld [vmem:[#allocation23_spill] sm:$0xff] }
 0x664   : > { %2640 = vmatprep.mubr.f32.mxu0 %v7538_v28 }
 0x667   : > { %3863 = vmatmul.mubr.msk.f32.gmra.mrb[28].mxu0 %vm1092_vm1, %v5036_v30 }
 0x668   : > { %2646 = vmatprep.mubr.f32.mxu0 %v7538_v28 }
 0x66b   : > { %3864 = vmatmul.mubr.msk.f32.gmra.mrb[30].mxu0 %vm1092_vm1, %v5037_v22 }
 0x66c   : > { %2733 = vmatprep.mubr.f32.mxu0 %v7538_v28 }
 0x732   : > { %v2630_v33 = vpop.f32.mrb[24].mxu0 }
 0x733   : > { %v2632_v26 = vpop.f32.mrb[25].mxu0  ;;  %v2653_v40 = vadd.f32 %v2630_v33, %v7578_v53 }
 0x734   : > { %v2654_v29 = vadd.f32 %v2632_v26, %v7578_v53  ;;  %v7581_v26 = vld [vmem:[#allocation24_spill] sm:$0xff] }
 0x735   : > { %v2661_v37 = vmax.f32 %v2653_v40, 0.0 }
 0x736   : > { %v2636_v39 = vpop.f32.mrb[26].mxu0  ;;  %v2662_v57 = vmax.f32 %v2654_v29, 0.0 }
 0x737   : > { %v2655_v47 = vadd.f32 %v2636_v39, %v7579_v34  ;;  %v2638_v63 = vpop.f32.mrb[27].mxu0 }
 0x738   : > { %v2656_v7 = vadd.f32 %v2638_v63, %v7579_v34 }
 0x739   : > { %v2663_v9 = vmax.f32 %v2655_v47, 0.0 }
 0x73a   : > { %v2664_v12 = vmax.f32 %v2656_v7, 0.0  ;;  %v2642_v55 = vpop.f32.mrb[28].mxu0 }
 0x73b   : > { %v4426_v1 = vpack.c.bf16 %v2663_v9, %v2661_v37  ;;  %v2644_v14 = vpop.f32.mrb[29].mxu0  ;;  %v2657_v30 = vadd.f32 %v2642_v55, %v7580_v59  ;;  %v5038_v9 = vld [vmem:[%s7073_s9] sm:$0xf] }
 0x73c   : > { %v4424_v61 = vpack.c.bf16 %v2664_v12, %v2662_v57  ;;  %v2658_v22 = vadd.f32 %v2644_v14, %v7580_v59  ;;  %v7582_v57 = vld [vmem:[#allocation25_spill] sm:$0xff]  ;;  %v5039_v12 = vld [vmem:[%s7074_s10] sm:$0xf]  ;;  %v7584_v14 = vld [vmem:[#allocation27_spill] sm:$0xff] }
 0x73d   : > { %v2665_v40 = vmax.f32 %v2657_v30, 0.0  ;;  %v7583_v55 = vld [vmem:[#allocation26_spill] sm:$0xff]  ;;  %v7586_v59 = vld [vmem:[#allocation29_spill] sm:$0xff]  ;;  %v7588_v30 = vld [vmem:[#allocation31_spill] sm:$0xff] }
 0x73e   : > { %v2648_v33 = vpop.f32.mrb[30].mxu0  ;;  %4425 = vmatprep.subr.bf16.mxu0 %v4424_v61  ;;  %v2666_v29 = vmax.f32 %v2658_v22, 0.0  ;;  %v7589_v22 = vld [vmem:[#allocation32_spill] sm:$0xff] }
 0x73f   : > { %v2659_v53 = vadd.f32 %v2648_v33, %v7581_v26  ;;  %v2650_v39 = vpop.f32.mrb[31].mxu0  ;;  %4427 = vmatpush1.bf16.msra.mxu0 %v4426_v1  ;;  %v7590_v33 = vld [vmem:[#allocation33_spill] sm:$0xff] }
 0x740   : > { %v2660_v34 = vadd.f32 %v2650_v39, %v7581_v26  ;;  %v7591_v26 = vld [vmem:[#allocation34_spill] sm:$0xff]  ;;  %v7593_v39 = vld [vmem:[#allocation36_spill] sm:$0xff] }
 0x741   : > { %v2667_v47 = vmax.f32 %v2659_v53, 0.0  ;;  %v7592_v53 = vld [vmem:[#allocation35_spill] sm:$0xff] }
 0x742   : > { %v2668_v63 = vmax.f32 %v2660_v34, 0.0  ;;  %v7594_v34 = vld [vmem:[#allocation37_spill] sm:$0xff] }
 0x743   : > { %v4430_v7 = vpack.c.bf16 %v2667_v47, %v2665_v40  ;;  %v7595_v40 = vld [vmem:[#allocation38_spill] sm:$0xff]  ;;  %v7596_v47 = vld [vmem:[#allocation39_spill] sm:$0xff] }
 0x744   : > { %v4428_v37 = vpack.c.bf16 %v2668_v63, %v2666_v29  ;;  %v7597_v29 = vld [vmem:[#allocation40_spill] sm:$0xff]  ;;  %v7598_v63 = vld [vmem:[#allocation41_spill] sm:$0xff] }
 0x746   : > { %4429 = vmatprep.subr.bf16.mxu0 %v4428_v37 }
 0x747   : > { %4431 = vmatpush1.bf16.msra.mxu0 %v4430_v7 }
 0x748   : > { %4433 = vmatprep.subr.bf16.mxu0 %v4424_v61  ;;  %v7585_v61 = vld [vmem:[#allocation28_spill] sm:$0xff] }
 0x74a   : > { %3865 = vmatmul.mubr.msk.f32.vlgmr.msra.gmra.mrb[32].mxu0 %vm1354_vm2, %v5038_v9  ;;  %v7601_v9 = vld [vmem:[#allocation44_spill] sm:$0xff] }
 0x74b   : > { %4435 = vmatpush1.bf16.msra.mxu0 %v4426_v1  ;;  %2804 = vmatprep.mubr.f32.mxu0 %v7538_v28  ;;  %v7587_v1 = vld [vmem:[#allocation30_spill] sm:$0xff]  ;;  %v7609_v28 = vld [vmem:[#allocation52_spill] sm:$0xff] }
 0x74c   : > { %4437 = vmatprep.subr.bf16.mxu0 %v4428_v37  ;;  %v7600_v37 = vld [vmem:[#allocation43_spill] sm:$0xff] }
 0x74f   : > { %4439 = vmatpush1.bf16.msra.mxu0 %v4430_v7  ;;  %v7599_v7 = vld [vmem:[#allocation42_spill] sm:$0xff] }
 0x750   : > { %4441 = vmatprep.subr.bf16.mxu0 %v7582_v57 }
 0x752   : > { %3866 = vmatmul.mubr.msk.f32.vlgmr.msra.gmra.mrb[34].mxu0 %vm1354_vm2, %v5039_v12  ;;  %v7602_v12 = vld [vmem:[#allocation45_spill] sm:$0xff] }
 0x753   : > { %4443 = vmatpush1.bf16.msra.mxu0 %v7583_v55 }
 0x754   : > { %4445 = vmatprep.subr.bf16.mxu0 %v7584_v14 }
 0x757   : > { %4447 = vmatpush1.bf16.msra.mxu0 %v7585_v61 }
 0x758   : > { %4449 = vmatprep.subr.bf16.mxu0 %v7586_v59 }
 0x75b   : > { %4451 = vmatpush1.bf16.msra.mxu0 %v7587_v1 }
 0x75c   : > { %4453 = vmatprep.subr.bf16.mxu0 %v7588_v30 }
 0x75f   : > { %4455 = vmatpush1.bf16.msra.mxu0 %v7589_v22 }
 0x760   : > { %4457 = vmatprep.subr.bf16.mxu0 %v7590_v33 }
 0x763   : > { %4459 = vmatpush1.bf16.msra.mxu0 %v7591_v26 }
 0x764   : > { %4461 = vmatprep.subr.bf16.mxu0 %v7592_v53 }
 0x767   : > { %4463 = vmatpush1.bf16.msra.mxu0 %v7593_v39 }
 0x768   : > { %4465 = vmatprep.subr.bf16.mxu0 %v7594_v34 }
 0x76b   : > { %4467 = vmatpush1.bf16.msra.mxu0 %v7595_v40 }
 0x76c   : > { %4469 = vmatprep.subr.bf16.mxu0 %v7596_v47 }
 0x76f   : > { %4471 = vmatpush1.bf16.msra.mxu0 %v7597_v29 }
 0x770   : > { %4473 = vmatprep.subr.bf16.mxu0 %v7598_v63 }
 0x773   : > { %4475 = vmatpush1.bf16.msra.mxu0 %v7599_v7 }
 0x774   : > { %4477 = vmatprep.subr.bf16.mxu0 %v7600_v37 }
 0x777   : > { %4479 = vmatpush1.bf16.msra.mxu0 %v7601_v9 }
 0x778   : > { %4481 = vmatprep.subr.bf16.mxu0 %v7602_v12 }
 0x77b   : > { %4483 = vmatpush1.bf16.msra.mxu0 %v7603_v23 }
 0x77c   : > { %4485 = vmatprep.subr.bf16.mxu0 %v7604_v3 }
 0x77f   : > { %4487 = vmatpush1.bf16.msra.mxu0 %v7605_v58 }
 0x780   : > { %4489 = vmatprep.subr.bf16.mxu0 %v7606_v46 }
 0x783   : > { %4491 = vmatpush1.bf16.msra.mxu0 %v7607_v52 }
 0x784   : > { %4493 = vmatprep.subr.bf16.mxu0 %v7608_v15 }
 0x787   : > { %4495 = vmatpush1.bf16.msra.mxu0 %v7609_v28 }
 0x788   : > { %4497 = vmatprep.subr.bf16.mxu0 %v7610_v21 }
 0x78b   : > { %4499 = vmatpush1.bf16.msra.mxu0 %v7611_v16 }
 0x78c   : > { %4501 = vmatprep.subr.bf16.mxu0 %v7612_v4 }
 0x78f   : > { %4503 = vmatpush1.bf16.msra.mxu0 %v7613_v45 }
 0x790   : > { %4569 = vmatprep.subr.bf16.mxu0 %v7582_v57 }
 0x81d   : > { %v2735_v24 = vpop.f32.mrb[32].mxu0 }
 0x81e   : > { %v2737_v18 = vpop.f32.mrb[33].mxu0  ;;  %v6794_v32 = vadd.f32 %v2735_v24, %v7614_v8  ;;  %v7616_v24 = vld [vmem:[#allocation67_spill] sm:$0xff] }
 0x81f   : > { %v6791_v20 = vadd.f32 %v2737_v18, %v7614_v8  ;;  %v7617_v8 = vld [vmem:[#allocation68_spill] sm:$0xff] }
 0x821   : > { %2875 = vmatprep.mubr.f32.mxu0 %v6791_v20 }
 0x822   : > { %2876 = vmatmul.mubr.f32.vlgmr.msra.gmra.mrb[36].mxu0 %v6794_v32 }
 0x823   : > { %4571 = vmatpush1.bf16.msra.mxu0 %v7583_v55  ;;  %v7621_v55 = vld [vmem:[#allocation72_spill] sm:$0xff] }
 0x824   : > { %4573 = vmatprep.subr.bf16.mxu0 %v7584_v14  ;;  %v7622_v14 = vld [vmem:[#allocation73_spill] sm:$0xff] }
 0x825   : > { %v2806_v0 = vpop.f32.mrb[34].mxu0 }
 0x826   : > { %v2808_v5 = vpop.f32.mrb[35].mxu0  ;;  %v2807_v18 = vadd.f32 %v2806_v0, %v7615_v35  ;;  %v7619_v0 = vld [vmem:[#allocation70_spill] sm:$0xff] }
 0x827   : > { %v2809_v57 = vadd.f32 %v2808_v5, %v7615_v35  ;;  %4575 = vmatpush1.bf16.msra.mxu0 %v7585_v61  ;;  %v7618_v5 = vld [vmem:[#allocation69_spill] sm:$0xff]  ;;  %v7620_v35 = vld [vmem:[#allocation71_spill] sm:$0xff]  ;;  %v7623_v61 = vld [vmem:[#allocation74_spill] sm:$0xff] }
 0x828   : > { %4577 = vmatprep.subr.bf16.mxu0 %v7586_v59  ;;  %v7624_v59 = vld [vmem:[#allocation75_spill] sm:$0xff] }
 0x829   : > { %2946 = vmatprep.mubr.f32.mxu1 %v2809_v57  ;;  %3019 = vmatprep.mubr.f32.mxu0 %v2809_v57 }
 0x82a   : > { %2947 = vmatmul.mubr.f32.vlgmr.msra.gmra.mrb[26].mxu1 %v2807_v18 }
 0x82b   : > { %4579 = vmatpush1.bf16.msra.mxu0 %v7587_v1  ;;  %4699 = vmatpush1.bf16.msra.mxu1 %v7616_v24  ;;  %v7625_v1 = vld [vmem:[#allocation76_spill] sm:$0xff] }
 0x82c   : > { %4581 = vmatprep.subr.bf16.mxu0 %v7588_v30  ;;  %4701 = vmatprep.subr.bf16.mxu1 %v7617_v8  ;;  %v7626_v30 = vld [vmem:[#allocation77_spill] sm:$0xff] }
 0x82f   : > { %4583 = vmatpush1.bf16.msra.mxu0 %v7589_v22  ;;  %4703 = vmatpush1.bf16.msra.mxu1 %v7618_v5  ;;  %v7627_v22 = vld [vmem:[#allocation78_spill] sm:$0xff] }
 0x830   : > { %4585 = vmatprep.subr.bf16.mxu0 %v7590_v33  ;;  %4705 = vmatprep.subr.bf16.mxu1 %v7619_v0  ;;  %v7628_v33 = vld [vmem:[#allocation79_spill] sm:$0xff] }
 0x833   : > { %4587 = vmatpush1.bf16.msra.mxu0 %v7591_v26  ;;  %4707 = vmatpush1.bf16.msra.mxu1 %v7620_v35  ;;  %v7629_v26 = vld [vmem:[#allocation80_spill] sm:$0xff] }
 0x834   : > { %4589 = vmatprep.subr.bf16.mxu0 %v7592_v53  ;;  %4709 = vmatprep.subr.bf16.mxu1 %v7621_v55  ;;  %v7630_v53 = vld [vmem:[#allocation81_spill] sm:$0xff] }
 0x837   : > { %4591 = vmatpush1.bf16.msra.mxu0 %v7593_v39  ;;  %4711 = vmatpush1.bf16.msra.mxu1 %v7622_v14  ;;  %v7631_v39 = vld [vmem:[#allocation82_spill] sm:$0xff] }
 0x838   : > { %4593 = vmatprep.subr.bf16.mxu0 %v7594_v34  ;;  %4713 = vmatprep.subr.bf16.mxu1 %v7623_v61  ;;  %v7632_v34 = vld [vmem:[#allocation83_spill] sm:$0xff] }
 0x83b   : > { %4595 = vmatpush1.bf16.msra.mxu0 %v7595_v40  ;;  %4715 = vmatpush1.bf16.msra.mxu1 %v7624_v59  ;;  %v7633_v40 = vld [vmem:[#allocation84_spill] sm:$0xff] }
 0x83c   : > { %4597 = vmatprep.subr.bf16.mxu0 %v7596_v47  ;;  %4717 = vmatprep.subr.bf16.mxu1 %v7625_v1  ;;  %v7634_v47 = vld [vmem:[#allocation85_spill] sm:$0xff] }
 0x83f   : > { %4599 = vmatpush1.bf16.msra.mxu0 %v7597_v29  ;;  %4719 = vmatpush1.bf16.msra.mxu1 %v7626_v30  ;;  %v7635_v29 = vld [vmem:[#allocation86_spill] sm:$0xff] }
 0x840   : > { %4601 = vmatprep.subr.bf16.mxu0 %v7598_v63  ;;  %4721 = vmatprep.subr.bf16.mxu1 %v7627_v22  ;;  %v7636_v63 = vld [vmem:[#allocation87_spill] sm:$0xff] }
 0x843   : > { %4603 = vmatpush1.bf16.msra.mxu0 %v7599_v7  ;;  %4723 = vmatpush1.bf16.msra.mxu1 %v7628_v33  ;;  %v7661_v7 = vld [vmem:[#allocation134_spill] sm:$0xff] }
 0x844   : > { %4605 = vmatprep.subr.bf16.mxu0 %v7600_v37  ;;  %4725 = vmatprep.subr.bf16.mxu1 %v7629_v26 }
 0x847   : > { %4607 = vmatpush1.bf16.msra.mxu0 %v7601_v9  ;;  %4727 = vmatpush1.bf16.msra.mxu1 %v7630_v53  ;;  %v7662_v9 = vld [vmem:[#allocation135_spill] sm:$0xff] }
 0x848   : > { %4609 = vmatprep.subr.bf16.mxu0 %v7602_v12  ;;  %4729 = vmatprep.subr.bf16.mxu1 %v7631_v39 }
 0x84b   : > { %4611 = vmatpush1.bf16.msra.mxu0 %v7603_v23  ;;  %4731 = vmatpush1.bf16.msra.mxu1 %v7632_v34  ;;  %v7637_v23 = vld [vmem:[#allocation88_spill] sm:$0xff] }
 0x84c   : > { %4613 = vmatprep.subr.bf16.mxu0 %v7604_v3  ;;  %4733 = vmatprep.subr.bf16.mxu1 %v7633_v40  ;;  %v7638_v3 = vld [vmem:[#allocation89_spill] sm:$0xff] }
 0x84f   : > { %4615 = vmatpush1.bf16.msra.mxu0 %v7605_v58  ;;  %4735 = vmatpush1.bf16.msra.mxu1 %v7634_v47  ;;  %v7639_v58 = vld [vmem:[#allocation90_spill] sm:$0xff] }
 0x850   : > { %4617 = vmatprep.subr.bf16.mxu0 %v7606_v46  ;;  %4737 = vmatprep.subr.bf16.mxu1 %v7635_v29  ;;  %v7640_v46 = vld [vmem:[#allocation91_spill] sm:$0xff] }
 0x853   : > { %4619 = vmatpush1.bf16.msra.mxu0 %v7607_v52  ;;  %4739 = vmatpush1.bf16.msra.mxu1 %v7636_v63  ;;  %v7641_v52 = vld [vmem:[#allocation92_spill] sm:$0xff] }
 0x854   : > { %4621 = vmatprep.subr.bf16.mxu0 %v7608_v15  ;;  %4741 = vmatprep.subr.bf16.mxu1 %v7637_v23  ;;  %v7642_v15 = vld [vmem:[#allocation93_spill] sm:$0xff] }
 0x857   : > { %4623 = vmatpush1.bf16.msra.mxu0 %v7609_v28  ;;  %4743 = vmatpush1.bf16.msra.mxu1 %v7638_v3  ;;  %v7643_v28 = vld [vmem:[#allocation94_spill] sm:$0xff] }
 0x858   : > { %4625 = vmatprep.subr.bf16.mxu0 %v7610_v21  ;;  %4745 = vmatprep.subr.bf16.mxu1 %v7639_v58  ;;  %v7644_v21 = vld [vmem:[#allocation95_spill] sm:$0xff] }
 0x85b   : > { %4627 = vmatpush1.bf16.msra.mxu0 %v7611_v16  ;;  %4747 = vmatpush1.bf16.msra.mxu1 %v7640_v46  ;;  %v7646_v16 = vld [vmem:[#allocation97_spill] sm:$0xff] }
 0x85c   : > { %4629 = vmatprep.subr.bf16.mxu0 %v7612_v4  ;;  %4749 = vmatprep.subr.bf16.mxu1 %v7641_v52  ;;  %v7645_v4 = vld [vmem:[#allocation96_spill] sm:$0xff] }
 0x85f   : > { %4631 = vmatpush1.bf16.msra.mxu0 %v7613_v45  ;;  %4751 = vmatpush1.bf16.msra.mxu1 %v7642_v15 }
 0x860   : > { %4633 = vmatprep.subr.bf16.mxu0 %v5365_v36  ;;  %4753 = vmatprep.subr.bf16.mxu1 %v7643_v28  ;;  %v7647_v36 = vld [vmem:[#allocation98_spill] sm:$0xff] }
 0x862   : > { %3020 = vmatmul.mubr.f32.vlgmr.msra.gmra.mrb[38].mxu0 %v2807_v18 }
 0x863   : > { %4635 = vmatpush1.bf16.msra.mxu0 %v5370_v38  ;;  %3090 = vmatprep.mubr.f32.mxu0 %v6791_v20  ;;  %v7648_v38 = vld [vmem:[#allocation19_spill] sm:$0xff] }
 0x864   : > { %4637 = vmatprep.subr.bf16.mxu0 %v5383_v42  ;;  %4755 = vmatpush1.bf16.msra.mxu1 %v7644_v21  ;;  %v7649_v42 = vld [vmem:[#allocation20_spill] sm:$0xff] }
 0x865   : > { %4757 = vmatprep.subr.bf16.mxu1 %v7645_v4 }
 0x867   : > { %4639 = vmatpush1.bf16.msra.mxu0 %v5388_v44  ;;  %v7650_v44 = vld [vmem:[#allocation57_spill] sm:$0xff] }
 0x868   : > { %4641 = vmatprep.subr.bf16.mxu0 %v5401_v48  ;;  %4759 = vmatpush1.bf16.msra.mxu1 %v7646_v16  ;;  %v7651_v48 = vld [vmem:[#allocation58_spill] sm:$0xff] }
 0x869   : > { %4761 = vmatprep.subr.bf16.mxu1 %v7647_v36 }
 0x86b   : > { %4643 = vmatpush1.bf16.msra.mxu0 %v5406_v50  ;;  %v7652_v50 = vld [vmem:[#allocation59_spill] sm:$0xff] }
 0x86c   : > { %4645 = vmatprep.subr.bf16.mxu0 %v5419_v54  ;;  %v7653_v54 = vld [vmem:[#allocation60_spill] sm:$0xff] }
 0x86f   : > { %4647 = vmatpush1.bf16.msra.mxu0 %v5424_v56  ;;  %v7654_v56 = vld [vmem:[#allocation61_spill] sm:$0xff] }
 0x870   : > { %4649 = vmatprep.subr.bf16.mxu0 %v5437_v60  ;;  %v7655_v60 = vld [vmem:[#allocation62_spill] sm:$0xff] }
 0x873   : > { %4651 = vmatpush1.bf16.msra.mxu0 %v5442_v62  ;;  %v7656_v62 = vld [vmem:[#allocation65_spill] sm:$0xff] }
 0x874   : > { %4653 = vmatprep.subr.bf16.mxu0 %v5455_v2 }
 0x877   : > { %4655 = vmatpush1.bf16.msra.mxu0 %v5460_v6 }
 0x878   : > { %4657 = vmatprep.subr.bf16.mxu0 %v5473_v11 }
 0x87b   : > { %4659 = vmatpush1.bf16.msra.mxu0 %v7551_v19 }
 0x87c   : > { %4661 = vmatprep.subr.bf16.mxu0 %v7552_v25 }
 0x87f   : > { %4663 = vmatpush1.bf16.msra.mxu0 %v7553_v27 }
 0x880   : > { %4665 = vmatprep.subr.bf16.mxu0 %v7554_v41  ;;  %v7657_v41 = vld [vmem:[#allocation99_spill] sm:$0xff] }
 0x883   : > { %4667 = vmatpush1.bf16.msra.mxu0 %v7555_v43 }
 0x884   : > { %4669 = vmatprep.subr.bf16.mxu0 %v7556_v31  ;;  %v5040_v31 = vld [vmem:[%s6375_s0] sm:$0xff] }
 0x887   : > { %4671 = vmatpush1.bf16.msra.mxu0 %v7557_v17 }
 0x888   : > { %4673 = vmatprep.subr.bf16.mxu0 %v7558_v13 }
 0x88b   : > { %4675 = vmatpush1.bf16.msra.mxu0 %v7559_v10  ;;  %v7659_v10 = vld [vmem:[#allocation100_spill] sm:$0xff] }
 0x88c   : > { %4677 = vmatprep.subr.bf16.mxu0 %v7560_v51 }
 0x88f   : > { %4679 = vmatpush1.bf16.msra.mxu0 %v7561_v49 }
 0x890   : > { %4681 = vmatprep.subr.bf16.mxu0 %v7648_v38  ;;  %v7694_v38 = vld [vmem:[#allocation132_spill] sm:$0xff] }
 0x893   : > { %4683 = vmatpush1.bf16.msra.mxu0 %v7649_v42 }
 0x894   : > { %4685 = vmatprep.subr.bf16.mxu0 %v7650_v44 }
 0x897   : > { %4687 = vmatpush1.bf16.msra.mxu0 %v7651_v48  ;;  %v7695_v48 = vld [vmem:[#allocation133_spill] sm:$0xff] }
 0x898   : > { %4689 = vmatprep.subr.bf16.mxu0 %v7652_v50 }
 0x89b   : > { %4691 = vmatpush1.bf16.msra.mxu0 %v7653_v54 }
 0x89c   : > { %4693 = vmatprep.subr.bf16.mxu0 %v7654_v56 }
 0x89f   : > { %4695 = vmatpush1.bf16.msra.mxu0 %v7655_v60 }
 0x8a0   : > { %4825 = vmatprep.subr.bf16.mxu0 %v7656_v62 }
 0x8a2   : > { %3091 = vmatmul.mubr.f32.vlgmr.msra.gmra.mrb[38].mxu0 %v6794_v32 }
 0x8a3   : > { %4827 = vmatpush1.bf16.msra.mxu0 %v7616_v24  ;;  %v7663_v24 = vld [vmem:[#allocation101_spill] sm:$0xff] }
 0x8a4   : > { %4829 = vmatprep.subr.bf16.mxu0 %v7617_v8  ;;  %v7664_v8 = vld [vmem:[#allocation102_spill] sm:$0xff] }
 0x8a7   : > { %4831 = vmatpush1.bf16.msra.mxu0 %v7618_v5  ;;  %v7665_v5 = vld [vmem:[#allocation103_spill] sm:$0xff] }
 0x8a8   : > { %4833 = vmatprep.subr.bf16.mxu0 %v7619_v0  ;;  %v7666_v0 = vld [vmem:[#allocation104_spill] sm:$0xff] }
 0x8ab   : > { %4835 = vmatpush1.bf16.msra.mxu0 %v7620_v35  ;;  %v7667_v35 = vld [vmem:[#allocation105_spill] sm:$0xff] }
 0x8ac   : > { %4837 = vmatprep.subr.bf16.mxu0 %v7621_v55  ;;  %v7668_v55 = vld [vmem:[#allocation106_spill] sm:$0xff] }
 0x8af   : > { %4839 = vmatpush1.bf16.msra.mxu0 %v7622_v14  ;;  %v7669_v14 = vld [vmem:[#allocation107_spill] sm:$0xff] }
 0x8b0   : > { %4841 = vmatprep.subr.bf16.mxu0 %v7623_v61  ;;  %v7670_v61 = vld [vmem:[#allocation108_spill] sm:$0xff] }
 0x8b3   : > { %4843 = vmatpush1.bf16.msra.mxu0 %v7624_v59  ;;  %v7671_v59 = vld [vmem:[#allocation109_spill] sm:$0xff] }
 0x8b4   : > { %4845 = vmatprep.subr.bf16.mxu0 %v7625_v1  ;;  %v7672_v1 = vld [vmem:[#allocation110_spill] sm:$0xff] }
 0x8b7   : > { %4847 = vmatpush1.bf16.msra.mxu0 %v7626_v30  ;;  %v7673_v30 = vld [vmem:[#allocation111_spill] sm:$0xff] }
 0x8b8   : > { %4849 = vmatprep.subr.bf16.mxu0 %v7627_v22  ;;  %v7674_v22 = vld [vmem:[#allocation112_spill] sm:$0xff] }
 0x8bb   : > { %4851 = vmatpush1.bf16.msra.mxu0 %v7628_v33  ;;  %v7675_v33 = vld [vmem:[#allocation113_spill] sm:$0xff] }
 0x8bc   : > { %4853 = vmatprep.subr.bf16.mxu0 %v7629_v26  ;;  %v7676_v26 = vld [vmem:[#allocation114_spill] sm:$0xff] }
 0x8bf   : > { %4855 = vmatpush1.bf16.msra.mxu0 %v7630_v53  ;;  %v7677_v53 = vld [vmem:[#allocation115_spill] sm:$0xff] }
 0x8c0   : > { %4857 = vmatprep.subr.bf16.mxu0 %v7631_v39  ;;  %v7678_v39 = vld [vmem:[#allocation116_spill] sm:$0xff] }
 0x8c3   : > { %4859 = vmatpush1.bf16.msra.mxu0 %v7632_v34  ;;  %v7679_v34 = vld [vmem:[#allocation117_spill] sm:$0xff] }
 0x8c4   : > { %4861 = vmatprep.subr.bf16.mxu0 %v7633_v40  ;;  %v7680_v40 = vld [vmem:[#allocation118_spill] sm:$0xff] }
 0x8c7   : > { %4863 = vmatpush1.bf16.msra.mxu0 %v7634_v47  ;;  %v7681_v47 = vld [vmem:[#allocation119_spill] sm:$0xff] }
 0x8c8   : > { %4865 = vmatprep.subr.bf16.mxu0 %v7635_v29  ;;  %v7682_v29 = vld [vmem:[#allocation120_spill] sm:$0xff] }
 0x8cb   : > { %4867 = vmatpush1.bf16.msra.mxu0 %v7636_v63  ;;  %v7683_v63 = vld [vmem:[#allocation121_spill] sm:$0xff] }
 0x8cc   : > { %4869 = vmatprep.subr.bf16.mxu0 %v7637_v23  ;;  %v7684_v23 = vld [vmem:[#allocation122_spill] sm:$0xff] }
 0x8cf   : > { %4871 = vmatpush1.bf16.msra.mxu0 %v7638_v3  ;;  %v7685_v3 = vld [vmem:[#allocation123_spill] sm:$0xff] }
 0x8d0   : > { %4873 = vmatprep.subr.bf16.mxu0 %v7639_v58  ;;  %v7686_v58 = vld [vmem:[#allocation124_spill] sm:$0xff] }
 0x8d3   : > { %4875 = vmatpush1.bf16.msra.mxu0 %v7640_v46  ;;  %v7687_v46 = vld [vmem:[#allocation125_spill] sm:$0xff] }
 0x8d4   : > { %4877 = vmatprep.subr.bf16.mxu0 %v7641_v52  ;;  %v7688_v52 = vld [vmem:[#allocation126_spill] sm:$0xff] }
 0x8d7   : > { %4879 = vmatpush1.bf16.msra.mxu0 %v7642_v15  ;;  %v7689_v15 = vld [vmem:[#allocation127_spill] sm:$0xff] }
 0x8d8   : > { %4881 = vmatprep.subr.bf16.mxu0 %v7643_v28  ;;  %v7690_v28 = vld [vmem:[#allocation128_spill] sm:$0xff] }
 0x8db   : > { %4883 = vmatpush1.bf16.msra.mxu0 %v7644_v21  ;;  %v7691_v21 = vld [vmem:[#allocation129_spill] sm:$0xff] }
 0x8dc   : > { %4885 = vmatprep.subr.bf16.mxu0 %v7645_v4  ;;  %v7692_v4 = vld [vmem:[#allocation130_spill] sm:$0xff] }
 0x8df   : > { %4887 = vmatpush1.bf16.msra.mxu0 %v7646_v16  ;;  %v7693_v16 = vld [vmem:[#allocation131_spill] sm:$0xff] }
 0x8e0   : > { %4889 = vmatprep.subr.bf16.mxu0 %v7647_v36 }
 0x8f5   : > { %v2877_v2 = vpop.f32.mrb[36].mxu0 }
 0x8f6   : > { %v2879_v6 = vpop.f32.mrb[37].mxu0 }
 0x8fd   : > { %v2948_v11 = vpop.f32.mrb[26].mxu1 }
 0x8fe   : > { %v2953_v45 = vsub.f32 %v2877_v2, %v2948_v11  ;;  %v2950_v20 = vpop.f32.mrb[27].mxu1  ;;  %v7696_v2 = vld [vmem:[#allocation140_spill] sm:$0xff]  ;;  %v7697_v11 = vld [vmem:[#allocation141_spill] sm:$0xff] }
 0x8ff   : > { %v2954_v32 = vsub.f32 %v2879_v6, %v2950_v20 }
 0x900   : > { %v3097_v43 = vsub.f32 %v2953_v45, %v5040_v31  ;;  %v7698_v31 = vmov 0.0  }
 0x901   : > { %v3098_v27 = vsub.f32 %v2954_v32, %v7657_v41 }
 0x902   : > { %v3099_v51 = vsel %vm794_vm3, %v3097_v43, 0.0 }
 0x903   : > { %v3101_v13 = vmul.f32 %v3099_v51, %v7659_v10  ;;  %v3100_v19 = vsel %vm795_vm4, %v3098_v27, 0.0 }
 0x904   : > { %v3102_v25 = vmul.f32 %v3100_v19, %v7659_v10  ;;  %v7699_v19 = vld [vmem:[#allocation142_spill] sm:$0xff] }
 0x905   : > { %v3109_v37 = vsub.f32 %v7661_v7, %v3101_v13  ;;  %v7701_v7 = vld [vmem:[#allocation144_spill] sm:$0xff] }
 0x906   : > { %v3110_v12 = vsub.f32 %v7662_v9, %v3102_v25  ;;  %v7700_v25 = vld [vmem:[#allocation143_spill] sm:$0xff]  ;;  %v7703_v9 = vld [vmem:[#allocation136_spill] sm:$0xff] }
 0x907   : > { %v6940_v18 = vsub.f32 %v3109_v37, %v2953_v45  ;;  %v7702_v37 = vld [vmem:[#allocation145_spill] sm:$0xff] }
 0x908   : > { %v3112_v57 = vsub.f32 %v3110_v12, %v2954_v32  ;;  %v7704_v12 = vld [vmem:[#allocation137_spill] sm:$0xff] }
 0x90a   : > { %3181 = vmatprep.mubr.f32.mxu1 %v3112_v57 }
 0x90b   : > { %3182 = vmatmul.mubr.f32.vlgmr.msra.gmra.mrb[28].mxu1 %v6940_v18 }
 0x90c   : > { %4763 = vmatpush1.bf16.msra.mxu1 %v7663_v24 }
 0x90d   : > { %4765 = vmatprep.subr.bf16.mxu1 %v7664_v8 }
 0x910   : > { %4767 = vmatpush1.bf16.msra.mxu1 %v7665_v5 }
 0x911   : > { %4769 = vmatprep.subr.bf16.mxu1 %v7666_v0 }
 0x914   : > { %4771 = vmatpush1.bf16.msra.mxu1 %v7667_v35 }
 0x915   : > { %4773 = vmatprep.subr.bf16.mxu1 %v7668_v55 }
 0x918   : > { %4775 = vmatpush1.bf16.msra.mxu1 %v7669_v14 }
 0x919   : > { %4777 = vmatprep.subr.bf16.mxu1 %v7670_v61 }
 0x91c   : > { %4779 = vmatpush1.bf16.msra.mxu1 %v7671_v59 }
 0x91d   : > { %4781 = vmatprep.subr.bf16.mxu1 %v7672_v1 }
 0x920   : > { %4783 = vmatpush1.bf16.msra.mxu1 %v7673_v30 }
 0x921   : > { %4785 = vmatprep.subr.bf16.mxu1 %v7674_v22 }
 0x924   : > { %4787 = vmatpush1.bf16.msra.mxu1 %v7675_v33 }
 0x925   : > { %4789 = vmatprep.subr.bf16.mxu1 %v7676_v26 }
 0x928   : > { %4791 = vmatpush1.bf16.msra.mxu1 %v7677_v53 }
 0x929   : > { %4793 = vmatprep.subr.bf16.mxu1 %v7678_v39 }
 0x92c   : > { %4795 = vmatpush1.bf16.msra.mxu1 %v7679_v34 }
 0x92d   : > { %4797 = vmatprep.subr.bf16.mxu1 %v7680_v40 }
 0x930   : > { %4799 = vmatpush1.bf16.msra.mxu1 %v7681_v47 }
 0x931   : > { %4801 = vmatprep.subr.bf16.mxu1 %v7682_v29 }
 0x934   : > { %4803 = vmatpush1.bf16.msra.mxu1 %v7683_v63 }
 0x935   : > { %4805 = vmatprep.subr.bf16.mxu1 %v7684_v23 }
 0x938   : > { %4807 = vmatpush1.bf16.msra.mxu1 %v7685_v3 }
 0x939   : > { %4809 = vmatprep.subr.bf16.mxu1 %v7686_v58 }
 0x93c   : > { %4811 = vmatpush1.bf16.msra.mxu1 %v7687_v46 }
 0x93d   : > { %4813 = vmatprep.subr.bf16.mxu1 %v7688_v52 }
 0x940   : > { %4815 = vmatpush1.bf16.msra.mxu1 %v7689_v15 }
 0x941   : > { %4817 = vmatprep.subr.bf16.mxu1 %v7690_v28 }
 0x944   : > { %4819 = vmatpush1.bf16.msra.mxu1 %v7691_v21 }
 0x945   : > { %4821 = vmatprep.subr.bf16.mxu1 %v7692_v4 }
 0x948   : > { %4823 = vmatpush1.bf16.msra.mxu1 %v7693_v16 }
 0x975   : > { %v3092_v36 = vpop.f32.mrb[38].mxu0 }
 0x976   : > { %v3103_v42 = vsub.f32 %v3092_v36, %v7694_v38  ;;  %v3094_v44 = vpop.f32.mrb[39].mxu0  ;;  %v7711_v38 = vld [vmem:[#allocation12_spill] sm:$0xff] }
 0x977   : > { %v3104_v50 = vsub.f32 %v3094_v44, %v7695_v48 }
 0x978   : > { %v3105_v54 = vsel %vm794_vm3, %v3103_v42, 0.0 }
 0x979   : > { %v3107_v56 = vmul.f32 %v3105_v54, %v7659_v10  ;;  %v3106_v60 = vsel %vm795_vm4, %v3104_v50, 0.0 }
 0x97a   : > { %v3108_v62 = vmul.f32 %v3106_v60, %v7659_v10 }
 0x97b   : > { %v3113_v6 = vsub.f32 %v7696_v2, %v3107_v56 }
 0x97c   : > { %v3114_v45 = vsub.f32 %v7697_v11, %v3108_v62 }
 0x97d   : > { %v3115_v20 = vsub.f32 %v3113_v6, %v3092_v36 }
 0x97e   : > { %v3116_v32 = vsub.f32 %v3114_v45, %v3094_v44  ;;  %v7712_v44 = vld [vmem:[#allocation13_spill] sm:$0xff] }
 0x980   : > { %3252 = vmatprep.mubr.f32.mxu1 %v3116_v32  ;;  %3325 = vmatprep.mubr.f32.mxu0 %v3116_v32 }
 0x981   : > { %3253 = vmatmul.mubr.f32.vlgmr.msra.gmra.mrb[30].mxu1 %v3115_v20  ;;  %3326 = vmatmul.mubr.f32.vlgmr.msra.gmra.mrb[40].mxu0 %v3115_v20 }
 0x982   : > { %4891 = vmatpush1.bf16.msra.mxu0 %v7663_v24  ;;  %3396 = vmatprep.mubr.f32.mxu0 %v3112_v57  ;;  %v7705_v57 = vld [vmem:[#allocation138_spill] sm:$0xff] }
 0x983   : > { %4893 = vmatprep.subr.bf16.mxu0 %v7664_v8  ;;  %3473 = vmatprep.mubr.f32.mxu1 %v7698_v31 }
 0x986   : > { %4895 = vmatpush1.bf16.msra.mxu0 %v7665_v5  ;;  %v7707_v5 = vld [vmem:[#allocation8_spill] sm:$0xff] }
 0x987   : > { %4897 = vmatprep.subr.bf16.mxu0 %v7666_v0 }
 0x98a   : > { %4899 = vmatpush1.bf16.msra.mxu0 %v7667_v35 }
 0x98b   : > { %4901 = vmatprep.subr.bf16.mxu0 %v7668_v55 }
 0x98e   : > { %4903 = vmatpush1.bf16.msra.mxu0 %v7669_v14  ;;  %v7708_v14 = vld [vmem:[#allocation9_spill] sm:$0xff] }
 0x98f   : > { %4905 = vmatprep.subr.bf16.mxu0 %v7670_v61 }
 0x992   : > { %4907 = vmatpush1.bf16.msra.mxu0 %v7671_v59 }
 0x993   : > { %4909 = vmatprep.subr.bf16.mxu0 %v7672_v1 }
 0x996   : > { %4911 = vmatpush1.bf16.msra.mxu0 %v7673_v30 }
 0x997   : > { %4913 = vmatprep.subr.bf16.mxu0 %v7674_v22 }
 0x99a   : > { %4915 = vmatpush1.bf16.msra.mxu0 %v7675_v33 }
 0x99b   : > { %4917 = vmatprep.subr.bf16.mxu0 %v7676_v26 }
 0x99e   : > { %4919 = vmatpush1.bf16.msra.mxu0 %v7677_v53 }
 0x99f   : > { %4921 = vmatprep.subr.bf16.mxu0 %v7678_v39 }
 0x9a2   : > { %4923 = vmatpush1.bf16.msra.mxu0 %v7679_v34 }
 0x9a3   : > { %4925 = vmatprep.subr.bf16.mxu0 %v7680_v40 }
 0x9a6   : > { %4927 = vmatpush1.bf16.msra.mxu0 %v7681_v47  ;;  %v7709_v47 = vld [vmem:[#allocation10_spill] sm:$0xff] }
 0x9a7   : > { %4929 = vmatprep.subr.bf16.mxu0 %v7682_v29 }
 0x9aa   : > { %4931 = vmatpush1.bf16.msra.mxu0 %v7683_v63 }
 0x9ab   : > { %4933 = vmatprep.subr.bf16.mxu0 %v7684_v23 }
 0x9ae   : > { %4935 = vmatpush1.bf16.msra.mxu0 %v7685_v3  ;;  %v7710_v3 = vld [vmem:[#allocation11_spill] sm:$0xff] }
 0x9af   : > { %4937 = vmatprep.subr.bf16.mxu0 %v7686_v58 }
 0x9b2   : > { %4939 = vmatpush1.bf16.msra.mxu0 %v7687_v46 }
 0x9b3   : > { %4941 = vmatprep.subr.bf16.mxu0 %v7688_v52 }
 0x9b6   : > { %4943 = vmatpush1.bf16.msra.mxu0 %v7689_v15 }
 0x9b7   : > { %4945 = vmatprep.subr.bf16.mxu0 %v7690_v28 }
 0x9ba   : > { %4947 = vmatpush1.bf16.msra.mxu0 %v7691_v21 }
 0x9bb   : > { %4949 = vmatprep.subr.bf16.mxu0 %v7692_v4 }
 0x9be   : > { %4951 = vmatpush1.bf16.msra.mxu0 %v7693_v16 }
 0x9c1   : > { %3397 = vmatmul.mubr.f32.vlgmr.msra.gmra.mrb[40].mxu0 %v6940_v18  ;;  %v7706_v18 = vld [vmem:[#allocation139_spill] sm:$0xff] }
 0x9de   : > { %v3183_v43 = vpop.f32.mrb[28].mxu1 }
 0x9df   : > { %v3185_v41 = vpop.f32.mrb[29].mxu1 }
 0xa54   : > { %v3254_v27 = vpop.f32.mrb[30].mxu1 }
 0xa55   : > { %v3259_v49 = vsub.f32 %v3183_v43, %v3254_v27  ;;  %v3256_v51 = vpop.f32.mrb[31].mxu1 }
 0xa56   : > { %v3260_v10 = vsub.f32 %v3185_v41, %v3256_v51 }
 0xa94   : > { %v3398_v13 = vpop.f32.mrb[40].mxu0 }
 0xa95   : > { %v3400_v17 = vpop.f32.mrb[41].mxu0 }
 0xa96   : > { %3867 = vmatprep.subr.msk.mxu1 %vm2138_vm5, %v3400_v17 }
 0xa97   : > { %3868 = vmatpush1.msk.msra.mxu1 %vm2138_vm5, %v3398_v13 }
 0xa98   : > { %3869 = vmatmul.mubr.msk.f32.vlgmr.msra.gmra.mrb[32].mxu1 %vm2125_vm6, %v7699_v19  ;;  %3873 = vmatprep.subr.msk.mxu1 %vm2138_vm5, %v3260_v10 }
 0xa99   : > { %3874 = vmatpush1.msk.msra.mxu1 %vm2138_vm5, %v3259_v49  ;;  %3479 = vmatprep.mubr.f32.mxu1 %v7698_v31 }
 0xa9c   : > { %3870 = vmatmul.mubr.msk.f32.gmra.mrb[34].mxu1 %vm2125_vm6, %v7700_v25 }
 0xa9d   : > { %3485 = vmatprep.mubr.f32.mxu1 %v7698_v31 }
 0xaa0   : > { %3871 = vmatmul.mubr.msk.f32.gmra.mrb[36].mxu1 %vm2125_vm6, %v7701_v7 }
 0xaa1   : > { %3491 = vmatprep.mubr.f32.mxu1 %v7698_v31 }
 0xaa4   : > { %3872 = vmatmul.mubr.msk.f32.gmra.mrb[38].mxu1 %vm2125_vm6, %v7702_v37 }
 0xaa5   : > { %3568 = vmatprep.mubr.f32.mxu1 %v7698_v31 }
 0xaa8   : > { %3875 = vmatmul.mubr.msk.f32.vlgmr.msra.gmra.mrb[32].mxu1 %vm2125_vm6, %v7703_v9 }
 0xaa9   : > { %3574 = vmatprep.mubr.f32.mxu1 %v7698_v31 }
 0xaac   : > { %3876 = vmatmul.mubr.msk.f32.gmra.mrb[34].mxu1 %vm2125_vm6, %v7704_v12 }
 0xaad   : > { %3580 = vmatprep.mubr.f32.mxu1 %v7698_v31 }
 0xab0   : > { %3877 = vmatmul.mubr.msk.f32.gmra.mrb[36].mxu1 %vm2125_vm6, %v7705_v57 }
 0xab1   : > { %3586 = vmatprep.mubr.f32.mxu1 %v7698_v31 }
 0xab4   : > { %3878 = vmatmul.mubr.msk.f32.gmra.mrb[38].mxu1 %vm2125_vm6, %v7706_v18 }
 0xab5   : > { %3673 = vmatprep.mubr.f32.mxu1 %v7698_v31 }
 0xb7b   : > { %v3570_v24 = vpop.f32.mrb[32].mxu1 }
 0xb7c   : > { %v3572_v8 = vpop.f32.mrb[33].mxu1  ;;  %v3593_v0 = vadd.f32 %v3570_v24, %v7707_v5 }
 0xb7d   : > { %v3594_v35 = vadd.f32 %v3572_v8, %v7707_v5 }
 0xb7e   : > { %v3601_v30 = vmax.f32 %v3593_v0, 0.0 }
 0xb7f   : > { %v3576_v55 = vpop.f32.mrb[34].mxu1  ;;  %v3602_v33 = vmax.f32 %v3594_v35, 0.0 }
 0xb80   : > { %v3595_v61 = vadd.f32 %v3576_v55, %v7708_v14  ;;  %v3578_v59 = vpop.f32.mrb[35].mxu1 }
 0xb81   : > { %v3596_v1 = vadd.f32 %v3578_v59, %v7708_v14 }
 0xb82   : > { %v3603_v22 = vmax.f32 %v3595_v61, 0.0 }
 0xb83   : > { %v3604_v26 = vmax.f32 %v3596_v1, 0.0  ;;  %v3582_v53 = vpop.f32.mrb[36].mxu1 }
 0xb84   : > { %v4954_v39 = vpack.c.bf16 %v3603_v22, %v3601_v30  ;;  %v3584_v34 = vpop.f32.mrb[37].mxu1  ;;  %v3597_v29 = vadd.f32 %v3582_v53, %v7709_v47 }
 0xb85   : > { %v4952_v40 = vpack.c.bf16 %v3604_v26, %v3602_v33  ;;  %v3598_v63 = vadd.f32 %v3584_v34, %v7709_v47 }
 0xb86   : > { %v3605_v15 = vmax.f32 %v3597_v29, 0.0 }
 0xb87   : > { %v3588_v23 = vpop.f32.mrb[38].mxu1  ;;  %4953 = vmatprep.subr.bf16.mxu1 %v4952_v40  ;;  %v3606_v21 = vmax.f32 %v3598_v63, 0.0 }
 0xb88   : > { %v3599_v58 = vadd.f32 %v3588_v23, %v7710_v3  ;;  %v3590_v46 = vpop.f32.mrb[39].mxu1  ;;  %4955 = vmatpush1.bf16.msra.mxu1 %v4954_v39 }
 0xb89   : > { %v3600_v52 = vadd.f32 %v3590_v46, %v7710_v3 }
 0xb8a   : > { %v3607_v28 = vmax.f32 %v3599_v58, 0.0 }
 0xb8b   : > { %v3608_v4 = vmax.f32 %v3600_v52, 0.0 }
 0xb8c   : > { %v4958_v16 = vpack.c.bf16 %v3607_v28, %v3605_v15 }
 0xb8d   : > { %v4956_v36 = vpack.c.bf16 %v3608_v4, %v3606_v21 }
 0xb8f   : > { %4957 = vmatprep.subr.bf16.mxu1 %v4956_v36 }
 0xb90   : > { %4959 = vmatpush1.bf16.msra.mxu1 %v4958_v16 }
 0xb93   : > { %3879 = vmatmul.mubr.msk.f32.vlgmr.msra.gmra.mrb[40].mxu1 %vm1354_vm2, %v7711_v38 }
 0xc66   : > { %v3675_v42 = vpop.f32.mrb[40].mxu1 }
 0xc67   : > { %v3676_v48 = vadd.f32 %v3675_v42, %v7712_v44  ;;  %v3677_v50 = vpop.f32.mrb[41].mxu1 }
 0xc68   : > { %v3678_v54 = vadd.f32 %v3677_v50, %v7712_v44 }
 0xc6a   : > { %v3682_v56 = vcombine.low %v3676_v48, %v3678_v54 }
 0xc6c   : > { %3880 = vst.sshfl [vmem:[%s776_s2] sm:$0x33 pattern:$0x76325410] %v3682_v56 }
 0xc6d PF: > { %s34_s30 = sadd.s32 1, %s5080_s30  }
 0xc6e   : > { %p31_p3 = scmp.ge.s32.totalorder %s34_s30, 4  }
 0xc70   :  { %33 = sbr.rel (!%p31_p3) target bundleno = 12 (0xc), region = 155 }
 0xc77   :  { %3713 = vsyncpa [#allocation4], 1 }
 0xc78   :  { %3715 = vsyncpa [#allocation4 + $0x1], 1 }

</bundles_post_ra>
